<compile_context>
chip_gen: v7x
topology: tpu7x:2x2x1
jax: 0.10.0
libtpu: 0.0.40
codegen_flags: <defaults>
</compile_context>

<pallas_src>
import functools

import jax
import jax.numpy as jnp
from jax.experimental import pallas as pl
from jax.experimental.pallas import tpu as pltpu


# ----------------------------- Pallas kernel ------------------------------- #

def _conv3x3(pad_ref, w_ref, cidx, bias, inp_f32, *, H, W, C):
    """3x3 SAME conv as 9 accumulating K=C matmuls (bf16 x bf16 -> f32 acc).

    pad_ref : (H+2, Wp, C) bf16 persistent scratch, zero border already set.
    w_ref   : (2, 3, 3, C, C) bf16 weights of the current ResBlock (streamed).
    cidx    : 0 or 1 (which conv of the ResBlock), static.
    bias    : (1, C) f32.
    inp_f32 : (H, W, C) f32 conv input.
    """
    # Single bf16 cast of the whole input; only the interior is written.
    pad_ref[1:H + 1, 1:W + 1, :] = inp_f32.astype(jnp.bfloat16)

    acc = jnp.zeros((H * W, C), jnp.float32)
    for kx in range(3):                              # hoisted column shift
        col = pad_ref[:, kx:kx + W, :]               # (H+2, W, C) bf16
        for ky in range(3):                          # row slices are aligned
            tap = col[ky:ky + H].reshape(H * W, C)
            acc = acc + jnp.dot(tap, w_ref[cidx, ky, kx],
                                preferred_element_type=jnp.float32)
    return acc.reshape(H, W, C) + bias               # bias add in f32


def _rg_kernel(x_ref, w_ref, b_ref, o_ref, cur_ref, pad_ref, *, H, W, C):
    """One grid step = one ResBlock of one batch element.

    x_ref  : (H, W, C)        RG input tile (resident across block steps)
    w_ref  : (2, 3, 3, C, C)  bf16 weights of the current block (streamed)
    b_ref  : (2, 1, C)        f32 biases of the current block (streamed)
    o_ref  : (H, W, C)        output tile (written on the last block step)
    cur_ref: (H, W, C) f32    running activation (persistent VMEM scratch)
    pad_ref: (H+2, Wp, C) bf16 zero-bordered padded conv input (persistent)
    """
    blk = pl.program_id(1)

    @pl.when(blk == 0)
    def _():
        pad_ref[...] = jnp.zeros_like(pad_ref)            # zero halo, once per image
        cur_ref[...] = x_ref[...].astype(jnp.float32)

    cur = cur_ref[...]
    b1 = b_ref[0].astype(jnp.float32)
    b2 = b_ref[1].astype(jnp.float32)

    y = jnp.maximum(_conv3x3(pad_ref, w_ref, 0, b1, cur, H=H, W=W, C=C), 0.0)
    cur = _conv3x3(pad_ref, w_ref, 1, b2, y, H=H, W=W, C=C) + cur   # block skip (f32)
    cur_ref[...] = cur

    @pl.when(blk == pl.num_programs(1) - 1)
    def _():
        o_ref[...] = (cur + x_ref[...].astype(jnp.float32)).astype(o_ref.dtype)


# ----------------------------- JAX wrapper --------------------------------- #

def init_rg_params(key, n_feats, n_blocks, dtype=jnp.float32):
    """Deterministic synthetic parameters: per block, two conv3x3 (w HWIO, b)."""
    params = []
    for _ in range(n_blocks):
        key, k1, k2, k3, k4 = jax.random.split(key, 5)
        w1 = jax.random.normal(k1, (3, 3, n_feats, n_feats), dtype) * 0.05
        b1 = jax.random.normal(k2, (n_feats,), dtype) * 0.05
        w2 = jax.random.normal(k3, (3, 3, n_feats, n_feats), dtype) * 0.05
        b2 = jax.random.normal(k4, (n_feats,), dtype) * 0.05
        params.append((w1, b1, w2, b2))
    return params


def rg_forward(x_nchw, params):
    """RG forward matching the PyTorch module (input/output NCHW)."""
    N, C, H, W = x_nchw.shape
    n_blocks = len(params)

    x = jnp.transpose(x_nchw, (0, 2, 3, 1))                    # NCHW -> NHWC

    # Weights stacked (2B, 3, 3, Cin, Cout) in bf16 (MXU-native operands);
    # biases (2B, 1, C) in f32 (added on the f32 accumulator path).
    w_all = jnp.stack([w for (w1, b1, w2, b2) in params
                       for w in (w1, w2)]).astype(jnp.bfloat16)
    b_all = jnp.stack([b.reshape(1, C) for (w1, b1, w2, b2) in params
                       for b in (b1, b2)]).astype(jnp.float32)

    Wp = ((W + 2 + 7) // 8) * 8          # padded-scratch width, 8-sublane aligned

    kernel = functools.partial(_rg_kernel, H=H, W=W, C=C)

    flops = 2 * N * n_blocks * 2 * 9 * H * W * C * C
    bytes_accessed = int(2 * x.size * x.dtype.itemsize
                         + N * w_all.size * w_all.dtype.itemsize
                         + N * b_all.size * b_all.dtype.itemsize)

    out = pl.pallas_call(
        kernel,
        out_shape=jax.ShapeDtypeStruct((N, H, W, C), x_nchw.dtype),
        grid=(N, n_blocks),
        in_specs=[
            pl.BlockSpec((None, H, W, C), lambda n, b: (n, 0, 0, 0)),
            pl.BlockSpec((2, 3, 3, C, C), lambda n, b: (b, 0, 0, 0, 0)),
            pl.BlockSpec((2, 1, C), lambda n, b: (b, 0, 0)),
        ],
        out_specs=pl.BlockSpec((None, H, W, C), lambda n, b: (n, 0, 0, 0)),
        scratch_shapes=[
            pltpu.VMEM((H, W, C), jnp.float32),        # running activation (f32 skip path)
            pltpu.VMEM((H + 2, Wp, C), jnp.bfloat16),  # zero-bordered padded conv input
        ],
        compiler_params=pltpu.CompilerParams(
            dimension_semantics=("parallel", "arbitrary"),
            vmem_limit_bytes=48 * 1024 * 1024,
        ),
        cost_estimate=pl.CostEstimate(flops=flops, transcendentals=0,
                                      bytes_accessed=bytes_accessed),
    )(x, w_all, b_all)

    return jnp.transpose(out, (0, 3, 1, 2))                    # NHWC -> NCHW


# ----------------------------- Reference (pure JAX) ------------------------ #

def _conv_ref(x_nhwc, w, b):
    # Matches the kernel's precision scheme: bf16 operands, f32 accumulation.
    y = jax.lax.conv_general_dilated(
        x_nhwc.astype(jnp.bfloat16), w.astype(jnp.bfloat16),
        window_strides=(1, 1), padding="SAME",
        dimension_numbers=("NHWC", "HWIO", "NHWC"),
        preferred_element_type=jnp.float32)
    return y + b.reshape(1, 1, 1, -1).astype(jnp.float32)


def rg_forward_ref(x_nchw, params):
    x = jnp.transpose(x_nchw, (0, 2, 3, 1)).astype(jnp.float32)
    out = x
    for (w1, b1, w2, b2) in params:
        y = jnp.maximum(_conv_ref(out, w1, b1), 0.0)
        out = _conv_ref(y, w2, b2) + out
    out = out + x
    return jnp.transpose(out, (0, 3, 1, 2))


# ----------------------------------- main ----------------------------------- #

if __name__ == "__main__":
    key = jax.random.PRNGKey(0)
    kx, kp = jax.random.split(key)

    N, C, H, W = 2, 8, 16, 16     # batch, n_feats, spatial
    n_blocks = 2                  # RG(n_feats=8, block=2)

    x = jax.random.normal(kx, (N, C, H, W), jnp.float32)
    params = init_rg_params(kp, C, n_blocks)

    out = jax.block_until_ready(jax.jit(rg_forward)(x, params))
    ref = jax.block_until_ready(rg_forward_ref(x, params))

    assert out.shape == x.shape and out.dtype == x.dtype
    max_err = float(jnp.max(jnp.abs(out - ref)))
    assert jnp.allclose(out, ref, atol=2e-2, rtol=2e-2), (
        f"mismatch vs JAX reference (max abs err {max_err})")

    print("KERNEL_OK")
</pallas_src>

<mosaic_0001>
module attributes {stable_mosaic.version = 11 : i64} {
  func.func @_rg_kernel(%arg0: i32, %arg1: i32, %arg2: memref<1x16x16x8xf32, #tpu.memory_space<vmem>>, %arg3: memref<2x3x3x8x8xbf16, #tpu.memory_space<vmem>>, %arg4: memref<2x1x8xf32, #tpu.memory_space<vmem>>, %arg5: memref<1x16x16x8xf32, #tpu.memory_space<vmem>>, %arg6: memref<16x16x8xf32, #tpu.memory_space<vmem>>, %arg7: memref<18x24x8xbf16, #tpu.memory_space<vmem>>) attributes {dimension_semantics = [#tpu.dimension_semantics<parallel>, #tpu.dimension_semantics<arbitrary>], iteration_bounds = array<i64: 2, 2>, scalar_prefetch = 0 : i64, scratch_operands = 2 : i64, tpu.core_type = #tpu.core_type<tc>, window_params = [{transform_indices = @transform_0, window_bounds = array<i64: 1, 16, 16, 8>}, {transform_indices = @transform_1, window_bounds = array<i64: 2, 3, 3, 8, 8>}, {transform_indices = @transform_2, window_bounds = array<i64: 2, 1, 8>}, {transform_indices = @transform_3, window_bounds = array<i64: 1, 16, 16, 8>}]} {
    %c0_i32 = arith.constant 0 : i32
    %0 = arith.cmpi eq, %arg1, %c0_i32 : i32
    %1 = arith.extui %0 : i1 to i32
    %c0_i32_0 = arith.constant 0 : i32
    %2 = arith.cmpi ne, %1, %c0_i32_0 : i32
    scf.if %2 {
      %cst_145 = arith.constant 0.000000e+00 : bf16
      %143 = vector.broadcast %cst_145 : bf16 to vector<18x24x8xbf16>
      %c0_146 = arith.constant 0 : index
      %c0_147 = arith.constant 0 : index
      %c0_148 = arith.constant 0 : index
      %144 = vector.load %arg7[%c0_146, %c0_147, %c0_148] : memref<18x24x8xbf16, #tpu.memory_space<vmem>>, vector<18x24x8xbf16>
      tpu.vector_store %arg7[%c0_146, %c0_147, %c0_148], %143 {strides = array<i32>} : memref<18x24x8xbf16, #tpu.memory_space<vmem>>, vector<18x24x8xbf16>,
      %c0_149 = arith.constant 0 : index
      %c0_150 = arith.constant 0 : index
      %c0_151 = arith.constant 0 : index
      %c0_152 = arith.constant 0 : index
      %145 = vector.load %arg2[%c0_149, %c0_150, %c0_151, %c0_152] : memref<1x16x16x8xf32, #tpu.memory_space<vmem>>, vector<1x16x16x8xf32>
      %146 = vector.shape_cast %145 : vector<1x16x16x8xf32> to vector<16x16x8xf32>
      %c0_153 = arith.constant 0 : index
      %c0_154 = arith.constant 0 : index
      %c0_155 = arith.constant 0 : index
      %147 = vector.load %arg6[%c0_153, %c0_154, %c0_155] : memref<16x16x8xf32, #tpu.memory_space<vmem>>, vector<16x16x8xf32>
      tpu.vector_store %arg6[%c0_153, %c0_154, %c0_155], %146 {strides = array<i32>} : memref<16x16x8xf32, #tpu.memory_space<vmem>>, vector<16x16x8xf32>,
    } else {
    }
    %c0 = arith.constant 0 : index
    %c0_1 = arith.constant 0 : index
    %c0_2 = arith.constant 0 : index
    %3 = vector.load %arg6[%c0, %c0_1, %c0_2] : memref<16x16x8xf32, #tpu.memory_space<vmem>>, vector<16x16x8xf32>
    %c0_3 = arith.constant 0 : index
    %c0_4 = arith.constant 0 : index
    %c0_5 = arith.constant 0 : index
    %4 = vector.load %arg4[%c0_3, %c0_4, %c0_5] : memref<2x1x8xf32, #tpu.memory_space<vmem>>, vector<1x1x8xf32>
    %5 = vector.shape_cast %4 : vector<1x1x8xf32> to vector<1x8xf32>
    %c1 = arith.constant 1 : index
    %c0_6 = arith.constant 0 : index
    %c0_7 = arith.constant 0 : index
    %6 = vector.load %arg4[%c1, %c0_6, %c0_7] : memref<2x1x8xf32, #tpu.memory_space<vmem>>, vector<1x1x8xf32>
    %7 = vector.shape_cast %6 : vector<1x1x8xf32> to vector<1x8xf32>
    %8 = arith.truncf %3 : vector<16x16x8xf32> to vector<16x16x8xbf16>
    %c1_8 = arith.constant 1 : index
    %c1_9 = arith.constant 1 : index
    %c0_10 = arith.constant 0 : index
    %9 = vector.load %arg7[%c1_8, %c1_9, %c0_10] : memref<18x24x8xbf16, #tpu.memory_space<vmem>>, vector<16x16x8xbf16>
    tpu.vector_store %arg7[%c1_8, %c1_9, %c0_10], %8 {strides = array<i32>} : memref<18x24x8xbf16, #tpu.memory_space<vmem>>, vector<16x16x8xbf16>,
    %cst = arith.constant 0.000000e+00 : f32
    %10 = vector.broadcast %cst : f32 to vector<256x8xf32>
    %c0_11 = arith.constant 0 : index
    %c0_12 = arith.constant 0 : index
    %c0_13 = arith.constant 0 : index
    %11 = vector.load %arg7[%c0_11, %c0_12, %c0_13] : memref<18x24x8xbf16, #tpu.memory_space<vmem>>, vector<18x16x8xbf16>
    %12 = vector.extract_strided_slice %11 {offsets = [0, 0, 0], sizes = [16, 16, 8], strides = [1, 1, 1]} : vector<18x16x8xbf16> to vector<16x16x8xbf16>
    %13 = vector.shape_cast %12 : vector<16x16x8xbf16> to vector<256x8xbf16>
    %c0_14 = arith.constant 0 : index
    %c0_15 = arith.constant 0 : index
    %c0_16 = arith.constant 0 : index
    %c0_17 = arith.constant 0 : index
    %c0_18 = arith.constant 0 : index
    %14 = vector.load %arg3[%c0_14, %c0_15, %c0_16, %c0_17, %c0_18] : memref<2x3x3x8x8xbf16, #tpu.memory_space<vmem>>, vector<1x1x1x8x8xbf16>
    %15 = vector.shape_cast %14 : vector<1x1x1x8x8xbf16> to vector<8x8xbf16>
    %cst_19 = arith.constant dense<0.000000e+00> : vector<256x8xf32>
    %16 = tpu.matmul %13, %15, %cst_19 {dimension_numbers = #tpu.dot_dimension_numbers<[1], [0], [0], [1], [0, 0, 1, 1], [], []>} : vector<256x8xbf16>, vector<8x8xbf16>, vector<256x8xf32> -> vector<256x8xf32>
    %17 = arith.addf %10, %16 : vector<256x8xf32>
    %18 = vector.extract_strided_slice %11 {offsets = [1, 0, 0], sizes = [16, 16, 8], strides = [1, 1, 1]} : vector<18x16x8xbf16> to vector<16x16x8xbf16>
    %19 = vector.shape_cast %18 : vector<16x16x8xbf16> to vector<256x8xbf16>
    %c0_20 = arith.constant 0 : index
    %c1_21 = arith.constant 1 : index
    %c0_22 = arith.constant 0 : index
    %c0_23 = arith.constant 0 : index
    %c0_24 = arith.constant 0 : index
    %20 = vector.load %arg3[%c0_20, %c1_21, %c0_22, %c0_23, %c0_24] : memref<2x3x3x8x8xbf16, #tpu.memory_space<vmem>>, vector<1x1x1x8x8xbf16>
    %21 = vector.shape_cast %20 : vector<1x1x1x8x8xbf16> to vector<8x8xbf16>
    %cst_25 = arith.constant dense<0.000000e+00> : vector<256x8xf32>
    %22 = tpu.matmul %19, %21, %cst_25 {dimension_numbers = #tpu.dot_dimension_numbers<[1], [0], [0], [1], [0, 0, 1, 1], [], []>} : vector<256x8xbf16>, vector<8x8xbf16>, vector<256x8xf32> -> vector<256x8xf32>
    %23 = arith.addf %17, %22 : vector<256x8xf32>
    %24 = vector.extract_strided_slice %11 {offsets = [2, 0, 0], sizes = [16, 16, 8], strides = [1, 1, 1]} : vector<18x16x8xbf16> to vector<16x16x8xbf16>
    %25 = vector.shape_cast %24 : vector<16x16x8xbf16> to vector<256x8xbf16>
    %c0_26 = arith.constant 0 : index
    %c2 = arith.constant 2 : index
    %c0_27 = arith.constant 0 : index
    %c0_28 = arith.constant 0 : index
    %c0_29 = arith.constant 0 : index
    %26 = vector.load %arg3[%c0_26, %c2, %c0_27, %c0_28, %c0_29] : memref<2x3x3x8x8xbf16, #tpu.memory_space<vmem>>, vector<1x1x1x8x8xbf16>
    %27 = vector.shape_cast %26 : vector<1x1x1x8x8xbf16> to vector<8x8xbf16>
    %cst_30 = arith.constant dense<0.000000e+00> : vector<256x8xf32>
    %28 = tpu.matmul %25, %27, %cst_30 {dimension_numbers = #tpu.dot_dimension_numbers<[1], [0], [0], [1], [0, 0, 1, 1], [], []>} : vector<256x8xbf16>, vector<8x8xbf16>, vector<256x8xf32> -> vector<256x8xf32>
    %29 = arith.addf %23, %28 : vector<256x8xf32>
    %c0_31 = arith.constant 0 : index
    %c1_32 = arith.constant 1 : index
    %c0_33 = arith.constant 0 : index
    %30 = vector.load %arg7[%c0_31, %c1_32, %c0_33] : memref<18x24x8xbf16, #tpu.memory_space<vmem>>, vector<18x16x8xbf16>
    %31 = vector.extract_strided_slice %30 {offsets = [0, 0, 0], sizes = [16, 16, 8], strides = [1, 1, 1]} : vector<18x16x8xbf16> to vector<16x16x8xbf16>
    %32 = vector.shape_cast %31 : vector<16x16x8xbf16> to vector<256x8xbf16>
    %c0_34 = arith.constant 0 : index
    %c0_35 = arith.constant 0 : index
    %c1_36 = arith.constant 1 : index
    %c0_37 = arith.constant 0 : index
    %c0_38 = arith.constant 0 : index
    %33 = vector.load %arg3[%c0_34, %c0_35, %c1_36, %c0_37, %c0_38] : memref<2x3x3x8x8xbf16, #tpu.memory_space<vmem>>, vector<1x1x1x8x8xbf16>
    %34 = vector.shape_cast %33 : vector<1x1x1x8x8xbf16> to vector<8x8xbf16>
    %cst_39 = arith.constant dense<0.000000e+00> : vector<256x8xf32>
    %35 = tpu.matmul %32, %34, %cst_39 {dimension_numbers = #tpu.dot_dimension_numbers<[1], [0], [0], [1], [0, 0, 1, 1], [], []>} : vector<256x8xbf16>, vector<8x8xbf16>, vector<256x8xf32> -> vector<256x8xf32>
    %36 = arith.addf %29, %35 : vector<256x8xf32>
    %37 = vector.extract_strided_slice %30 {offsets = [1, 0, 0], sizes = [16, 16, 8], strides = [1, 1, 1]} : vector<18x16x8xbf16> to vector<16x16x8xbf16>
    %38 = vector.shape_cast %37 : vector<16x16x8xbf16> to vector<256x8xbf16>
    %c0_40 = arith.constant 0 : index
    %c1_41 = arith.constant 1 : index
    %c1_42 = arith.constant 1 : index
    %c0_43 = arith.constant 0 : index
    %c0_44 = arith.constant 0 : index
    %39 = vector.load %arg3[%c0_40, %c1_41, %c1_42, %c0_43, %c0_44] : memref<2x3x3x8x8xbf16, #tpu.memory_space<vmem>>, vector<1x1x1x8x8xbf16>
    %40 = vector.shape_cast %39 : vector<1x1x1x8x8xbf16> to vector<8x8xbf16>
    %cst_45 = arith.constant dense<0.000000e+00> : vector<256x8xf32>
    %41 = tpu.matmul %38, %40, %cst_45 {dimension_numbers = #tpu.dot_dimension_numbers<[1], [0], [0], [1], [0, 0, 1, 1], [], []>} : vector<256x8xbf16>, vector<8x8xbf16>, vector<256x8xf32> -> vector<256x8xf32>
    %42 = arith.addf %36, %41 : vector<256x8xf32>
    %43 = vector.extract_strided_slice %30 {offsets = [2, 0, 0], sizes = [16, 16, 8], strides = [1, 1, 1]} : vector<18x16x8xbf16> to vector<16x16x8xbf16>
    %44 = vector.shape_cast %43 : vector<16x16x8xbf16> to vector<256x8xbf16>
    %c0_46 = arith.constant 0 : index
    %c2_47 = arith.constant 2 : index
    %c1_48 = arith.constant 1 : index
    %c0_49 = arith.constant 0 : index
    %c0_50 = arith.constant 0 : index
    %45 = vector.load %arg3[%c0_46, %c2_47, %c1_48, %c0_49, %c0_50] : memref<2x3x3x8x8xbf16, #tpu.memory_space<vmem>>, vector<1x1x1x8x8xbf16>
    %46 = vector.shape_cast %45 : vector<1x1x1x8x8xbf16> to vector<8x8xbf16>
    %cst_51 = arith.constant dense<0.000000e+00> : vector<256x8xf32>
    %47 = tpu.matmul %44, %46, %cst_51 {dimension_numbers = #tpu.dot_dimension_numbers<[1], [0], [0], [1], [0, 0, 1, 1], [], []>} : vector<256x8xbf16>, vector<8x8xbf16>, vector<256x8xf32> -> vector<256x8xf32>
    %48 = arith.addf %42, %47 : vector<256x8xf32>
    %c0_52 = arith.constant 0 : index
    %c2_53 = arith.constant 2 : index
    %c0_54 = arith.constant 0 : index
    %49 = vector.load %arg7[%c0_52, %c2_53, %c0_54] : memref<18x24x8xbf16, #tpu.memory_space<vmem>>, vector<18x16x8xbf16>
    %50 = vector.extract_strided_slice %49 {offsets = [0, 0, 0], sizes = [16, 16, 8], strides = [1, 1, 1]} : vector<18x16x8xbf16> to vector<16x16x8xbf16>
    %51 = vector.shape_cast %50 : vector<16x16x8xbf16> to vector<256x8xbf16>
    %c0_55 = arith.constant 0 : index
    %c0_56 = arith.constant 0 : index
    %c2_57 = arith.constant 2 : index
    %c0_58 = arith.constant 0 : index
    %c0_59 = arith.constant 0 : index
    %52 = vector.load %arg3[%c0_55, %c0_56, %c2_57, %c0_58, %c0_59] : memref<2x3x3x8x8xbf16, #tpu.memory_space<vmem>>, vector<1x1x1x8x8xbf16>
    %53 = vector.shape_cast %52 : vector<1x1x1x8x8xbf16> to vector<8x8xbf16>
    %cst_60 = arith.constant dense<0.000000e+00> : vector<256x8xf32>
    %54 = tpu.matmul %51, %53, %cst_60 {dimension_numbers = #tpu.dot_dimension_numbers<[1], [0], [0], [1], [0, 0, 1, 1], [], []>} : vector<256x8xbf16>, vector<8x8xbf16>, vector<256x8xf32> -> vector<256x8xf32>
    %55 = arith.addf %48, %54 : vector<256x8xf32>
    %56 = vector.extract_strided_slice %49 {offsets = [1, 0, 0], sizes = [16, 16, 8], strides = [1, 1, 1]} : vector<18x16x8xbf16> to vector<16x16x8xbf16>
    %57 = vector.shape_cast %56 : vector<16x16x8xbf16> to vector<256x8xbf16>
    %c0_61 = arith.constant 0 : index
    %c1_62 = arith.constant 1 : index
    %c2_63 = arith.constant 2 : index
    %c0_64 = arith.constant 0 : index
    %c0_65 = arith.constant 0 : index
    %58 = vector.load %arg3[%c0_61, %c1_62, %c2_63, %c0_64, %c0_65] : memref<2x3x3x8x8xbf16, #tpu.memory_space<vmem>>, vector<1x1x1x8x8xbf16>
    %59 = vector.shape_cast %58 : vector<1x1x1x8x8xbf16> to vector<8x8xbf16>
    %cst_66 = arith.constant dense<0.000000e+00> : vector<256x8xf32>
    %60 = tpu.matmul %57, %59, %cst_66 {dimension_numbers = #tpu.dot_dimension_numbers<[1], [0], [0], [1], [0, 0, 1, 1], [], []>} : vector<256x8xbf16>, vector<8x8xbf16>, vector<256x8xf32> -> vector<256x8xf32>
    %61 = arith.addf %55, %60 : vector<256x8xf32>
    %62 = vector.extract_strided_slice %49 {offsets = [2, 0, 0], sizes = [16, 16, 8], strides = [1, 1, 1]} : vector<18x16x8xbf16> to vector<16x16x8xbf16>
    %63 = vector.shape_cast %62 : vector<16x16x8xbf16> to vector<256x8xbf16>
    %c0_67 = arith.constant 0 : index
    %c2_68 = arith.constant 2 : index
    %c2_69 = arith.constant 2 : index
    %c0_70 = arith.constant 0 : index
    %c0_71 = arith.constant 0 : index
    %64 = vector.load %arg3[%c0_67, %c2_68, %c2_69, %c0_70, %c0_71] : memref<2x3x3x8x8xbf16, #tpu.memory_space<vmem>>, vector<1x1x1x8x8xbf16>
    %65 = vector.shape_cast %64 : vector<1x1x1x8x8xbf16> to vector<8x8xbf16>
    %cst_72 = arith.constant dense<0.000000e+00> : vector<256x8xf32>
    %66 = tpu.matmul %63, %65, %cst_72 {dimension_numbers = #tpu.dot_dimension_numbers<[1], [0], [0], [1], [0, 0, 1, 1], [], []>} : vector<256x8xbf16>, vector<8x8xbf16>, vector<256x8xf32> -> vector<256x8xf32>
    %67 = arith.addf %61, %66 : vector<256x8xf32>
    %68 = vector.shape_cast %67 : vector<256x8xf32> to vector<16x16x8xf32>
    %69 = vector.shape_cast %5 : vector<1x8xf32> to vector<1x1x8xf32>
    %70 = vector.broadcast %69 : vector<1x1x8xf32> to vector<16x16x8xf32>
    %71 = arith.addf %68, %70 : vector<16x16x8xf32>
    %cst_73 = arith.constant 0.000000e+00 : f32
    %72 = vector.broadcast %cst_73 : f32 to vector<16x16x8xf32>
    %73 = arith.maximumf %71, %72 : vector<16x16x8xf32>
    %74 = arith.truncf %73 : vector<16x16x8xf32> to vector<16x16x8xbf16>
    %c1_74 = arith.constant 1 : index
    %c1_75 = arith.constant 1 : index
    %c0_76 = arith.constant 0 : index
    %75 = vector.load %arg7[%c1_74, %c1_75, %c0_76] : memref<18x24x8xbf16, #tpu.memory_space<vmem>>, vector<16x16x8xbf16>
    tpu.vector_store %arg7[%c1_74, %c1_75, %c0_76], %74 {strides = array<i32>} : memref<18x24x8xbf16, #tpu.memory_space<vmem>>, vector<16x16x8xbf16>,
    %cst_77 = arith.constant 0.000000e+00 : f32
    %76 = vector.broadcast %cst_77 : f32 to vector<256x8xf32>
    %c0_78 = arith.constant 0 : index
    %c0_79 = arith.constant 0 : index
    %c0_80 = arith.constant 0 : index
    %77 = vector.load %arg7[%c0_78, %c0_79, %c0_80] : memref<18x24x8xbf16, #tpu.memory_space<vmem>>, vector<18x16x8xbf16>
    %78 = vector.extract_strided_slice %77 {offsets = [0, 0, 0], sizes = [16, 16, 8], strides = [1, 1, 1]} : vector<18x16x8xbf16> to vector<16x16x8xbf16>
    %79 = vector.shape_cast %78 : vector<16x16x8xbf16> to vector<256x8xbf16>
    %c1_81 = arith.constant 1 : index
    %c0_82 = arith.constant 0 : index
    %c0_83 = arith.constant 0 : index
    %c0_84 = arith.constant 0 : index
    %c0_85 = arith.constant 0 : index
    %80 = vector.load %arg3[%c1_81, %c0_82, %c0_83, %c0_84, %c0_85] : memref<2x3x3x8x8xbf16, #tpu.memory_space<vmem>>, vector<1x1x1x8x8xbf16>
    %81 = vector.shape_cast %80 : vector<1x1x1x8x8xbf16> to vector<8x8xbf16>
    %cst_86 = arith.constant dense<0.000000e+00> : vector<256x8xf32>
    %82 = tpu.matmul %79, %81, %cst_86 {dimension_numbers = #tpu.dot_dimension_numbers<[1], [0], [0], [1], [0, 0, 1, 1], [], []>} : vector<256x8xbf16>, vector<8x8xbf16>, vector<256x8xf32> -> vector<256x8xf32>
    %83 = arith.addf %76, %82 : vector<256x8xf32>
    %84 = vector.extract_strided_slice %77 {offsets = [1, 0, 0], sizes = [16, 16, 8], strides = [1, 1, 1]} : vector<18x16x8xbf16> to vector<16x16x8xbf16>
    %85 = vector.shape_cast %84 : vector<16x16x8xbf16> to vector<256x8xbf16>
    %c1_87 = arith.constant 1 : index
    %c1_88 = arith.constant 1 : index
    %c0_89 = arith.constant 0 : index
    %c0_90 = arith.constant 0 : index
    %c0_91 = arith.constant 0 : index
    %86 = vector.load %arg3[%c1_87, %c1_88, %c0_89, %c0_90, %c0_91] : memref<2x3x3x8x8xbf16, #tpu.memory_space<vmem>>, vector<1x1x1x8x8xbf16>
    %87 = vector.shape_cast %86 : vector<1x1x1x8x8xbf16> to vector<8x8xbf16>
    %cst_92 = arith.constant dense<0.000000e+00> : vector<256x8xf32>
    %88 = tpu.matmul %85, %87, %cst_92 {dimension_numbers = #tpu.dot_dimension_numbers<[1], [0], [0], [1], [0, 0, 1, 1], [], []>} : vector<256x8xbf16>, vector<8x8xbf16>, vector<256x8xf32> -> vector<256x8xf32>
    %89 = arith.addf %83, %88 : vector<256x8xf32>
    %90 = vector.extract_strided_slice %77 {offsets = [2, 0, 0], sizes = [16, 16, 8], strides = [1, 1, 1]} : vector<18x16x8xbf16> to vector<16x16x8xbf16>
    %91 = vector.shape_cast %90 : vector<16x16x8xbf16> to vector<256x8xbf16>
    %c1_93 = arith.constant 1 : index
    %c2_94 = arith.constant 2 : index
    %c0_95 = arith.constant 0 : index
    %c0_96 = arith.constant 0 : index
    %c0_97 = arith.constant 0 : index
    %92 = vector.load %arg3[%c1_93, %c2_94, %c0_95, %c0_96, %c0_97] : memref<2x3x3x8x8xbf16, #tpu.memory_space<vmem>>, vector<1x1x1x8x8xbf16>
    %93 = vector.shape_cast %92 : vector<1x1x1x8x8xbf16> to vector<8x8xbf16>
    %cst_98 = arith.constant dense<0.000000e+00> : vector<256x8xf32>
    %94 = tpu.matmul %91, %93, %cst_98 {dimension_numbers = #tpu.dot_dimension_numbers<[1], [0], [0], [1], [0, 0, 1, 1], [], []>} : vector<256x8xbf16>, vector<8x8xbf16>, vector<256x8xf32> -> vector<256x8xf32>
    %95 = arith.addf %89, %94 : vector<256x8xf32>
    %c0_99 = arith.constant 0 : index
    %c1_100 = arith.constant 1 : index
    %c0_101 = arith.constant 0 : index
    %96 = vector.load %arg7[%c0_99, %c1_100, %c0_101] : memref<18x24x8xbf16, #tpu.memory_space<vmem>>, vector<18x16x8xbf16>
    %97 = vector.extract_strided_slice %96 {offsets = [0, 0, 0], sizes = [16, 16, 8], strides = [1, 1, 1]} : vector<18x16x8xbf16> to vector<16x16x8xbf16>
    %98 = vector.shape_cast %97 : vector<16x16x8xbf16> to vector<256x8xbf16>
    %c1_102 = arith.constant 1 : index
    %c0_103 = arith.constant 0 : index
    %c1_104 = arith.constant 1 : index
    %c0_105 = arith.constant 0 : index
    %c0_106 = arith.constant 0 : index
    %99 = vector.load %arg3[%c1_102, %c0_103, %c1_104, %c0_105, %c0_106] : memref<2x3x3x8x8xbf16, #tpu.memory_space<vmem>>, vector<1x1x1x8x8xbf16>
    %100 = vector.shape_cast %99 : vector<1x1x1x8x8xbf16> to vector<8x8xbf16>
    %cst_107 = arith.constant dense<0.000000e+00> : vector<256x8xf32>
    %101 = tpu.matmul %98, %100, %cst_107 {dimension_numbers = #tpu.dot_dimension_numbers<[1], [0], [0], [1], [0, 0, 1, 1], [], []>} : vector<256x8xbf16>, vector<8x8xbf16>, vector<256x8xf32> -> vector<256x8xf32>
    %102 = arith.addf %95, %101 : vector<256x8xf32>
    %103 = vector.extract_strided_slice %96 {offsets = [1, 0, 0], sizes = [16, 16, 8], strides = [1, 1, 1]} : vector<18x16x8xbf16> to vector<16x16x8xbf16>
    %104 = vector.shape_cast %103 : vector<16x16x8xbf16> to vector<256x8xbf16>
    %c1_108 = arith.constant 1 : index
    %c1_109 = arith.constant 1 : index
    %c1_110 = arith.constant 1 : index
    %c0_111 = arith.constant 0 : index
    %c0_112 = arith.constant 0 : index
    %105 = vector.load %arg3[%c1_108, %c1_109, %c1_110, %c0_111, %c0_112] : memref<2x3x3x8x8xbf16, #tpu.memory_space<vmem>>, vector<1x1x1x8x8xbf16>
    %106 = vector.shape_cast %105 : vector<1x1x1x8x8xbf16> to vector<8x8xbf16>
    %cst_113 = arith.constant dense<0.000000e+00> : vector<256x8xf32>
    %107 = tpu.matmul %104, %106, %cst_113 {dimension_numbers = #tpu.dot_dimension_numbers<[1], [0], [0], [1], [0, 0, 1, 1], [], []>} : vector<256x8xbf16>, vector<8x8xbf16>, vector<256x8xf32> -> vector<256x8xf32>
    %108 = arith.addf %102, %107 : vector<256x8xf32>
    %109 = vector.extract_strided_slice %96 {offsets = [2, 0, 0], sizes = [16, 16, 8], strides = [1, 1, 1]} : vector<18x16x8xbf16> to vector<16x16x8xbf16>
    %110 = vector.shape_cast %109 : vector<16x16x8xbf16> to vector<256x8xbf16>
    %c1_114 = arith.constant 1 : index
    %c2_115 = arith.constant 2 : index
    %c1_116 = arith.constant 1 : index
    %c0_117 = arith.constant 0 : index
    %c0_118 = arith.constant 0 : index
    %111 = vector.load %arg3[%c1_114, %c2_115, %c1_116, %c0_117, %c0_118] : memref<2x3x3x8x8xbf16, #tpu.memory_space<vmem>>, vector<1x1x1x8x8xbf16>
    %112 = vector.shape_cast %111 : vector<1x1x1x8x8xbf16> to vector<8x8xbf16>
    %cst_119 = arith.constant dense<0.000000e+00> : vector<256x8xf32>
    %113 = tpu.matmul %110, %112, %cst_119 {dimension_numbers = #tpu.dot_dimension_numbers<[1], [0], [0], [1], [0, 0, 1, 1], [], []>} : vector<256x8xbf16>, vector<8x8xbf16>, vector<256x8xf32> -> vector<256x8xf32>
    %114 = arith.addf %108, %113 : vector<256x8xf32>
    %c0_120 = arith.constant 0 : index
    %c2_121 = arith.constant 2 : index
    %c0_122 = arith.constant 0 : index
    %115 = vector.load %arg7[%c0_120, %c2_121, %c0_122] : memref<18x24x8xbf16, #tpu.memory_space<vmem>>, vector<18x16x8xbf16>
    %116 = vector.extract_strided_slice %115 {offsets = [0, 0, 0], sizes = [16, 16, 8], strides = [1, 1, 1]} : vector<18x16x8xbf16> to vector<16x16x8xbf16>
    %117 = vector.shape_cast %116 : vector<16x16x8xbf16> to vector<256x8xbf16>
    %c1_123 = arith.constant 1 : index
    %c0_124 = arith.constant 0 : index
    %c2_125 = arith.constant 2 : index
    %c0_126 = arith.constant 0 : index
    %c0_127 = arith.constant 0 : index
    %118 = vector.load %arg3[%c1_123, %c0_124, %c2_125, %c0_126, %c0_127] : memref<2x3x3x8x8xbf16, #tpu.memory_space<vmem>>, vector<1x1x1x8x8xbf16>
    %119 = vector.shape_cast %118 : vector<1x1x1x8x8xbf16> to vector<8x8xbf16>
    %cst_128 = arith.constant dense<0.000000e+00> : vector<256x8xf32>
    %120 = tpu.matmul %117, %119, %cst_128 {dimension_numbers = #tpu.dot_dimension_numbers<[1], [0], [0], [1], [0, 0, 1, 1], [], []>} : vector<256x8xbf16>, vector<8x8xbf16>, vector<256x8xf32> -> vector<256x8xf32>
    %121 = arith.addf %114, %120 : vector<256x8xf32>
    %122 = vector.extract_strided_slice %115 {offsets = [1, 0, 0], sizes = [16, 16, 8], strides = [1, 1, 1]} : vector<18x16x8xbf16> to vector<16x16x8xbf16>
    %123 = vector.shape_cast %122 : vector<16x16x8xbf16> to vector<256x8xbf16>
    %c1_129 = arith.constant 1 : index
    %c1_130 = arith.constant 1 : index
    %c2_131 = arith.constant 2 : index
    %c0_132 = arith.constant 0 : index
    %c0_133 = arith.constant 0 : index
    %124 = vector.load %arg3[%c1_129, %c1_130, %c2_131, %c0_132, %c0_133] : memref<2x3x3x8x8xbf16, #tpu.memory_space<vmem>>, vector<1x1x1x8x8xbf16>
    %125 = vector.shape_cast %124 : vector<1x1x1x8x8xbf16> to vector<8x8xbf16>
    %cst_134 = arith.constant dense<0.000000e+00> : vector<256x8xf32>
    %126 = tpu.matmul %123, %125, %cst_134 {dimension_numbers = #tpu.dot_dimension_numbers<[1], [0], [0], [1], [0, 0, 1, 1], [], []>} : vector<256x8xbf16>, vector<8x8xbf16>, vector<256x8xf32> -> vector<256x8xf32>
    %127 = arith.addf %121, %126 : vector<256x8xf32>
    %128 = vector.extract_strided_slice %115 {offsets = [2, 0, 0], sizes = [16, 16, 8], strides = [1, 1, 1]} : vector<18x16x8xbf16> to vector<16x16x8xbf16>
    %129 = vector.shape_cast %128 : vector<16x16x8xbf16> to vector<256x8xbf16>
    %c1_135 = arith.constant 1 : index
    %c2_136 = arith.constant 2 : index
    %c2_137 = arith.constant 2 : index
    %c0_138 = arith.constant 0 : index
    %c0_139 = arith.constant 0 : index
    %130 = vector.load %arg3[%c1_135, %c2_136, %c2_137, %c0_138, %c0_139] : memref<2x3x3x8x8xbf16, #tpu.memory_space<vmem>>, vector<1x1x1x8x8xbf16>
    %131 = vector.shape_cast %130 : vector<1x1x1x8x8xbf16> to vector<8x8xbf16>
    %cst_140 = arith.constant dense<0.000000e+00> : vector<256x8xf32>
    %132 = tpu.matmul %129, %131, %cst_140 {dimension_numbers = #tpu.dot_dimension_numbers<[1], [0], [0], [1], [0, 0, 1, 1], [], []>} : vector<256x8xbf16>, vector<8x8xbf16>, vector<256x8xf32> -> vector<256x8xf32>
    %133 = arith.addf %127, %132 : vector<256x8xf32>
    %134 = vector.shape_cast %133 : vector<256x8xf32> to vector<16x16x8xf32>
    %135 = vector.shape_cast %7 : vector<1x8xf32> to vector<1x1x8xf32>
    %136 = vector.broadcast %135 : vector<1x1x8xf32> to vector<16x16x8xf32>
    %137 = arith.addf %134, %136 : vector<16x16x8xf32>
    %138 = arith.addf %137, %3 : vector<16x16x8xf32>
    %c0_141 = arith.constant 0 : index
    %c0_142 = arith.constant 0 : index
    %c0_143 = arith.constant 0 : index
    %139 = vector.load %arg6[%c0_141, %c0_142, %c0_143] : memref<16x16x8xf32, #tpu.memory_space<vmem>>, vector<16x16x8xf32>
    tpu.vector_store %arg6[%c0_141, %c0_142, %c0_143], %138 {strides = array<i32>} : memref<16x16x8xf32, #tpu.memory_space<vmem>>, vector<16x16x8xf32>,
    %c1_i32 = arith.constant 1 : i32
    %140 = arith.cmpi eq, %arg1, %c1_i32 : i32
    %141 = arith.extui %140 : i1 to i32
    %c0_i32_144 = arith.constant 0 : i32
    %142 = arith.cmpi ne, %141, %c0_i32_144 : i32
    scf.if %142 {
      %c0_145 = arith.constant 0 : index
      %c0_146 = arith.constant 0 : index
      %c0_147 = arith.constant 0 : index
      %c0_148 = arith.constant 0 : index
      %143 = vector.load %arg2[%c0_145, %c0_146, %c0_147, %c0_148] : memref<1x16x16x8xf32, #tpu.memory_space<vmem>>, vector<1x16x16x8xf32>
      %144 = vector.shape_cast %143 : vector<1x16x16x8xf32> to vector<16x16x8xf32>
      %145 = arith.addf %138, %144 : vector<16x16x8xf32>
      %c0_149 = arith.constant 0 : index
      %c0_150 = arith.constant 0 : index
      %c0_151 = arith.constant 0 : index
      %c0_152 = arith.constant 0 : index
      %146 = vector.load %arg5[%c0_149, %c0_150, %c0_151, %c0_152] : memref<1x16x16x8xf32, #tpu.memory_space<vmem>>, vector<1x16x16x8xf32>
      %147 = vector.shape_cast %146 : vector<1x16x16x8xf32> to vector<16x16x8xf32>
      %148 = vector.shape_cast %145 : vector<16x16x8xf32> to vector<1x16x16x8xf32>
      tpu.vector_store %arg5[%c0_149, %c0_150, %c0_151, %c0_152], %148 {strides = array<i32>} : memref<1x16x16x8xf32, #tpu.memory_space<vmem>>, vector<1x16x16x8xf32>,
    } else {
    }
    return
  }
  func.func @transform_0(%arg0: i32, %arg1: i32) -> (i32, i32, i32, i32) {
    %c0_i32 = arith.constant 0 : i32
    %c0_i32_0 = arith.constant 0 : i32
    %c0_i32_1 = arith.constant 0 : i32
    %c0_i32_2 = arith.constant 0 : i32
    return %arg0, %c0_i32, %c0_i32_0, %c0_i32_1 : i32, i32, i32, i32
  }
  func.func @transform_1(%arg0: i32, %arg1: i32) -> (i32, i32, i32, i32, i32) {
    %c0_i32 = arith.constant 0 : i32
    %c0_i32_0 = arith.constant 0 : i32
    %c0_i32_1 = arith.constant 0 : i32
    %c0_i32_2 = arith.constant 0 : i32
    %c0_i32_3 = arith.constant 0 : i32
    return %arg1, %c0_i32, %c0_i32_0, %c0_i32_1, %c0_i32_2 : i32, i32, i32, i32, i32
  }
  func.func @transform_2(%arg0: i32, %arg1: i32) -> (i32, i32, i32) {
    %c0_i32 = arith.constant 0 : i32
    %c0_i32_0 = arith.constant 0 : i32
    %c0_i32_1 = arith.constant 0 : i32
    return %arg1, %c0_i32, %c0_i32_0 : i32, i32, i32
  }
  func.func @transform_3(%arg0: i32, %arg1: i32) -> (i32, i32, i32, i32) {
    %c0_i32 = arith.constant 0 : i32
    %c0_i32_0 = arith.constant 0 : i32
    %c0_i32_1 = arith.constant 0 : i32
    %c0_i32_2 = arith.constant 0 : i32
    return %arg0, %c0_i32, %c0_i32_0, %c0_i32_1 : i32, i32, i32, i32
  }
}

</mosaic_0001>

<bundles_post_ra>
// kernel: rg_forward.1
= control target key start
LH: loop header
LB: loop body
LE: loop exit
PB: predicated region body
PF: predicated region fallthrough
CT: control target
= control target key end

     0   :  { %s9632_s12 = smov 0   ;;  %s9634_s13 = smov 0   ;;  %s12007_s0 = inlined_call_operand.vmem [shape: f32[2,16,16,8], index: 0, kind: input, shape index: {}]   ;;  %s12008_s1 = inlined_call_operand.vmem [shape: bf16[4,3,3,8,8], index: 1, kind: input, shape index: {}]   ;;  %s12009_s2 = inlined_call_operand.vmem [shape: f32[4,1,8], index: 2, kind: input, shape index: {}]   ;;  %s12010_s3 = inlined_call_operand.vmem [shape: f32[2,16,16,8], index: 3, kind: output, shape index: {}]  }
   0x1   :  { %s9636_s14 = smov 0   ;;  %s9638_s15 = smov 0  }
   0x2   :  { %s9640_s16 = smov 0  }
   0x3 LB: > { %s22_s17 = sadd.s32 1, %s9601_s14  ;;  %s25_s18 = sadd.s32 1, %s9605_s15  ;;  %s9609_s16 = sphi %s9640_s16, %s13_s16   ;;  %s9605_s15 = sphi %s9638_s15, %s12130_s15   ;;  %s9601_s14 = sphi %s9636_s14, %s12129_s14   ;;  %s9597_s13 = sphi %s9634_s13, %s12128_s13   ;;  %s9593_s12 = sphi %s9632_s12, %s12127_s12  }
   0x4   : > { %p23_p0 = scmp.ge.s32.totalorder %s22_s17, 2  ;;  %p7419_p1 = scmp.ge.s32.totalorder %s9609_s16, 1 }
   0x5   : > { %p171_p2 = scmp.lt.s32.totalorder %s9609_s16, 5 }
   0x6   : > { %s12132_s17 = smov (%p23_p0, %s22_s17), 0  ;;  %s12134_s18 = smov (!%p23_p0, %s25_s18), %s9605_s15 }
   0x7   : > { %p172_p3 = pnand %p7419_p1, %p171_p2  ;;  %p27_p4 = scmp.ge.s32.totalorder %s12134_s18, 2 }
   0x9   : > { %s12136_s18 = smov (%p27_p4, %s12134_s18), 0  ;;  %175 = sbr.rel (%p172_p3) target bundleno = 1645 (0x66d), region = 32 }
  0x10   : > { %p205_p5 = scmp.lt.s32.totalorder %s9597_s13, 1  ;;  %s7422_s19 = sshll.u32 %s9593_s12, 1 }
  0x11   : > { %p211_p6 = scmp.lt.s32.totalorder %s7422_s19, 3  ;;  %p7427_p7 = scmp.ne.s32.totalorder %s9593_s12, 0 }
  0x12   : > { %s12138_s13 = smov (!%p205_p5, %s9597_s13), 1  ;;  %vm232_vm0 = vcmask (!%p7427_p7), 60416   ;;  %vm319_vm1 = vcmask (!%p7427_p7), 64512   ;;  %v9611_v3 = vmov (!%p7427_p7), 0  }
  0x13   : > { %s12140_s19 = smov (!%p211_p6, %s7422_s19), 3  ;;  %s7947_s20 = sshll.u32 %s12138_s13, 8  ;;  %233 = vst.msk [vmem:[#allocation3] sm:$0xf] (!%p7427_p7), %vm232_vm0, %v9611_v3  ;;  %234 = vst.msk [vmem:[#allocation3 + $0x4] sm:$0xf] (!%p7427_p7), %vm232_vm0, %v9611_v3 }
  0x14   : > { %s9668_s23 = scalar_lea.vmem %s12007_s0, %s7947_s20  ;;  %s9461_s24 = smul.u32 36, %s12140_s19  ;;  %235 = vst.msk [vmem:[#allocation3 + $0x8] sm:$0xf] (!%p7427_p7), %vm232_vm0, %v9611_v3  ;;  %236 = vst.msk [vmem:[#allocation3 + $0xc] sm:$0xf] (!%p7427_p7), %vm232_vm0, %v9611_v3 }
  0x15   : > { %s9673_s27 = scalar_lea.vmem %s12009_s2, %s12140_s19  ;;  %s9678_s30 = scalar_lea.vmem %s12010_s3, %s7947_s20  ;;  %v287_v0 = vld [vmem:[%s9668_s23] sm:$0xff] (!%p7427_p7)  ;;  %v288_v1 = vld [vmem:[%s9668_s23 + $0x8] sm:$0xff] (!%p7427_p7)  ;;  %v289_v2 = vld [vmem:[%s9668_s23 + $0x10] sm:$0xff] (!%p7427_p7)  ;;  %237 = vst.msk [vmem:[#allocation3 + $0x10] sm:$0xf] (!%p7427_p7), %vm232_vm0, %v9611_v3 }
  0x16   : > { %s9683_s6 = scalar_lea.vmem %s12008_s1, %s9461_s24  ;;  %231 = sbr.rel (%p7427_p7) target bundleno = 63 (0x3f), region = 36  ;;  %238 = vst.msk [vmem:[#allocation3 + $0x14] sm:$0xf] (!%p7427_p7), %vm232_vm0, %v9611_v3  ;;  %239 = vst.msk [vmem:[#allocation3 + $0x18] sm:$0xf] (!%p7427_p7), %vm232_vm0, %v9611_v3  ;;  %v290_v4 = vld [vmem:[%s9668_s23 + $0x18] sm:$0xff] (!%p7427_p7) }
  0x17   : > { %240 = vst.msk [vmem:[#allocation3 + $0x1c] sm:$0xf] (!%p7427_p7), %vm232_vm0, %v9611_v3  ;;  %241 = vst.msk [vmem:[#allocation3 + $0x20] sm:$0xf] (!%p7427_p7), %vm232_vm0, %v9611_v3  ;;  %v291_v5 = vld [vmem:[%s9668_s23 + $0x20] sm:$0xff] (!%p7427_p7)  ;;  %v292_v6 = vld [vmem:[%s9668_s23 + $0x28] sm:$0xff] (!%p7427_p7) }
  0x18   : > { %242 = vst.msk [vmem:[#allocation3 + $0x24] sm:$0xf] (!%p7427_p7), %vm232_vm0, %v9611_v3  ;;  %243 = vst.msk [vmem:[#allocation3 + $0x28] sm:$0xf] (!%p7427_p7), %vm232_vm0, %v9611_v3  ;;  %v293_v7 = vld [vmem:[%s9668_s23 + $0x30] sm:$0xff] (!%p7427_p7)  ;;  %v294_v8 = vld [vmem:[%s9668_s23 + $0x38] sm:$0xff] (!%p7427_p7) }
  0x19   : > { %244 = vst.msk [vmem:[#allocation3 + $0x2c] sm:$0xf] (!%p7427_p7), %vm232_vm0, %v9611_v3  ;;  %245 = vst.msk [vmem:[#allocation3 + $0x30] sm:$0xf] (!%p7427_p7), %vm232_vm0, %v9611_v3  ;;  %v295_v9 = vld [vmem:[%s9668_s23 + $0x40] sm:$0xff] (!%p7427_p7)  ;;  %v296_v10 = vld [vmem:[%s9668_s23 + $0x48] sm:$0xff] (!%p7427_p7) }
  0x1a   : > { %246 = vst.msk [vmem:[#allocation3 + $0x34] sm:$0xf] (!%p7427_p7), %vm232_vm0, %v9611_v3  ;;  %247 = vst.msk [vmem:[#allocation3 + $0x38] sm:$0xf] (!%p7427_p7), %vm232_vm0, %v9611_v3  ;;  %v297_v11 = vld [vmem:[%s9668_s23 + $0x50] sm:$0xff] (!%p7427_p7)  ;;  %v298_v12 = vld [vmem:[%s9668_s23 + $0x58] sm:$0xff] (!%p7427_p7) }
  0x1b   : > { %248 = vst.msk [vmem:[#allocation3 + $0x3c] sm:$0xf] (!%p7427_p7), %vm232_vm0, %v9611_v3  ;;  %249 = vst.msk [vmem:[#allocation3 + $0x40] sm:$0xf] (!%p7427_p7), %vm232_vm0, %v9611_v3  ;;  %v299_v13 = vld [vmem:[%s9668_s23 + $0x60] sm:$0xff] (!%p7427_p7)  ;;  %v300_v14 = vld [vmem:[%s9668_s23 + $0x68] sm:$0xff] (!%p7427_p7) }
  0x1c   : > { %250 = vst.msk [vmem:[#allocation3 + $0x44] sm:$0xf] (!%p7427_p7), %vm232_vm0, %v9611_v3  ;;  %251 = vst.msk [vmem:[#allocation3 + $0x48] sm:$0xf] (!%p7427_p7), %vm232_vm0, %v9611_v3  ;;  %v301_v15 = vld [vmem:[%s9668_s23 + $0x70] sm:$0xff] (!%p7427_p7)  ;;  %v302_v16 = vld [vmem:[%s9668_s23 + $0x78] sm:$0xff] (!%p7427_p7) }
  0x1d   : > { %252 = vst.msk [vmem:[#allocation3 + $0x4c] sm:$0xf] %vm232_vm0, %v9611_v3  ;;  %253 = vst.msk [vmem:[#allocation3 + $0x50] sm:$0xf] %vm232_vm0, %v9611_v3  ;;  %v303_v17 = vld [vmem:[%s9668_s23 + $0x80] sm:$0xff]  ;;  %v304_v18 = vld [vmem:[%s9668_s23 + $0x88] sm:$0xff] }
  0x1e   : > { %254 = vst.msk [vmem:[#allocation3 + $0x54] sm:$0xf] %vm232_vm0, %v9611_v3  ;;  %255 = vst.msk [vmem:[#allocation3 + $0x58] sm:$0xf] %vm232_vm0, %v9611_v3  ;;  %v305_v19 = vld [vmem:[%s9668_s23 + $0x90] sm:$0xff]  ;;  %v306_v20 = vld [vmem:[%s9668_s23 + $0x98] sm:$0xff] }
  0x1f   : > { %256 = vst.msk [vmem:[#allocation3 + $0x5c] sm:$0xf] %vm232_vm0, %v9611_v3  ;;  %257 = vst.msk [vmem:[#allocation3 + $0x60] sm:$0xf] %vm232_vm0, %v9611_v3  ;;  %v307_v21 = vld [vmem:[%s9668_s23 + $0xa0] sm:$0xff]  ;;  %v308_v22 = vld [vmem:[%s9668_s23 + $0xa8] sm:$0xff] }
  0x20   : > { %258 = vst.msk [vmem:[#allocation3 + $0x64] sm:$0xf] %vm232_vm0, %v9611_v3  ;;  %259 = vst.msk [vmem:[#allocation3 + $0x68] sm:$0xf] %vm232_vm0, %v9611_v3  ;;  %v309_v23 = vld [vmem:[%s9668_s23 + $0xb0] sm:$0xff]  ;;  %v310_v24 = vld [vmem:[%s9668_s23 + $0xb8] sm:$0xff] }
  0x21   : > { %260 = vst.msk [vmem:[#allocation3 + $0x6c] sm:$0xf] %vm232_vm0, %v9611_v3  ;;  %261 = vst.msk [vmem:[#allocation3 + $0x70] sm:$0xf] %vm232_vm0, %v9611_v3  ;;  %v311_v25 = vld [vmem:[%s9668_s23 + $0xc0] sm:$0xff]  ;;  %v312_v26 = vld [vmem:[%s9668_s23 + $0xc8] sm:$0xff] }
  0x22   : > { %262 = vst.msk [vmem:[#allocation3 + $0x74] sm:$0xf] %vm232_vm0, %v9611_v3  ;;  %263 = vst.msk [vmem:[#allocation3 + $0x78] sm:$0xf] %vm232_vm0, %v9611_v3  ;;  %v313_v27 = vld [vmem:[%s9668_s23 + $0xd0] sm:$0xff]  ;;  %v314_v28 = vld [vmem:[%s9668_s23 + $0xd8] sm:$0xff] }
  0x23   : > { %264 = vst.msk [vmem:[#allocation3 + $0x7c] sm:$0xf] %vm232_vm0, %v9611_v3  ;;  %265 = vst.msk [vmem:[#allocation3 + $0x80] sm:$0xf] %vm232_vm0, %v9611_v3  ;;  %v315_v29 = vld [vmem:[%s9668_s23 + $0xe0] sm:$0xff]  ;;  %v316_v30 = vld [vmem:[%s9668_s23 + $0xe8] sm:$0xff] }
  0x24   : > { %266 = vst.msk [vmem:[#allocation3 + $0x84] sm:$0xf] %vm232_vm0, %v9611_v3  ;;  %267 = vst.msk [vmem:[#allocation3 + $0x88] sm:$0xf] %vm232_vm0, %v9611_v3  ;;  %v317_v31 = vld [vmem:[%s9668_s23 + $0xf0] sm:$0xff]  ;;  %v318_v32 = vld [vmem:[%s9668_s23 + $0xf8] sm:$0xff] }
  0x25   : > { %268 = vst.msk [vmem:[#allocation3 + $0x8c] sm:$0xf] %vm232_vm0, %v9611_v3  ;;  %269 = vst.msk [vmem:[#allocation3 + $0x90] sm:$0xf] %vm232_vm0, %v9611_v3 }
  0x26   : > { %270 = vst.msk [vmem:[#allocation3 + $0x94] sm:$0xf] %vm232_vm0, %v9611_v3  ;;  %271 = vst.msk [vmem:[#allocation3 + $0x98] sm:$0xf] %vm232_vm0, %v9611_v3 }
  0x27   : > { %272 = vst.msk [vmem:[#allocation3 + $0x9c] sm:$0xf] %vm232_vm0, %v9611_v3  ;;  %273 = vst.msk [vmem:[#allocation3 + $0xa0] sm:$0xf] %vm232_vm0, %v9611_v3 }
  0x28   : > { %274 = vst.msk [vmem:[#allocation3 + $0xa4] sm:$0xf] %vm232_vm0, %v9611_v3  ;;  %275 = vst.msk [vmem:[#allocation3 + $0xa8] sm:$0xf] %vm232_vm0, %v9611_v3 }
  0x29   : > { %276 = vst.msk [vmem:[#allocation3 + $0xac] sm:$0xf] %vm232_vm0, %v9611_v3  ;;  %277 = vst.msk [vmem:[#allocation3 + $0xb0] sm:$0xf] %vm232_vm0, %v9611_v3 }
  0x2a   : > { %278 = vst.msk [vmem:[#allocation3 + $0xb4] sm:$0xf] %vm232_vm0, %v9611_v3  ;;  %279 = vst.msk [vmem:[#allocation3 + $0xb8] sm:$0xf] %vm232_vm0, %v9611_v3 }
  0x2b   : > { %280 = vst.msk [vmem:[#allocation3 + $0xbc] sm:$0xf] %vm232_vm0, %v9611_v3  ;;  %281 = vst.msk [vmem:[#allocation3 + $0xc0] sm:$0xf] %vm232_vm0, %v9611_v3 }
  0x2c   : > { %282 = vst.msk [vmem:[#allocation3 + $0xc4] sm:$0xf] %vm232_vm0, %v9611_v3  ;;  %283 = vst.msk [vmem:[#allocation3 + $0xc8] sm:$0xf] %vm232_vm0, %v9611_v3 }
  0x2d   : > { %284 = vst.msk [vmem:[#allocation3 + $0xcc] sm:$0xf] %vm232_vm0, %v9611_v3  ;;  %285 = vst.msk [vmem:[#allocation3 + $0xd0] sm:$0xf] %vm232_vm0, %v9611_v3 }
  0x2e   : > { %286 = vst.msk [vmem:[#allocation3 + $0xd4] sm:$0xf] %vm232_vm0, %v9611_v3 }
  0x2f   : > { %320 = vst.msk [vmem:[#allocation2] sm:$0xff] %vm319_vm1, %v287_v0  ;;  %321 = vst.msk [vmem:[#allocation2 + $0x8] sm:$0xff] %vm319_vm1, %v288_v1 }
  0x30   : > { %322 = vst.msk [vmem:[#allocation2 + $0x10] sm:$0xff] %vm319_vm1, %v289_v2  ;;  %323 = vst.msk [vmem:[#allocation2 + $0x18] sm:$0xff] %vm319_vm1, %v290_v4 }
  0x31   : > { %324 = vst.msk [vmem:[#allocation2 + $0x20] sm:$0xff] %vm319_vm1, %v291_v5  ;;  %325 = vst.msk [vmem:[#allocation2 + $0x28] sm:$0xff] %vm319_vm1, %v292_v6 }
  0x32   : > { %326 = vst.msk [vmem:[#allocation2 + $0x30] sm:$0xff] %vm319_vm1, %v293_v7  ;;  %327 = vst.msk [vmem:[#allocation2 + $0x38] sm:$0xff] %vm319_vm1, %v294_v8 }
  0x33   : > { %328 = vst.msk [vmem:[#allocation2 + $0x40] sm:$0xff] %vm319_vm1, %v295_v9  ;;  %329 = vst.msk [vmem:[#allocation2 + $0x48] sm:$0xff] %vm319_vm1, %v296_v10 }
  0x34   : > { %330 = vst.msk [vmem:[#allocation2 + $0x50] sm:$0xff] %vm319_vm1, %v297_v11  ;;  %331 = vst.msk [vmem:[#allocation2 + $0x58] sm:$0xff] %vm319_vm1, %v298_v12 }
  0x35   : > { %332 = vst.msk [vmem:[#allocation2 + $0x60] sm:$0xff] %vm319_vm1, %v299_v13  ;;  %333 = vst.msk [vmem:[#allocation2 + $0x68] sm:$0xff] %vm319_vm1, %v300_v14 }
  0x36   : > { %334 = vst.msk [vmem:[#allocation2 + $0x70] sm:$0xff] %vm319_vm1, %v301_v15  ;;  %335 = vst.msk [vmem:[#allocation2 + $0x78] sm:$0xff] %vm319_vm1, %v302_v16 }
  0x37   : > { %336 = vst.msk [vmem:[#allocation2 + $0x80] sm:$0xff] %vm319_vm1, %v303_v17  ;;  %337 = vst.msk [vmem:[#allocation2 + $0x88] sm:$0xff] %vm319_vm1, %v304_v18 }
  0x38   : > { %338 = vst.msk [vmem:[#allocation2 + $0x90] sm:$0xff] %vm319_vm1, %v305_v19  ;;  %339 = vst.msk [vmem:[#allocation2 + $0x98] sm:$0xff] %vm319_vm1, %v306_v20 }
  0x39   : > { %340 = vst.msk [vmem:[#allocation2 + $0xa0] sm:$0xff] %vm319_vm1, %v307_v21  ;;  %341 = vst.msk [vmem:[#allocation2 + $0xa8] sm:$0xff] %vm319_vm1, %v308_v22 }
  0x3a   : > { %342 = vst.msk [vmem:[#allocation2 + $0xb0] sm:$0xff] %vm319_vm1, %v309_v23  ;;  %343 = vst.msk [vmem:[#allocation2 + $0xb8] sm:$0xff] %vm319_vm1, %v310_v24 }
  0x3b   : > { %344 = vst.msk [vmem:[#allocation2 + $0xc0] sm:$0xff] %vm319_vm1, %v311_v25  ;;  %345 = vst.msk [vmem:[#allocation2 + $0xc8] sm:$0xff] %vm319_vm1, %v312_v26 }
  0x3c   : > { %346 = vst.msk [vmem:[#allocation2 + $0xd0] sm:$0xff] %vm319_vm1, %v313_v27  ;;  %347 = vst.msk [vmem:[#allocation2 + $0xd8] sm:$0xff] %vm319_vm1, %v314_v28 }
  0x3d   : > { %348 = vst.msk [vmem:[#allocation2 + $0xe0] sm:$0xff] %vm319_vm1, %v315_v29  ;;  %349 = vst.msk [vmem:[#allocation2 + $0xe8] sm:$0xff] %vm319_vm1, %v316_v30 }
  0x3e   : > { %350 = vst.msk [vmem:[#allocation2 + $0xf0] sm:$0xff] %vm319_vm1, %v317_v31  ;;  %351 = vst.msk [vmem:[#allocation2 + $0xf8] sm:$0xff] %vm319_vm1, %v318_v32 }
  0x3f PF: > { %v7461_v33 = vld [vmem:[%s9683_s6 + $0xc] sm:$0xf]  ;;  %vm1093_vm2 = vcmask 1043456   ;;  %v352_v34 = vld [vmem:[#allocation2] sm:$0xff]  ;;  %vm483_vm3 = vsmask.f32 256 }
  0x40   : > { %v353_v35 = vld [vmem:[#allocation2 + $0x8] sm:$0xff]  ;;  %9443 = vmatprep.subr.msk.bf16.mxu0 %vm1093_vm2, %v7461_v33  ;;  %v1095_v36 = vsel %vm1093_vm2, %v7461_v33, 0  ;;  %v7949_v37 = vpack.c.bf16 %v352_v34, %v352_v34  ;;  %v354_v39 = vld [vmem:[#allocation2 + $0x10] sm:$0xff]  ;;  %vm484_vm4 = vsmask.f32 4368  ;;  %vm807_vm5 = vcmask 60416  }
  0x41   : > { %v7950_v38 = vpack.c.bf16 %v353_v35, %v353_v35  ;;  %8320 = vmatpush3.bf16.msra.mxu0 %v1095_v36  ;;  %vm808_vm6 = vsmask.f32 7938  ;;  %vm815_vm7 = vcmask 57344   ;;  %vm9808_vm8 = vmor %vm483_vm3, %vm484_vm4  ;;  %v12049_v44 = vmov 0  ;;  %v9813_v45 = vld [vmem:[%s9683_s6] sm:$0xf] }
  0x42   : > { %v487_v40 = vshrl.u32 %v7949_v37, 16  ;;  %v490_v41 = vshll.u32 %v7949_v37, 16  ;;  %v12050_v44 = vsel %vm9808_vm8, 4294967295, %v12049_v44  ;;  %v355_v46 = vld [vmem:[#allocation2 + $0x18] sm:$0xff]  ;;  %v7951_v47 = vpack.c.bf16 %v354_v39, %v354_v39  ;;  %vm9816_vm9 = vmand %vm807_vm5, %vm808_vm6  ;;  %v810_v51 = vld [vmem:[#allocation3 + $0xc] sm:$0xf]  ;;  %9444 = vmatprep.subr.msk.bf16.mxu0 %vm1093_vm2, %v9813_v45 }
  0x43   : > { %v495_v42 = vshrl.u32 %v7950_v38, 16  ;;  %v498_v43 = vshll.u32 %v7950_v38, 16  ;;  %12051 = vst [vmem:[#allocation4_spill] sm:$0xff] %v12050_v44  ;;  %v12052_v50 = vmov 0  ;;  %v7952_v52 = vpack.c.bf16 %v355_v46, %v355_v46  ;;  %v356_v53 = vld [vmem:[#allocation2 + $0x20] sm:$0xff]  ;;  %vm9824_vm10 = vmand %vm815_vm7, %vm483_vm3  ;;  %v357_v58 = vld [vmem:[#allocation2 + $0x28] sm:$0xff] }
  0x44   : > { %v489_v48 = vrot.slane %v487_v40, 7  ;;  %v12053_v50 = vsel %vm9816_vm9, 4294967295, %v12052_v50  ;;  %v12055_v54 = vmov 0  ;;  %v817_v55 = vld [vmem:[#allocation3 + $0x14] sm:$0x1]  ;;  %v504_v56 = vshrl.u32 %v7951_v47, 16 }
  0x45   : > { %v497_v49 = vrot.slane %v495_v42, 7  ;;  %12054 = vst [vmem:[#allocation5_spill] sm:$0xff] %v12053_v50  ;;  %v12056_v54 = vsel %vm9824_vm10, 4294967295, %v12055_v54  ;;  %v507_v57 = vshll.u32 %v7951_v47, 16  ;;  %v7953_v59 = vpack.c.bf16 %v356_v53, %v356_v53  ;;  %v358_v4 = vld [vmem:[#allocation2 + $0x30] sm:$0xff]  ;;  %v359_v10 = vld [vmem:[#allocation2 + $0x38] sm:$0xff] }
  0x46   : > { %12057 = vst [vmem:[#allocation6_spill] sm:$0xff] %v12056_v54  ;;  %v492_v60 = vor.u32 %v490_v41, %v489_v48  ;;  %v493_v61 = vrot.slane %v489_v48, 4  ;;  %v506_v0 = vrot.slane %v504_v56, 7  ;;  %v512_v1 = vshrl.u32 %v7952_v52, 16  ;;  %v820_v8 = vld [vmem:[#allocation3 + $0x18] sm:$0xf] }
  0x47   : > { %v500_v62 = vor.u32 %v498_v43, %v497_v49  ;;  %v502_v63 = vrot.slane %v497_v49, 4  ;;  %v515_v2 = vshll.u32 %v7952_v52, 16  ;;  %v7954_v3 = vpack.c.bf16 %v357_v58, %v357_v58  ;;  %v827_v21 = vld [vmem:[#allocation3 + $0x24] sm:$0xf]  ;;  %v361_v28 = vld [vmem:[#allocation2 + $0x48] sm:$0xff]  ;;  %v362_v29 = vld [vmem:[#allocation2 + $0x50] sm:$0xff] }
  0x48   : > { %v811_v6 = vsel %vm9816_vm9, %v492_v60, %v810_v51  ;;  %v521_v9 = vshrl.u32 %v7953_v59, 16  ;;  %v509_v11 = vor.u32 %v507_v57, %v506_v0  ;;  %v510_v12 = vrot.slane %v506_v0, 4  ;;  %v360_v27 = vld [vmem:[#allocation2 + $0x40] sm:$0xff]  ;;  %v363_v34 = vld [vmem:[#allocation2 + $0x58] sm:$0xff]  ;;  %v834_v39 = vld [vmem:[#allocation3 + $0x30] sm:$0xf] }
  0x49   : > { %v501_v5 = vsel %vm9808_vm8, %v493_v61, %v500_v62  ;;  %v818_v7 = vsel %vm9824_vm10, %v502_v63, %v817_v55  ;;  %812 = vst [vmem:[#allocation3 + $0xc] sm:$0xf] %v811_v6  ;;  %v9835_v13 = vrot.slane %v512_v1, 7  ;;  %v524_v14 = vshll.u32 %v7953_v59, 16  ;;  %v364_v56 = vld [vmem:[#allocation2 + $0x60] sm:$0xff]  ;;  %v365_v62 = vld [vmem:[#allocation2 + $0x68] sm:$0xff] }
  0x4a   : > { %814 = vst.msk [vmem:[#allocation3 + $0x10] sm:$0xf] %vm807_vm5, %v501_v5  ;;  %819 = vst [vmem:[#allocation3 + $0x14] sm:$0x1] %v818_v7  ;;  %v523_v15 = vrot.slane %v521_v9, 7  ;;  %v529_v16 = vshrl.u32 %v7954_v3, 16  ;;  %v7955_v18 = vpack.c.bf16 %v358_v4, %v358_v4  ;;  %v821_v20 = vsel %vm9816_vm9, %v509_v11, %v820_v8 }
  0x4b   : > { %v532_v17 = vshll.u32 %v7954_v3, 16  ;;  %v517_v19 = vor.u32 %v515_v2, %v9835_v13  ;;  %v7956_v22 = vpack.c.bf16 %v359_v10, %v359_v10  ;;  %822 = vst [vmem:[#allocation3 + $0x18] sm:$0xf] %v821_v20  ;;  %vm1044_vm11 = vcmask 64512   ;;  %v841_v60 = vld [vmem:[#allocation3 + $0x3c] sm:$0xf] }
  0x4c   : > { %v526_v23 = vor.u32 %v524_v14, %v523_v15  ;;  %v527_v24 = vrot.slane %v523_v15, 4  ;;  %v9840_v25 = vrot.slane %v529_v16, 7  ;;  %v538_v26 = vshrl.u32 %v7955_v18, 16  ;;  %v848_v5 = vld [vmem:[#allocation3 + $0x48] sm:$0xf]  ;;  %v366_v16 = vld [vmem:[#allocation2 + $0x70] sm:$0xff] }
  0x4d   : > { %v518_v30 = vsel %vm9808_vm8, %v510_v12, %v517_v19  ;;  %v541_v31 = vshll.u32 %v7955_v18, 16  ;;  %v546_v32 = vshrl.u32 %v7956_v22, 16  ;;  %v549_v33 = vshll.u32 %v7956_v22, 16  ;;  %v367_v20 = vld [vmem:[#allocation2 + $0x78] sm:$0xff]  ;;  %v369_v22 = vld [vmem:[#allocation2 + $0x88] sm:$0xff]  ;;  %p7944_p8 = scmp.ne.s32.totalorder %s9593_s12, 1 }
  0x4e   : > { %823 = vst.msk [vmem:[#allocation3 + $0x1c] sm:$0xf] %vm807_vm5, %v518_v30  ;;  %v534_v35 = vor.u32 %v532_v17, %v9840_v25  ;;  %v828_v36 = vsel %vm9816_vm9, %v526_v23, %v827_v21  ;;  %v540_v37 = vrot.slane %v538_v26, 7  ;;  %v7957_v40 = vpack.c.bf16 %v360_v27, %v360_v27  ;;  %v368_v21 = vld [vmem:[#allocation2 + $0x80] sm:$0xff] }
  0x4f   : > { %829 = vst [vmem:[#allocation3 + $0x24] sm:$0xf] %v828_v36  ;;  %v9848_v38 = vrot.slane %v546_v32, 7  ;;  %v7958_v41 = vpack.c.bf16 %v361_v28, %v361_v28  ;;  %v7959_v42 = vpack.c.bf16 %v362_v29, %v362_v29  ;;  %v7960_v49 = vpack.c.bf16 %v363_v34, %v363_v34  ;;  %v855_v29 = vld [vmem:[#allocation3 + $0x54] sm:$0xf] }
  0x50   : > { %v535_v46 = vsel %vm9808_vm8, %v527_v24, %v534_v35  ;;  %v543_v47 = vor.u32 %v541_v31, %v540_v37  ;;  %v544_v48 = vrot.slane %v540_v37, 4  ;;  %v1267_v51 = vsel %vm1093_vm2, %v9813_v45, 0 }
  0x51   : > { %v9850_v43 = vld [vmem:[#allocation3 + $0xc] sm:$0xff]   ;;  %830 = vst.msk [vmem:[#allocation3 + $0x28] sm:$0xf] %vm807_vm5, %v535_v46  ;;  %v551_v52 = vor.u32 %v549_v33, %v9848_v38  ;;  %v555_v53 = vshrl.u32 %v7957_v40, 16  ;;  %v558_v55 = vshll.u32 %v7957_v40, 16  ;;  %v563_v58 = vshrl.u32 %v7958_v41, 16 }
  0x52   : > { %8321 = vmatprep.mubr.msk.bf16.mxu0 %vm1044_vm11, %v9850_v43  ;;  %v835_v57 = vsel %vm9816_vm9, %v543_v47, %v834_v39  ;;  %v566_v59 = vshll.u32 %v7958_v41, 16  ;;  %v572_v61 = vshrl.u32 %v7959_v42, 16  ;;  %v575_v0 = vshll.u32 %v7959_v42, 16  ;;  %v9892_v39 = vld [vmem:[%s9683_s6 + $0x18] sm:$0xf] }
  0x53   : > { %v552_v45 = vsel %vm9808_vm8, %v544_v48, %v551_v52  ;;  %836 = vst [vmem:[#allocation3 + $0x30] sm:$0xf] %v835_v57  ;;  %v557_v63 = vrot.slane %v555_v53, 7  ;;  %v580_v1 = vshrl.u32 %v7960_v49, 16  ;;  %v9865_v2 = vrot.slane %v563_v58, 7  ;;  %v370_v53 = vld [vmem:[#allocation2 + $0x90] sm:$0xff] }
  0x54   : > { %837 = vst.msk [vmem:[#allocation3 + $0x34] sm:$0xf] %vm807_vm5, %v552_v45  ;;  %v574_v3 = vrot.slane %v572_v61, 7  ;;  %v583_v4 = vshll.u32 %v7960_v49, 16  ;;  %v7961_v6 = vpack.c.bf16 %v364_v56, %v364_v56  ;;  %v7962_v11 = vpack.c.bf16 %v365_v62, %v365_v62  ;;  %v862_v52 = vld [vmem:[#allocation3 + $0x60] sm:$0xf] }
  0x55   : > { %v9867_v7 = vld [vmem:[#allocation3 + $0x18] sm:$0xff]   ;;  %v560_v8 = vor.u32 %v558_v55, %v557_v63  ;;  %v561_v9 = vrot.slane %v557_v63, 4  ;;  %v9869_v10 = vrot.slane %v580_v1, 7  ;;  %v568_v12 = vor.u32 %v566_v59, %v9865_v2 }
  0x56   : > { %v577_v14 = vor.u32 %v575_v0, %v574_v3  ;;  %v578_v15 = vrot.slane %v574_v3, 4  ;;  %8322 = vmatmul.mubr.msk.bf16.vlgmr.msra.gmra.mrb[0].mxu0 %vm1044_vm11, %v9867_v7  ;;  %v589_v19 = vshrl.u32 %v7961_v6, 16  ;;  %v592_v27 = vshll.u32 %v7961_v6, 16  ;;  %v371_v55 = vld [vmem:[#allocation2 + $0x98] sm:$0xff]  ;;  %v869_v0 = vld [vmem:[#allocation3 + $0x6c] sm:$0xf] }
  0x57   : > { %v842_v17 = vsel %vm9816_vm9, %v560_v8, %v841_v60  ;;  %v585_v18 = vor.u32 %v583_v4, %v9869_v10  ;;  %8354 = vmatpush3.bf16.msra.mxu0 %v1267_v51  ;;  %v569_v24 = vsel %vm9808_vm8, %v561_v9, %v568_v12  ;;  %v597_v28 = vshrl.u32 %v7962_v11, 16  ;;  %v372_v60 = vld [vmem:[#allocation2 + $0xa0] sm:$0xff] }
  0x58   : > { %v9877_v23 = vld [vmem:[#allocation3 + $0x24] sm:$0xff]   ;;  %843 = vst [vmem:[#allocation3 + $0x3c] sm:$0xf] %v842_v17  ;;  %v849_v26 = vsel %vm9816_vm9, %v577_v14, %v848_v5  ;;  %844 = vst.msk [vmem:[#allocation3 + $0x40] sm:$0xf] %vm807_vm5, %v569_v24  ;;  %v591_v31 = vrot.slane %v589_v19, 7  ;;  %v7963_v33 = vpack.c.bf16 %v366_v16, %v366_v16  ;;  %v7964_v35 = vpack.c.bf16 %v367_v20, %v367_v20 }
  0x59   : > { %v586_v30 = vsel %vm9808_vm8, %v578_v15, %v585_v18  ;;  %850 = vst [vmem:[#allocation3 + $0x48] sm:$0xf] %v849_v26  ;;  %v600_v32 = vshll.u32 %v7962_v11, 16  ;;  %8325 = vmatprep.mubr.msk.bf16.mxu0 %vm1044_vm11, %v9877_v23  ;;  %v9889_v34 = vrot.slane %v597_v28, 7  ;;  %v7965_v36 = vpack.c.bf16 %v368_v21, %v368_v21  ;;  %9445 = vmatprep.subr.msk.bf16.mxu0 %vm1093_vm2, %v9892_v39  ;;  %v373_v17 = vld [vmem:[#allocation2 + $0xa8] sm:$0xff]  ;;  %v374_v18 = vld [vmem:[#allocation2 + $0xb0] sm:$0xff] }
  0x5a   : > { %851 = vst.msk [vmem:[#allocation3 + $0x4c] sm:$0xf] %vm807_vm5, %v586_v30  ;;  %v7966_v37 = vpack.c.bf16 %v369_v22, %v369_v22  ;;  %v594_v41 = vor.u32 %v592_v27, %v591_v31  ;;  %v595_v42 = vrot.slane %v591_v31, 4  ;;  %v606_v46 = vshrl.u32 %v7963_v33, 16  ;;  %v375_v24 = vld [vmem:[#allocation2 + $0xb8] sm:$0xff] }
  0x5b   : > { %v9894_v40 = vld [vmem:[#allocation3 + $0x30] sm:$0xff]   ;;  %v609_v47 = vshll.u32 %v7963_v33, 16  ;;  %v602_v48 = vor.u32 %v600_v32, %v9889_v34  ;;  %v614_v49 = vshrl.u32 %v7964_v35, 16  ;;  %v617_v51 = vshll.u32 %v7964_v35, 16 }
  0x5c   : > { %v856_v56 = vsel %vm9816_vm9, %v594_v41, %v855_v29  ;;  %v608_v57 = vrot.slane %v606_v46, 7  ;;  %v623_v58 = vshrl.u32 %v7965_v36, 16  ;;  %v626_v59 = vshll.u32 %v7965_v36, 16  ;;  %v876_v36 = vld [vmem:[#allocation3 + $0x78] sm:$0xf] }
  0x5d   : > { %v603_v61 = vsel %vm9808_vm8, %v595_v42, %v602_v48  ;;  %857 = vst [vmem:[#allocation3 + $0x54] sm:$0xf] %v856_v56  ;;  %v9903_v62 = vrot.slane %v614_v49, 7  ;;  %v631_v45 = vshrl.u32 %v7966_v37, 16  ;;  %v634_v63 = vshll.u32 %v7966_v37, 16  ;;  %v376_v56 = vld [vmem:[#allocation2 + $0xc0] sm:$0xff] }
  0x5e   : > { %8326 = vmatmul.mubr.msk.bf16.gmra.mrb[4].mxu0 %vm1044_vm11, %v9894_v40  ;;  %858 = vst.msk [vmem:[#allocation3 + $0x58] sm:$0xf] %vm807_vm5, %v603_v61  ;;  %v611_v1 = vor.u32 %v609_v47, %v608_v57  ;;  %v612_v3 = vrot.slane %v608_v57, 4  ;;  %v625_v4 = vrot.slane %v623_v58, 7  ;;  %v7967_v5 = vpack.c.bf16 %v370_v53, %v370_v53  ;;  %v377_v57 = vld [vmem:[#allocation2 + $0xc8] sm:$0xff] }
  0x5f   : > { %v9908_v6 = vld [vmem:[#allocation3 + $0x3c] sm:$0xff]   ;;  %v619_v8 = vor.u32 %v617_v51, %v9903_v62  ;;  %v7968_v9 = vpack.c.bf16 %v371_v55, %v371_v55  ;;  %v7969_v11 = vpack.c.bf16 %v372_v60, %v372_v60  ;;  %v9913_v16 = vrot.slane %v631_v45, 7  ;;  %v883_v60 = vld [vmem:[#allocation3 + $0x84] sm:$0xf] }
  0x60   : > { %v863_v12 = vsel %vm9816_vm9, %v611_v1, %v862_v52  ;;  %v628_v14 = vor.u32 %v626_v59, %v625_v4  ;;  %v629_v15 = vrot.slane %v625_v4, 4  ;;  %8329 = vmatprep.mubr.msk.bf16.mxu0 %vm1044_vm11, %v9908_v6  ;;  %v640_v20 = vshrl.u32 %v7967_v5, 16 }
  0x61   : > { %v620_v19 = vsel %vm9808_vm8, %v612_v3, %v619_v8  ;;  %864 = vst [vmem:[#allocation3 + $0x60] sm:$0xf] %v863_v12  ;;  %v643_v21 = vshll.u32 %v7967_v5, 16  ;;  %v648_v22 = vshrl.u32 %v7968_v9, 16  ;;  %v9919_v26 = vld [vmem:[#allocation3 + $0x48] sm:$0xff]   ;;  %v636_v27 = vor.u32 %v634_v63, %v9913_v16 }
  0x62   : > { %865 = vst.msk [vmem:[#allocation3 + $0x64] sm:$0xf] %vm807_vm5, %v620_v19  ;;  %v870_v28 = vsel %vm9816_vm9, %v628_v14, %v869_v0  ;;  %v651_v29 = vshll.u32 %v7968_v9, 16  ;;  %v642_v30 = vrot.slane %v640_v20, 7  ;;  %v7970_v32 = vpack.c.bf16 %v373_v17, %v373_v17  ;;  %v890_v8 = vld [vmem:[#allocation3 + $0x90] sm:$0xf] }
  0x63   : > { %871 = vst [vmem:[#allocation3 + $0x6c] sm:$0xf] %v870_v28  ;;  %v9925_v31 = vrot.slane %v648_v22, 7  ;;  %v657_v33 = vshrl.u32 %v7969_v11, 16  ;;  %v637_v35 = vsel %vm9808_vm8, %v629_v15, %v636_v27  ;;  %v660_v37 = vshll.u32 %v7969_v11, 16  ;;  %v379_v22 = vld [vmem:[#allocation2 + $0xd8] sm:$0xff] }
  0x64   : > { %v7971_v41 = vpack.c.bf16 %v374_v18, %v374_v18  ;;  %v7972_v42 = vpack.c.bf16 %v375_v24, %v375_v24  ;;  %872 = vst.msk [vmem:[#allocation3 + $0x70] sm:$0xf] %vm807_vm5, %v637_v35  ;;  %v645_v47 = vor.u32 %v643_v21, %v642_v30  ;;  %v646_v48 = vrot.slane %v642_v30, 4  ;;  %v378_v18 = vld [vmem:[#allocation2 + $0xd0] sm:$0xff]  ;;  %v380_v24 = vld [vmem:[#allocation2 + $0xe0] sm:$0xff]  ;;  %v381_v27 = vld [vmem:[#allocation2 + $0xe8] sm:$0xff] }
  0x65   : > { %v9929_v46 = vld [vmem:[#allocation3 + $0x54] sm:$0xff]   ;;  %v653_v49 = vor.u32 %v651_v29, %v9925_v31  ;;  %v659_v51 = vrot.slane %v657_v33, 7  ;;  %v665_v52 = vshrl.u32 %v7970_v32, 16  ;;  %v668_v53 = vshll.u32 %v7970_v32, 16 }
  0x66   : > { %8330 = vmatmul.mubr.msk.bf16.gmra.mrb[8].mxu0 %vm1044_vm11, %v9919_v26  ;;  %v674_v55 = vshrl.u32 %v7971_v41, 16  ;;  %v877_v59 = vsel %vm9816_vm9, %v645_v47, %v876_v36  ;;  %v677_v61 = vshll.u32 %v7971_v41, 16  ;;  %v682_v45 = vshrl.u32 %v7972_v42, 16  ;;  %v382_v35 = vld [vmem:[#allocation2 + $0xf0] sm:$0xff]  ;;  %v383_v47 = vld [vmem:[#allocation2 + $0xf8] sm:$0xff] }
  0x67   : > { %8333 = vmatprep.mubr.msk.bf16.mxu0 %vm1044_vm11, %v9929_v46  ;;  %v654_v58 = vsel %vm9808_vm8, %v646_v48, %v653_v49  ;;  %878 = vst [vmem:[#allocation3 + $0x78] sm:$0xf] %v877_v59  ;;  %v662_v63 = vor.u32 %v660_v37, %v659_v51  ;;  %v663_v0 = vrot.slane %v659_v51, 4  ;;  %v9942_v1 = vrot.slane %v665_v52, 7  ;;  %v897_v49 = vld [vmem:[#allocation3 + $0x9c] sm:$0xf] }
  0x68   : > { %879 = vst.msk [vmem:[#allocation3 + $0x7c] sm:$0xf] %vm807_vm5, %v654_v58  ;;  %v676_v3 = vrot.slane %v674_v55, 7  ;;  %v9944_v4 = vrot.slane %v682_v45, 7  ;;  %v685_v5 = vshll.u32 %v7972_v42, 16  ;;  %v7973_v9 = vpack.c.bf16 %v376_v56, %v376_v56 }
  0x69   : > { %v7974_v11 = vpack.c.bf16 %v377_v57, %v377_v57  ;;  %v9946_v12 = vld [vmem:[#allocation3 + $0x60] sm:$0xff]   ;;  %v670_v14 = vor.u32 %v668_v53, %v9942_v1  ;;  %v884_v15 = vsel %vm9816_vm9, %v662_v63, %v883_v60  ;;  %v7975_v42 = vpack.c.bf16 %v378_v18, %v378_v18 }
  0x6a   : > { %v679_v17 = vor.u32 %v677_v61, %v676_v3  ;;  %885 = vst [vmem:[#allocation3 + $0x84] sm:$0xf] %v884_v15  ;;  %v680_v19 = vrot.slane %v676_v3, 4  ;;  %v687_v20 = vor.u32 %v685_v5, %v9944_v4  ;;  %v691_v21 = vshrl.u32 %v7973_v9, 16  ;;  %v904_v3 = vld [vmem:[#allocation3 + $0xa8] sm:$0xf] }
  0x6b   : > { %v9952_v28 = vld [vmem:[#allocation3 + $0x6c] sm:$0xff]   ;;  %v671_v29 = vsel %vm9808_vm8, %v663_v0, %v670_v14  ;;  %v694_v32 = vshll.u32 %v7973_v9, 16  ;;  %v699_v33 = vshrl.u32 %v7974_v11, 16  ;;  %v702_v41 = vshll.u32 %v7974_v11, 16 }
  0x6c   : > { %v891_v30 = vsel %vm9816_vm9, %v679_v17, %v890_v8  ;;  %886 = vst.msk [vmem:[#allocation3 + $0x88] sm:$0xf] %vm807_vm5, %v671_v29  ;;  %v688_v36 = vsel %vm9808_vm8, %v680_v19, %v687_v20  ;;  %v693_v37 = vrot.slane %v691_v21, 7  ;;  %v7976_v51 = vpack.c.bf16 %v379_v22, %v379_v22  ;;  %v911_v20 = vld [vmem:[#allocation3 + $0xb4] sm:$0xf] }
  0x6d   : > { %892 = vst [vmem:[#allocation3 + $0x90] sm:$0xf] %v891_v30  ;;  %893 = vst.msk [vmem:[#allocation3 + $0x94] sm:$0xf] %vm807_vm5, %v688_v36  ;;  %v9964_v48 = vrot.slane %v699_v33, 7  ;;  %v7977_v52 = vpack.c.bf16 %v380_v24, %v380_v24  ;;  %v7978_v53 = vpack.c.bf16 %v381_v27, %v381_v27  ;;  %v7979_v57 = vpack.c.bf16 %v382_v35, %v382_v35 }
  0x6e   : > { %8334 = vmatmul.mubr.msk.bf16.gmra.mrb[12].mxu0 %vm1044_vm11, %v9946_v12  ;;  %v696_v55 = vor.u32 %v694_v32, %v693_v37  ;;  %v697_v56 = vrot.slane %v693_v37, 4  ;;  %v708_v59 = vshrl.u32 %v7975_v42, 16  ;;  %v711_v60 = vshll.u32 %v7975_v42, 16 }
  0x6f   : > { %8337 = vmatprep.mubr.msk.bf16.mxu0 %vm1044_vm11, %v9952_v28  ;;  %v704_v58 = vor.u32 %v702_v41, %v9964_v48  ;;  %v7980_v61 = vpack.c.bf16 %v383_v47, %v383_v47  ;;  %v716_v63 = vshrl.u32 %v7976_v51, 16  ;;  %v719_v0 = vshll.u32 %v7976_v51, 16  ;;  %v9971_v8 = vld [vmem:[#allocation3 + $0x78] sm:$0xff]   ;;  %v918_v51 = vld [vmem:[#allocation3 + $0xc0] sm:$0xf] }
  0x70   : > { %v898_v45 = vsel %vm9816_vm9, %v696_v55, %v897_v49  ;;  %v725_v5 = vshrl.u32 %v7977_v52, 16  ;;  %v710_v11 = vrot.slane %v708_v59, 7  ;;  %v728_v14 = vshll.u32 %v7977_v52, 16 }
  0x71   : > { %v705_v9 = vsel %vm9808_vm8, %v697_v56, %v704_v58  ;;  %899 = vst [vmem:[#allocation3 + $0x9c] sm:$0xf] %v898_v45  ;;  %v733_v15 = vshrl.u32 %v7978_v53, 16  ;;  %v9976_v17 = vrot.slane %v716_v63, 7  ;;  %v736_v19 = vshll.u32 %v7978_v53, 16 }
  0x72   : > { %900 = vst.msk [vmem:[#allocation3 + $0xa0] sm:$0xf] %vm807_vm5, %v705_v9  ;;  %v727_v18 = vrot.slane %v725_v5, 7  ;;  %v742_v21 = vshrl.u32 %v7979_v57, 16  ;;  %v713_v24 = vor.u32 %v711_v60, %v710_v11  ;;  %v714_v27 = vrot.slane %v710_v11, 4  ;;  %v9519_v5 = vld [vmem:[#allocation3] sm:$0xff]  }
  0x73   : > { %v9978_v22 = vld [vmem:[#allocation3 + $0x84] sm:$0xff]   ;;  %v721_v29 = vor.u32 %v719_v0, %v9976_v17  ;;  %v9985_v35 = vrot.slane %v733_v15, 7  ;;  %v745_v37 = vshll.u32 %v7979_v57, 16  ;;  %v750_v47 = vshrl.u32 %v7980_v61, 16 }
  0x74   : > { %v730_v30 = vor.u32 %v728_v14, %v727_v18  ;;  %v731_v32 = vrot.slane %v727_v18, 4  ;;  %v905_v33 = vsel %vm9816_vm9, %v713_v24, %v904_v3  ;;  %v744_v36 = vrot.slane %v742_v21, 7  ;;  %v9997_v57 = vld [vmem:[#allocation3 + $0x90] sm:$0xff]   ;;  %v824_v14 = vld [vmem:[#allocation3 + $0x20] sm:$0x1] }
  0x75   : > { %v722_v41 = vsel %vm9808_vm8, %v714_v27, %v721_v29  ;;  %906 = vst [vmem:[#allocation3 + $0xa8] sm:$0xf] %v905_v33  ;;  %v753_v49 = vshll.u32 %v7980_v61, 16  ;;  %v738_v52 = vor.u32 %v736_v19, %v9985_v35  ;;  %v9995_v56 = vrot.slane %v750_v47, 7  ;;  %v831_v18 = vld [vmem:[#allocation3 + $0x2c] sm:$0x1] }
  0x76   : > { %8338 = vmatmul.mubr.msk.bf16.gmra.mrb[16].mxu0 %vm1044_vm11, %v9971_v8  ;;  %v912_v42 = vsel %vm9816_vm9, %v730_v30, %v911_v20  ;;  %907 = vst.msk [vmem:[#allocation3 + $0xac] sm:$0xf] %vm807_vm5, %v722_v41  ;;  %v747_v53 = vor.u32 %v745_v37, %v744_v36  ;;  %v748_v55 = vrot.slane %v744_v36, 4  ;;  %v519_v9 = vrot.slane %v9835_v13, 4  ;;  %v10038_v21 = vld [vmem:[%s9683_s6 + $0x4] sm:$0xf] }
  0x77   : > { %8341 = vmatprep.mubr.msk.bf16.mxu0 %vm1044_vm11, %v9978_v22  ;;  %913 = vst [vmem:[#allocation3 + $0xb4] sm:$0xf] %v912_v42  ;;  %v739_v58 = vsel %vm9808_vm8, %v731_v32, %v738_v52  ;;  %v755_v61 = vor.u32 %v753_v49, %v9995_v56  ;;  %v536_v11 = vrot.slane %v9840_v25, 4  ;;  %v553_v20 = vrot.slane %v9848_v38, 4  ;;  %v838_v24 = vld [vmem:[#allocation3 + $0x38] sm:$0x1] }
  0x78   : > { %v919_v59 = vsel %vm9816_vm9, %v747_v53, %v918_v51  ;;  %914 = vst.msk [vmem:[#allocation3 + $0xb8] sm:$0xf] %vm807_vm5, %v739_v58  ;;  %v825_v15 = vsel %vm9824_vm10, %v519_v9, %v824_v14  ;;  %v570_v13 = vrot.slane %v9865_v2, 4  ;;  %v1441_v25 = vsel %vm1093_vm2, %v9892_v39, 0  ;;  %v845_v27 = vld [vmem:[#allocation3 + $0x44] sm:$0x1] }
  0x79   : > { %v10003_v60 = vld [vmem:[#allocation3 + $0x9c] sm:$0xff]   ;;  %920 = vst [vmem:[#allocation3 + $0xc0] sm:$0xf] %v919_v59  ;;  %v756_v45 = vsel %vm9808_vm8, %v748_v55, %v755_v61  ;;  %826 = vst [vmem:[#allocation3 + $0x20] sm:$0x1] %v825_v15  ;;  %v832_v19 = vsel %vm9824_vm10, %v536_v11, %v831_v18  ;;  %v839_v38 = vsel %vm9824_vm10, %v553_v20, %v838_v24  ;;  %v604_v29 = vrot.slane %v9889_v34, 4 }
  0x7a   : > { %921 = vst.msk [vmem:[#allocation3 + $0xc4] sm:$0xf] %vm807_vm5, %v756_v45  ;;  %833 = vst [vmem:[#allocation3 + $0x2c] sm:$0x1] %v832_v19  ;;  %v846_v2 = vsel %vm9824_vm10, %v570_v13, %v845_v27  ;;  %v852_v39 = vld [vmem:[#allocation3 + $0x50] sm:$0x1] }
  0x7b   : > { %840 = vst [vmem:[#allocation3 + $0x38] sm:$0x1] %v839_v38  ;;  %847 = vst [vmem:[#allocation3 + $0x44] sm:$0x1] %v846_v2  ;;  %v859_v32 = vld [vmem:[#allocation3 + $0x5c] sm:$0x1] }
  0x7c   : > { %v621_v33 = vrot.slane %v9903_v62, 4  ;;  %v866_v36 = vld [vmem:[#allocation3 + $0x68] sm:$0x1]  ;;  %v638_v34 = vrot.slane %v9913_v16, 4  ;;  %v873_v41 = vld [vmem:[#allocation3 + $0x74] sm:$0x1] }
  0x7d   : > { %v10014_v63 = vld [vmem:[#allocation3 + $0xa8] sm:$0xff]   ;;  %v655_v42 = vrot.slane %v9925_v31, 4  ;;  %v880_v47 = vld [vmem:[#allocation3 + $0x80] sm:$0x1]  ;;  %v672_v49 = vrot.slane %v9942_v1, 4  ;;  %v689_v52 = vrot.slane %v9944_v4, 4 }
  0x7e   : > { %8342 = vmatmul.mubr.msk.bf16.gmra.mrb[20].mxu0 %vm1044_vm11, %v9997_v57  ;;  %v867_v37 = vsel %vm9824_vm10, %v621_v33, %v866_v36  ;;  %v874_v62 = vsel %vm9824_vm10, %v638_v34, %v873_v41  ;;  %v887_v51 = vld [vmem:[#allocation3 + $0x8c] sm:$0x1]  ;;  %v894_v31 = vld [vmem:[#allocation3 + $0x98] sm:$0x1]  ;;  %v706_v58 = vrot.slane %v9964_v48, 4  ;;  %v723_v59 = vrot.slane %v9976_v17, 4 }
  0x7f   : > { %8345 = vmatprep.mubr.msk.bf16.mxu0 %vm1044_vm11, %v10003_v60  ;;  %v10016_v0 = vld [vmem:[#allocation3 + $0xb4] sm:$0xff]   ;;  %868 = vst [vmem:[#allocation3 + $0x68] sm:$0x1] %v867_v37  ;;  %875 = vst [vmem:[#allocation3 + $0x74] sm:$0x1] %v874_v62  ;;  %v881_v16 = vsel %vm9824_vm10, %v655_v42, %v880_v47  ;;  %v888_v53 = vsel %vm9824_vm10, %v672_v49, %v887_v51  ;;  %v895_v55 = vsel %vm9824_vm10, %v689_v52, %v894_v31  ;;  %vm2893_vm15 = vcmask 1042432  }
  0x80   : > { %882 = vst [vmem:[#allocation3 + $0x80] sm:$0x1] %v881_v16  ;;  %889 = vst [vmem:[#allocation3 + $0x8c] sm:$0x1] %v888_v53  ;;  %v901_v1 = vld [vmem:[#allocation3 + $0xa4] sm:$0x1] }
  0x81   : > { %v10022_v3 = vld [vmem:[#allocation3 + $0xc0] sm:$0xff]   ;;  %896 = vst [vmem:[#allocation3 + $0x98] sm:$0x1] %v895_v55  ;;  %v902_v4 = vsel %vm9824_vm10, %v706_v58, %v901_v1  ;;  %v908_v61 = vld [vmem:[#allocation3 + $0xb0] sm:$0x1]  ;;  %v740_v48 = vrot.slane %v9985_v35, 4 }
  0x82   : > { %903 = vst [vmem:[#allocation3 + $0xa4] sm:$0x1] %v902_v4  ;;  %v909_v45 = vsel %vm9824_vm10, %v723_v59, %v908_v61  ;;  %v2176_v17 = vsel %vm1093_vm2, %v10038_v21, 0  ;;  %v10111_v35 = vld [vmem:[%s9683_s6 + $0x10] sm:$0xf]  ;;  %vm2894_vm0 = vcmask 1046532  }
  0x83   : > { %910 = vst [vmem:[#allocation3 + $0xb0] sm:$0x1] %v909_v45  ;;  %v1639_v14 = vld [vmem:[#allocation3 + $0xc] sm:$0xf]  ;;  %v1642_v18 = vld [vmem:[#allocation3 + $0x18] sm:$0xf]  ;;  %vm10539_vm1 = vmor %vm2893_vm15, %vm2894_vm0 }
  0x84   : > { %v1718_v15 = vshrl.u32 %v1639_v14, 16  ;;  %v10143_v13 = vld [vmem:[#allocation3 + $0x8] sm:$0x1]  ;;  %v10147_v24 = vld [vmem:[#allocation3 + $0x1c] sm:$0xf]  ;;  %v1742_v27 = vshrl.u32 %v1642_v18, 16 }
  0x85   : > { %v1745_v38 = vshll.u32 %v1642_v18, 16  ;;  %vm1690_vm12 = vsmask.f32 3328  ;;  %v1755_v33 = vshrl.u32 %v10147_v24, 16  ;;  %v10156_v41 = vld [vmem:[#allocation3 + $0x14] sm:$0x1] }
  0x86   : > { %8346 = vmatmul.mubr.msk.bf16.gmra.mrb[24].mxu0 %vm1044_vm11, %v10014_v63  ;;  %v1744_v34 = vrot.slane %v1742_v27, 4  ;;  %v922_v42 = vld [vmem:[#allocation3 + $0xc8] sm:$0x1]  ;;  %vm1691_vm13 = vsmask.f32 7440  ;;  %v1737_v4 = vshll.u32 %v10156_v41, 16 }
  0x87   : > { %8349 = vmatprep.mubr.msk.bf16.mxu0 %vm1044_vm11, %v10016_v0  ;;  %v1747_v37 = vrot.slane %v1745_v38, 5  ;;  %v10160_v49 = vld [vmem:[#allocation3 + $0x28] sm:$0xf]  ;;  %v1757_v53 = vrot.slane %v1755_v33, 4  ;;  %v1648_v55 = vld [vmem:[#allocation3 + $0x30] sm:$0xf]  ;;  %vm10176_vm14 = vmor %vm1690_vm12, %vm1691_vm13 }
  0x88   : > { %v10168_v58 = vld [vmem:[#allocation3 + $0x34] sm:$0xf]  ;;  %v10172_v59 = vld [vmem:[#allocation3 + $0x20] sm:$0x1]  ;;  %v10367_v50 = vld [vmem:[#allocation3 + $0x98] sm:$0x1] }
  0x89   : > { %v1748_v61 = vor.u32 %v1747_v37, %v1744_v34  ;;  %v10193_v38 = vld [vmem:[#allocation3 + $0x40] sm:$0xf]  ;;  %12067 = vst [vmem:[#allocation14_spill] sm:$0xff] %v10367_v50 }
  0x8a   : > { %v1827_v34 = vshrl.u32 %v10193_v38, 16 }
  0x8e   : > { %8350 = vmatmul.mubr.msk.bf16.gmra.mrb[28].mxu0 %vm1044_vm11, %v10022_v3 }
  0x8f   : > { %8355 = vmatprep.mubr.msk.bf16.mxu0 %vm1044_vm11, %v9519_v5  ;;  %v915_v5 = vld [vmem:[#allocation3 + $0xbc] sm:$0x1] }
  0x90   : > { %v916_v9 = vsel %vm9824_vm10, %v740_v48, %v915_v5  ;;  %v1775_v5 = vshll.u32 %v10160_v49, 16 }
  0x91   : > { %917 = vst [vmem:[#allocation3 + $0xbc] sm:$0x1] %v916_v9  ;;  %v1779_v9 = vshrl.u32 %v10160_v49, 16 }
  0x93   : > { %v1781_v27 = vrot.slane %v1779_v9, 4 }
  0x96   : > { %8356 = vmatmul.mubr.msk.bf16.vlgmr.msra.gmra.mrb[0].mxu0 %vm1044_vm11, %v9850_v43  ;;  %v587_v43 = vrot.slane %v9869_v10, 4  ;;  %v860_v10 = vsel %vm9824_vm10, %v604_v29, %v859_v32  ;;  %v1751_v32 = vshll.u32 %v10147_v24, 16 }
  0x97   : > { %8388 = vmatpush3.bf16.msra.mxu0 %v1441_v25  ;;  %8359 = vmatprep.mubr.msk.bf16.mxu0 %vm1044_vm11, %v9867_v7  ;;  %861 = vst [vmem:[#allocation3 + $0x5c] sm:$0x1] %v860_v10 }
  0x98   : > { %9446 = vmatprep.subr.msk.bf16.mxu0 %vm1093_vm2, %v10038_v21  ;;  %v853_v30 = vsel %vm9824_vm10, %v587_v43, %v852_v39  ;;  %v1720_v39 = vrot.slane %v1718_v15, 4  ;;  %v10166_v31 = vrot.slane %v1751_v32, 5 }
  0x99   : > { %854 = vst [vmem:[#allocation3 + $0x50] sm:$0x1] %v853_v30  ;;  %v1645_v30 = vld [vmem:[#allocation3 + $0x24] sm:$0xf] }
  0x9a   : > { %v1769_v62 = vshll.u32 %v1645_v30, 16 }
  0x9c   : > { %v1771_v45 = vrot.slane %v1769_v62, 5 }
  0x9e   : > { %8360 = vmatmul.mubr.msk.bf16.gmra.mrb[4].mxu0 %vm1044_vm11, %v9877_v23 }
  0x9f   : > { %8363 = vmatprep.mubr.msk.bf16.mxu0 %vm1044_vm11, %v9894_v40 }
  0xa6   : > { %8364 = vmatmul.mubr.msk.bf16.gmra.mrb[8].mxu0 %vm1044_vm11, %v9908_v6 }
  0xa7   : > { %8367 = vmatprep.mubr.msk.bf16.mxu0 %vm1044_vm11, %v9919_v26 }
  0xae   : > { %8368 = vmatmul.mubr.msk.bf16.gmra.mrb[12].mxu0 %vm1044_vm11, %v9929_v46 }
  0xaf   : > { %8371 = vmatprep.mubr.msk.bf16.mxu0 %vm1044_vm11, %v9946_v12 }
  0xb6   : > { %8372 = vmatmul.mubr.msk.bf16.gmra.mrb[16].mxu0 %vm1044_vm11, %v9952_v28 }
  0xb7   : > { %8375 = vmatprep.mubr.msk.bf16.mxu0 %vm1044_vm11, %v9971_v8 }
  0xbe   : > { %8376 = vmatmul.mubr.msk.bf16.gmra.mrb[20].mxu0 %vm1044_vm11, %v9978_v22 }
  0xbf   : > { %8379 = vmatprep.mubr.msk.bf16.mxu0 %vm1044_vm11, %v9997_v57 }
  0xc6   : > { %8380 = vmatmul.mubr.msk.bf16.gmra.mrb[24].mxu0 %vm1044_vm11, %v10003_v60 }
  0xc7   : > { %8383 = vmatprep.mubr.msk.bf16.mxu0 %vm1044_vm11, %v10014_v63 }
  0xce   : > { %8384 = vmatmul.mubr.msk.bf16.gmra.mrb[28].mxu0 %vm1044_vm11, %v10016_v0 }
  0xcf   : > { %8389 = vmatprep.mubr.msk.bf16.mxu0 %vm1044_vm11, %v9867_v7  ;;  %v1636_v7 = vld [vmem:[#allocation3] sm:$0xf] }
  0xd6   : > { %8390 = vmatmul.mubr.msk.bf16.vlgmr.msra.gmra.mrb[0].mxu0 %vm1044_vm11, %v9877_v23  ;;  %v10131_v23 = vld [vmem:[#allocation3 + $0x4] sm:$0xf] }
  0xd7   : > { %8422 = vmatpush3.bf16.msra.mxu0 %v2176_v17  ;;  %8393 = vmatprep.mubr.msk.bf16.mxu0 %vm1044_vm11, %v9894_v40  ;;  %v1694_v40 = vshrl.u32 %v1636_v7, 16  ;;  %v1703_v11 = vshll.u32 %v10131_v23, 16  ;;  %v1790_v17 = vshrl.u32 %v1648_v55, 16 }
  0xd8   : > { %9447 = vmatprep.subr.msk.bf16.mxu0 %vm1093_vm2, %v10111_v35 }
  0xd9   : > { %v10139_v19 = vrot.slane %v1703_v11, 5 }
  0xde   : > { %8394 = vmatmul.mubr.msk.bf16.gmra.mrb[4].mxu0 %vm1044_vm11, %v9908_v6  ;;  %v1697_v6 = vshll.u32 %v1636_v7, 16  ;;  %v1793_v7 = vshll.u32 %v1648_v55, 16 }
  0xdf   : > { %8397 = vmatprep.mubr.msk.bf16.mxu0 %vm1044_vm11, %v9919_v26  ;;  %v1707_v26 = vshrl.u32 %v10131_v23, 16 }
  0xe1   : > { %v1709_v20 = vrot.slane %v1707_v26, 4  ;;  %v1758_v26 = vor.u32 %v1757_v53, %v10166_v31  ;;  %v10220_v53 = vld [vmem:[#allocation3 + $0x4c] sm:$0xf] }
  0xe3   : > { %v1710_v43 = vor.u32 %v1709_v20, %v10139_v19  ;;  %v1749_v20 = vrot.slane %v1748_v61, 4 }
  0xe5   : > { %v1711_v16 = vrot.slane %v1710_v43, 4 }
  0xe6   : > { %8398 = vmatmul.mubr.msk.bf16.gmra.mrb[8].mxu0 %vm1044_vm11, %v9929_v46  ;;  %v10135_v46 = vld [vmem:[#allocation3 + $0x10] sm:$0xf] }
  0xe7   : > { %8401 = vmatprep.mubr.msk.bf16.mxu0 %vm1044_vm11, %v9946_v12  ;;  %v1721_v12 = vshll.u32 %v1639_v14, 16  ;;  %v1727_v25 = vshll.u32 %v10135_v46, 16  ;;  %v1731_v21 = vshrl.u32 %v10135_v46, 16  ;;  %v1761_v14 = vshll.u32 %v10172_v59, 16 }
  0xe9   : > { %v1723_v29 = vrot.slane %v1721_v12, 5  ;;  %v10154_v10 = vrot.slane %v1727_v25, 5  ;;  %v1733_v36 = vrot.slane %v1731_v21, 4  ;;  %v10191_v21 = vrot.slane %v1775_v5, 5 }
  0xeb   : > { %v1724_v52 = vor.u32 %v1723_v29, %v1720_v39  ;;  %v1734_v1 = vor.u32 %v1733_v36, %v10154_v10  ;;  %v1759_v29 = vrot.slane %v1758_v26, 4  ;;  %v10206_v36 = vld [vmem:[#allocation3 + $0x38] sm:$0x1] }
  0xed   : > { %v1725_v11 = vrot.slane %v1724_v52, 4  ;;  %v1735_v18 = vrot.slane %v1734_v1, 4 }
  0xee   : > { %8402 = vmatmul.mubr.msk.bf16.gmra.mrb[12].mxu0 %vm1044_vm11, %v9952_v28  ;;  %v1696_v28 = vrot.slane %v1694_v40, 4  ;;  %v1799_v40 = vshll.u32 %v10168_v58, 16 }
  0xef   : > { %8405 = vmatprep.mubr.msk.bf16.mxu0 %vm1044_vm11, %v9971_v8  ;;  %v1699_v8 = vrot.slane %v1697_v6, 5  ;;  %v1803_v6 = vshrl.u32 %v10168_v58, 16  ;;  %v1730_v33 = vsel %vm10176_vm14, %v1725_v11, %v10154_v10  ;;  %v1782_v10 = vor.u32 %v1781_v27, %v10191_v21 }
  0xf0   : > { %v10199_v43 = vrot.slane %v1799_v40, 5  ;;  %v1851_v40 = vshrl.u32 %v10220_v53, 16 }
  0xf1   : > { %v1700_v2 = vor.u32 %v1699_v8, %v1696_v28  ;;  %v1739_v28 = vrot.slane %v1737_v4, 5  ;;  %v1651_v8 = vld [vmem:[#allocation3 + $0x3c] sm:$0xf]  ;;  %v1805_v39 = vrot.slane %v1803_v6, 4  ;;  %v10225_v4 = vld [vmem:[#allocation3 + $0x44] sm:$0x1] }
  0xf2   : > { %v1817_v32 = vshll.u32 %v1651_v8, 16  ;;  %v1783_v6 = vrot.slane %v1782_v10, 4 }
  0xf3   : > { %v1701_v47 = vrot.slane %v1700_v2, 4  ;;  %v1792_v2 = vrot.slane %v1790_v17, 4  ;;  %v1806_v52 = vor.u32 %v1805_v39, %v10199_v43  ;;  %v2404_v17 = vsel %vm1093_vm2, %v10111_v35, 0  ;;  %v10247_v39 = vld [vmem:[#allocation3 + $0x64] sm:$0xf] }
  0xf5   : > { %v1706_v15 = vsel %vm10176_vm14, %v1701_v47, %v10139_v19  ;;  %v1795_v19 = vrot.slane %v1793_v7, 5  ;;  %v9520_v47 = vld [vmem:[#allocation3 + $0xcc] sm:$0xff]   ;;  %v1847_v7 = vshll.u32 %v10220_v53, 16 }
  0xf6   : > { %8406 = vmatmul.mubr.msk.bf16.gmra.mrb[16].mxu0 %vm1044_vm11, %v9978_v22  ;;  %v757_v22 = vrot.slane %v9995_v56, 4  ;;  %v1766_v56 = vshrl.u32 %v1645_v30, 16  ;;  %v1763_v30 = vrot.slane %v1761_v14, 5  ;;  %v1807_v14 = vrot.slane %v1806_v52, 4  ;;  %v1663_v52 = vld [vmem:[#allocation3 + $0x6c] sm:$0xf] }
  0xf7   : > { %8409 = vmatprep.mubr.msk.bf16.mxu0 %vm1044_vm11, %v9997_v57  ;;  %v1713_v57 = vshll.u32 %v10143_v13, 16 }
  0xf8   : > { %v923_v51 = vsel %vm9824_vm10, %v757_v22, %v922_v42  ;;  %v1768_v48 = vrot.slane %v1766_v56, 4  ;;  %v10197_v22 = vld [vmem:[#allocation3 + $0x2c] sm:$0x1]  ;;  %v1740_v56 = vsel %vm10176_vm14, %v1735_v18, %v1739_v28  ;;  %v1654_v42 = vld [vmem:[#allocation3 + $0x48] sm:$0xf]  ;;  %v1764_v55 = vsel %vm10176_vm14, %v1759_v29, %v1763_v30 }
  0xf9   : > { %924 = vst [vmem:[#allocation3 + $0xc8] sm:$0x1] %v923_v51  ;;  %v1785_v62 = vshll.u32 %v10197_v22, 16  ;;  %v1796_v51 = vor.u32 %v1795_v19, %v1792_v2  ;;  %v1841_v5 = vshll.u32 %v1654_v42, 16  ;;  %v10229_v9 = vcombine.low %v1730_v33, %v1740_v56 }
  0xfa   : > { %v1772_v25 = vor.u32 %v1771_v45, %v1768_v48  ;;  %v1829_v48 = vrot.slane %v1827_v34, 4  ;;  %v1838_v45 = vshrl.u32 %v1654_v42, 16  ;;  %v1833_v28 = vshll.u32 %v10225_v4, 16 }
  0xfb   : > { %v1787_v11 = vrot.slane %v1785_v62, 5  ;;  %v1797_v26 = vrot.slane %v1796_v51, 4  ;;  %v1843_v19 = vrot.slane %v1841_v5, 5  ;;  %v10249_v29 = vrot.slane %v1847_v7, 5  ;;  %v10262_v51 = vld [vmem:[#allocation3 + $0x50] sm:$0x1] }
  0xfc   : > { %v1840_v2 = vrot.slane %v1838_v45, 4  ;;  %v1853_v30 = vrot.slane %v1851_v40, 4  ;;  %v1835_v56 = vrot.slane %v1833_v28, 5  ;;  %v1899_v62 = vshrl.u32 %v10247_v39, 16  ;;  %v10268_v45 = vld [vmem:[%s9683_s6 + $0x1c] sm:$0xf] }
  0xfd   : > { %v1802_v42 = vsel %vm10176_vm14, %v1797_v26, %v10199_v43  ;;  %v1913_v28 = vshll.u32 %v1663_v52, 16 }
  0xfe   : > { %8410 = vmatmul.mubr.msk.bf16.gmra.mrb[20].mxu0 %vm1044_vm11, %v10003_v60  ;;  %v1715_v60 = vrot.slane %v1713_v57, 5  ;;  %v1814_v57 = vshrl.u32 %v1651_v8, 16  ;;  %v10244_v8 = vld [vmem:[#allocation3 + $0x58] sm:$0xf]  ;;  %v1901_v26 = vrot.slane %v1899_v62, 4 }
  0xff   : > { %8413 = vmatprep.mubr.msk.bf16.mxu0 %vm1044_vm11, %v10014_v63  ;;  %v1875_v33 = vshrl.u32 %v10244_v8, 16  ;;  %v10299_v62 = vld [vmem:[#allocation3 + $0x7c] sm:$0xf] }
 0x100   : > { %v1716_v12 = vsel %vm10176_vm14, %v1711_v16, %v1715_v60  ;;  %v10216_v16 = vrot.slane %v1772_v25, 4  ;;  %v1809_v60 = vshll.u32 %v10206_v36, 16  ;;  %v1816_v1 = vrot.slane %v1814_v57, 4  ;;  %12061 = vst [vmem:[#allocation8_spill] sm:$0xff] %v10299_v62 }
 0x101   : > { %v7530_v37 = vcombine.low %v1706_v15, %v1716_v12  ;;  %v1657_v15 = vld [vmem:[#allocation3 + $0x54] sm:$0xf]  ;;  %v1877_v5 = vrot.slane %v1875_v33, 4  ;;  %v1666_v33 = vld [vmem:[#allocation3 + $0x78] sm:$0xf] }
 0x102   : > { %v1778_v35 = vsel %vm10176_vm14, %v10216_v16, %v10191_v21  ;;  %v1811_v18 = vrot.slane %v1809_v60, 5  ;;  %v1862_v57 = vshrl.u32 %v1657_v15, 16  ;;  %v1871_v21 = vshll.u32 %v10244_v8, 16 }
 0x103   : > { %v1854_v60 = vor.u32 %v1853_v30, %v10249_v29 }
 0x104   : > { %v10272_v43 = vrot.slane %v1871_v21, 5 }
 0x106   : > { %8414 = vmatmul.mubr.msk.bf16.gmra.mrb[24].mxu0 %vm1044_vm11, %v10016_v0  ;;  %v1823_v0 = vshll.u32 %v10193_v38, 16 }
 0x107   : > { %8417 = vmatprep.mubr.msk.bf16.mxu0 %vm1044_vm11, %v10022_v3  ;;  %v1754_v3 = vsel %vm10176_vm14, %v1749_v20, %v10166_v31  ;;  %v1819_v31 = vrot.slane %v1817_v32, 5  ;;  %v1660_v20 = vld [vmem:[#allocation3 + $0x60] sm:$0xf]  ;;  %v1865_v32 = vshll.u32 %v1657_v15, 16 }
 0x108   : > { %v10227_v61 = vrot.slane %v1823_v0, 5  ;;  %v10237_v12 = vcombine.low %v1754_v3, %v1764_v55  ;;  %v1886_v0 = vshrl.u32 %v1660_v20, 16  ;;  %v1889_v34 = vshll.u32 %v1660_v20, 16 }
 0x109   : > { %v1820_v25 = vor.u32 %v1819_v31, %v1816_v1  ;;  %v1895_v3 = vshll.u32 %v10247_v39, 16  ;;  %v1844_v55 = vor.u32 %v1843_v19, %v1840_v2  ;;  %v1864_v1 = vrot.slane %v1862_v57, 4  ;;  %v10294_v19 = vld [vmem:[#allocation3 + $0x68] sm:$0x1] }
 0x10a   : > { %v1830_v27 = vor.u32 %v1829_v48, %v10227_v61  ;;  %v1867_v31 = vrot.slane %v1865_v32, 5  ;;  %v10265_v48 = vld [vmem:[#allocation3 + $0x70] sm:$0xf]  ;;  %v1888_v7 = vrot.slane %v1886_v0, 4  ;;  %v1891_v40 = vrot.slane %v1889_v34, 5 }
 0x10b   : > { %v1821_v16 = vrot.slane %v1820_v25, 4  ;;  %12060 = vst [vmem:[#allocation7_spill] sm:$0xff] %v10265_v48  ;;  %v1919_v20 = vshll.u32 %v10265_v48, 16  ;;  %v1923_v25 = vshrl.u32 %v10265_v48, 16  ;;  %v1845_v30 = vrot.slane %v1844_v55, 4 }
 0x10c   : > { %v1831_v10 = vrot.slane %v1830_v27, 4  ;;  %v1868_v2 = vor.u32 %v1867_v31, %v1864_v1  ;;  %v1855_v57 = vrot.slane %v1854_v60, 4  ;;  %v1878_v32 = vor.u32 %v1877_v5, %v10272_v43  ;;  %v10308_v1 = vld [vmem:[#allocation3 + $0x74] sm:$0x1]  ;;  %v10395_v48 = vld [vmem:[#allocation3 + $0xb8] sm:$0xf] }
 0x10d   : > { %v1826_v27 = vsel %vm10176_vm14, %v1821_v16, %v10227_v61  ;;  %v1892_v21 = vor.u32 %v1891_v40, %v1888_v7  ;;  %v1905_v61 = vshll.u32 %v10294_v19, 16  ;;  %12062 = vst [vmem:[#allocation9_spill] sm:$0xff] %v10308_v1  ;;  %v1943_v31 = vshll.u32 %v10299_v62, 16 }
 0x10e   : > { %8418 = vmatmul.mubr.msk.bf16.gmra.mrb[28].mxu0 %vm1044_vm11, %v9520_v47  ;;  %v1812_v47 = vsel %vm10176_vm14, %v1807_v14, %v1811_v18  ;;  %v1910_v14 = vshrl.u32 %v1663_v52, 16  ;;  %v10281_v18 = vld [vmem:[#allocation3 + $0x5c] sm:$0x1]  ;;  %v1869_v16 = vrot.slane %v1868_v2, 4  ;;  %v1937_v52 = vshll.u32 %v1666_v33, 16 }
 0x10f   : > { %8423 = vmatprep.mubr.msk.bf16.mxu0 %vm1044_vm11, %v7530_v37  ;;  %v1788_v37 = vsel %vm10176_vm14, %v1783_v6, %v1787_v11  ;;  %v1857_v6 = vshll.u32 %v10262_v51, 16  ;;  %v10277_v11 = vrot.slane %v1895_v3, 5  ;;  %v1881_v34 = vshll.u32 %v10281_v18, 16 }
 0x110   : > { %v10279_v15 = vcombine.low %v1778_v35, %v1788_v37  ;;  %v1836_v35 = vsel %vm10176_vm14, %v1831_v10, %v1835_v56  ;;  %v1912_v3 = vrot.slane %v1910_v14, 4  ;;  %v1915_v56 = vrot.slane %v1913_v28, 5 }
 0x111   : > { %v1859_v0 = vrot.slane %v1857_v6, 5  ;;  %v1902_v37 = vor.u32 %v1901_v26, %v10277_v11  ;;  %v1934_v10 = vshrl.u32 %v1666_v33, 16  ;;  %v10306_v55 = vcombine.low %v1826_v27, %v1836_v35  ;;  %v1669_v27 = vld [vmem:[#allocation3 + $0x84] sm:$0xf]  ;;  %v10320_v35 = vld [vmem:[#allocation3 + $0x88] sm:$0xf] }
 0x112   : > { %v1893_v60 = vrot.slane %v1892_v21, 4  ;;  %v1947_v5 = vshrl.u32 %v10299_v62, 16  ;;  %v1850_v7 = vsel %vm10176_vm14, %v1845_v30, %v10249_v29  ;;  %v1879_v6 = vrot.slane %v1878_v32, 4  ;;  %12063 = vst [vmem:[#allocation10_spill] sm:$0xff] %v10320_v35 }
 0x113   : > { %v1860_v40 = vsel %vm10176_vm14, %v1855_v57, %v1859_v0  ;;  %v1883_v26 = vrot.slane %v1881_v34, 5  ;;  %v1903_v14 = vrot.slane %v1902_v37, 4  ;;  %v1907_v28 = vrot.slane %v1905_v61, 5  ;;  %v1672_v34 = vld [vmem:[#allocation3 + $0x90] sm:$0xf] }
 0x114   : > { %v1874_v2 = vsel %vm10176_vm14, %v1869_v16, %v10272_v43  ;;  %v1929_v21 = vshll.u32 %v10308_v1, 16  ;;  %v1936_v29 = vrot.slane %v1934_v10, 4  ;;  %v1939_v30 = vrot.slane %v1937_v52, 5  ;;  %v10333_v37 = vld [vmem:[#allocation3 + $0x94] sm:$0xf] }
 0x115   : > { %v10326_v33 = vcombine.low %v1850_v7, %v1860_v40  ;;  %v1898_v57 = vsel %vm10176_vm14, %v1893_v60, %v10277_v11  ;;  %v10331_v32 = vrot.slane %v1943_v31, 5  ;;  %v1949_v0 = vrot.slane %v1947_v5, 4  ;;  %12064 = vst [vmem:[#allocation11_spill] sm:$0xff] %v10333_v37 }
 0x116   : > { %8424 = vmatmul.mubr.msk.bf16.vlgmr.msra.gmra.mrb[0].mxu0 %vm1044_vm11, %v10229_v9  ;;  %v1958_v61 = vshrl.u32 %v1669_v27, 16  ;;  %v1961_v43 = vshll.u32 %v1669_v27, 16  ;;  %v1884_v16 = vsel %vm10176_vm14, %v1879_v6, %v1883_v26  ;;  %v1908_v11 = vsel %vm10176_vm14, %v1903_v14, %v1907_v28 }
 0x117   : > { %8456 = vmatpush3.bf16.msra.mxu0 %v2404_v17  ;;  %8427 = vmatprep.mubr.msk.bf16.mxu0 %vm1044_vm11, %v10237_v12  ;;  %v10287_v17 = vcombine.low %v1802_v42, %v1812_v47  ;;  %v10302_v42 = vrot.slane %v1919_v20, 5  ;;  %v1925_v47 = vrot.slane %v1923_v25, 4  ;;  %v1916_v20 = vor.u32 %v1915_v56, %v1912_v3  ;;  %v10335_v3 = vld [vmem:[#allocation3 + $0x80] sm:$0x1] }
 0x118   : > { %9448 = vmatprep.subr.msk.bf16.mxu0 %vm1093_vm2, %v10268_v45  ;;  %12065 = vst [vmem:[#allocation12_spill] sm:$0xff] %v10335_v3  ;;  %v1967_v56 = vshll.u32 %v10320_v35, 16  ;;  %v1931_v60 = vrot.slane %v1929_v21, 5  ;;  %v1940_v31 = vor.u32 %v1939_v30, %v1936_v29  ;;  %v1982_v5 = vshrl.u32 %v1672_v34, 16  ;;  %v10360_v30 = vld [vmem:[#allocation3 + $0x8c] sm:$0x1] }
 0x119   : > { %v1926_v25 = vor.u32 %v1925_v47, %v10302_v42  ;;  %v1971_v47 = vshrl.u32 %v10320_v35, 16  ;;  %v1917_v10 = vrot.slane %v1916_v20, 4  ;;  %v1985_v7 = vshll.u32 %v1672_v34, 16  ;;  %12066 = vst [vmem:[#allocation13_spill] sm:$0xff] %v10360_v30 }
 0x11a   : > { %v1950_v40 = vor.u32 %v1949_v0, %v10331_v32  ;;  %v1953_v27 = vshll.u32 %v10335_v3, 16  ;;  %v1991_v54 = vshll.u32 %v10333_v37, 16  ;;  %v1995_v6 = vshrl.u32 %v10333_v37, 16 }
 0x11b   : > { %v1927_v52 = vrot.slane %v1926_v25, 4  ;;  %v1960_v26 = vrot.slane %v1958_v61, 4  ;;  %v1963_v14 = vrot.slane %v1961_v43, 5  ;;  %v10351_v28 = vrot.slane %v1967_v56, 5 }
 0x11c   : > { %v1973_v20 = vrot.slane %v1971_v47, 4  ;;  %v10353_v25 = vcombine.low %v1874_v2, %v1884_v16  ;;  %v10355_v21 = vcombine.low %v1898_v57, %v1908_v11  ;;  %v1922_v29 = vsel %vm10176_vm14, %v1917_v10, %v10302_v42  ;;  %v1675_v47 = vld [vmem:[#allocation3 + $0x9c] sm:$0xf]  ;;  %v10369_v42 = vld [vmem:[#allocation3 + $0xa0] sm:$0xf] }
 0x11d   : > { %v1984_v0 = vrot.slane %v1982_v5, 4  ;;  %v1987_v34 = vrot.slane %v1985_v7, 5  ;;  %v1932_v44 = vsel %vm10176_vm14, %v1927_v52, %v1931_v60  ;;  %v1941_v61 = vrot.slane %v1940_v31, 4  ;;  %12068 = vst [vmem:[#allocation15_spill] sm:$0xff] %v10369_v42  ;;  %v10374_v31 = vld [vmem:[#allocation3 + $0xac] sm:$0xf] }
 0x11e   : > { %8428 = vmatmul.mubr.msk.bf16.gmra.mrb[4].mxu0 %vm1044_vm11, %v10279_v15  ;;  %v10364_v43 = vrot.slane %v1991_v54, 5  ;;  %v1997_v56 = vrot.slane %v1995_v6, 4  ;;  %v1951_v2 = vrot.slane %v1950_v40, 4  ;;  %v1955_v16 = vrot.slane %v1953_v27, 5  ;;  %v1678_v54 = vld [vmem:[#allocation3 + $0xa8] sm:$0xf] }
 0x11f   : > { %8431 = vmatprep.mubr.msk.bf16.mxu0 %vm1044_vm11, %v10287_v17  ;;  %v1964_v57 = vor.u32 %v1963_v14, %v1960_v26  ;;  %v1974_v11 = vor.u32 %v1973_v20, %v10351_v28  ;;  %v1977_v10 = vshll.u32 %v10360_v30, 16  ;;  %v10372_v5 = vcombine.low %v1922_v29, %v1932_v44  ;;  %12069 = vst [vmem:[#allocation16_spill] sm:$0xff] %v10374_v31 }
 0x120   : > { %v1988_v7 = vor.u32 %v1987_v34, %v1984_v0  ;;  %v2006_v52 = vshrl.u32 %v1675_v47, 16  ;;  %v2009_v60 = vshll.u32 %v1675_v47, 16  ;;  %v1998_v40 = vor.u32 %v1997_v56, %v10364_v43 }
 0x121   : > { %v2001_v27 = vshll.u32 %v10367_v50, 16  ;;  %v2015_v6 = vshll.u32 %v10369_v42, 16  ;;  %v2019_v26 = vshrl.u32 %v10369_v42, 16  ;;  %v1946_v44 = vsel %vm10176_vm14, %v1941_v61, %v10331_v32  ;;  %v10393_v61 = vld [vmem:[#allocation3 + $0xa4] sm:$0x1] }
 0x122   : > { %v1956_v14 = vsel %vm10176_vm14, %v1951_v2, %v1955_v16  ;;  %v1965_v20 = vrot.slane %v1964_v57, 4  ;;  %v1975_v29 = vrot.slane %v1974_v11, 4  ;;  %v2030_v0 = vshrl.u32 %v1678_v54, 16  ;;  %12070 = vst [vmem:[#allocation17_spill] sm:$0xff] %v10393_v61  ;;  %v1681_v2 = vld [vmem:[#allocation3 + $0xb4] sm:$0xf] }
 0x123   : > { %v2033_v34 = vshll.u32 %v1678_v54, 16  ;;  %v2039_v56 = vshll.u32 %v10374_v31, 16  ;;  %v2043_v47 = vshrl.u32 %v10374_v31, 16  ;;  %v1979_v50 = vrot.slane %v1977_v10, 5  ;;  %v10421_v31 = vld [vmem:[#allocation3 + $0xbc] sm:$0x1] }
 0x124   : > { %v1989_v42 = vrot.slane %v1988_v7, 4  ;;  %v2008_v30 = vrot.slane %v2006_v52, 4  ;;  %v2011_v37 = vrot.slane %v2009_v60, 5  ;;  %v1999_v35 = vrot.slane %v1998_v40, 4  ;;  %v10405_v60 = vld [vmem:[#allocation3 + $0xb0] sm:$0x1] }
 0x125   : > { %v2003_v3 = vrot.slane %v2001_v27, 5  ;;  %v2017_v1 = vrot.slane %v2015_v6, 5  ;;  %v2021_v62 = vrot.slane %v2019_v26, 4  ;;  %v10391_v32 = vcombine.low %v1946_v44, %v1956_v14 }
 0x126   : > { %8432 = vmatmul.mubr.msk.bf16.gmra.mrb[8].mxu0 %vm1044_vm11, %v10306_v55  ;;  %v2032_v16 = vrot.slane %v2030_v0, 4  ;;  %v2035_v57 = vrot.slane %v2033_v34, 5  ;;  %v2041_v11 = vrot.slane %v2039_v56, 5  ;;  %v2045_v54 = vrot.slane %v2043_v47, 4 }
 0x127   : > { %8435 = vmatprep.mubr.msk.bf16.mxu0 %vm1044_vm11, %v10326_v33  ;;  %v1970_v10 = vsel %vm10176_vm14, %v1965_v20, %v10351_v28  ;;  %v1980_v7 = vsel %vm10176_vm14, %v1975_v29, %v1979_v50  ;;  %v1994_v52 = vsel %vm10176_vm14, %v1989_v42, %v10364_v43  ;;  %v2004_v40 = vsel %vm10176_vm14, %v1999_v35, %v2003_v3 }
 0x128   : > { %v2012_v27 = vor.u32 %v2011_v37, %v2008_v30  ;;  %v2022_v6 = vor.u32 %v2021_v62, %v2017_v1  ;;  %v2025_v26 = vshll.u32 %v10393_v61, 16  ;;  %v2054_v50 = vshrl.u32 %v1681_v2, 16 }
 0x129   : > { %v2057_v28 = vshll.u32 %v1681_v2, 16  ;;  %v2063_v44 = vshll.u32 %v10395_v48, 16  ;;  %v2067_v43 = vshrl.u32 %v10395_v48, 16  ;;  %v2036_v42 = vor.u32 %v2035_v57, %v2032_v16 }
 0x12a   : > { %v2046_v14 = vor.u32 %v2045_v54, %v2041_v11  ;;  %v2049_v20 = vshll.u32 %v10405_v60, 16  ;;  %v10417_v29 = vcombine.low %v1970_v10, %v1980_v7  ;;  %v10419_v35 = vcombine.low %v1994_v52, %v2004_v40 }
 0x12b   : > { %v2013_v62 = vrot.slane %v2012_v27, 4  ;;  %v2023_v37 = vrot.slane %v2022_v6, 4  ;;  %v2027_v3 = vrot.slane %v2025_v26, 5  ;;  %v2056_v30 = vrot.slane %v2054_v50, 4 }
 0x12c   : > { %v2059_v0 = vrot.slane %v2057_v28, 5  ;;  %v2065_v34 = vrot.slane %v2063_v44, 5  ;;  %v2069_v56 = vrot.slane %v2067_v43, 4  ;;  %v2037_v47 = vrot.slane %v2036_v42, 4  ;;  %v7614_v43 = vld [vmem:[%s9683_s6 + $0x8] sm:$0xf] }
 0x12d   : > { %v2047_v2 = vrot.slane %v2046_v14, 4  ;;  %v2051_v61 = vrot.slane %v2049_v20, 5  ;;  %v2018_v16 = vsel %vm10176_vm14, %v2013_v62, %v2017_v1  ;;  %v2028_v57 = vsel %vm10176_vm14, %v2023_v37, %v2027_v3 }
 0x12e   : > { %8436 = vmatmul.mubr.msk.bf16.gmra.mrb[12].mxu0 %vm1044_vm11, %v10353_v25  ;;  %v2060_v54 = vor.u32 %v2059_v0, %v2056_v30  ;;  %v2070_v10 = vor.u32 %v2069_v56, %v2065_v34  ;;  %v2073_v7 = vshll.u32 %v10421_v31, 16  ;;  %v2042_v52 = vsel %vm10176_vm14, %v2037_v47, %v2041_v11 }
 0x12f   : > { %8439 = vmatprep.mubr.msk.bf16.mxu0 %vm1044_vm11, %v10355_v21  ;;  %v2052_v40 = vsel %vm10176_vm14, %v2047_v2, %v2051_v61  ;;  %v10436_v27 = vcombine.low %v2018_v16, %v2028_v57  ;;  %v2632_v44 = vsel %vm1093_vm2, %v10268_v45, 0  ;;  %v10474_v45 = vld [vmem:[#allocation3 + $0xc4] sm:$0xf] }
 0x130   : > { %v10438_v1 = vcombine.low %v2042_v52, %v2052_v40  ;;  %v2061_v6 = vrot.slane %v2060_v54, 4  ;;  %v2071_v26 = vrot.slane %v2070_v10, 4  ;;  %v2075_v50 = vrot.slane %v2073_v7, 5 }
 0x131   : > { %v2381_v20 = vshll.u32 %v10474_v45, 16  ;;  %v2385_v62 = vshrl.u32 %v10474_v45, 16  ;;  %v3107_v40 = vsel %vm1093_vm2, %v7614_v43, 0 }
 0x132   : > { %v2066_v28 = vsel %vm10176_vm14, %v2061_v6, %v2065_v34  ;;  %v2076_v11 = vsel %vm10176_vm14, %v2071_v26, %v2075_v50  ;;  %v10482_v34 = vld [vmem:[#allocation3 + $0xc8] sm:$0x1]  ;;  %v10502_v6 = vld [vmem:[%s9683_s6 + $0x14] sm:$0xf] }
 0x133   : > { %v10448_v61 = vcombine.low %v2066_v28, %v2076_v11  ;;  %v2383_v30 = vrot.slane %v2381_v20, 5  ;;  %v2387_v0 = vrot.slane %v2385_v62, 4  ;;  %v2391_v2 = vshll.u32 %v10482_v34, 16 }
 0x134   : > { %v2898_v11 = vrot.slane %v10131_v23, 5  ;;  %v2901_v62 = vrot.slane %v10143_v13, 5 }
 0x135   : > { %v2388_v47 = vor.u32 %v2387_v0, %v2383_v30  ;;  %v2393_v54 = vrot.slane %v2391_v2, 5  ;;  %v2912_v0 = vrot.slane %v10147_v24, 5 }
 0x136   : > { %8440 = vmatmul.mubr.msk.bf16.gmra.mrb[16].mxu0 %vm1044_vm11, %v10372_v5  ;;  %v2900_v20 = vrot.slane %v2898_v11, 4 }
 0x137   : > { %8443 = vmatprep.mubr.msk.bf16.mxu0 %vm1044_vm11, %v10391_v32  ;;  %v2389_v57 = vrot.slane %v2388_v47, 4 }
 0x139   : > { %v2394_v7 = vsel %vm10176_vm14, %v2389_v57, %v2393_v54  ;;  %v2908_v57 = vrot.slane %v10156_v41, 5 }
 0x13e   : > { %8444 = vmatmul.mubr.msk.bf16.gmra.mrb[20].mxu0 %vm1044_vm11, %v10417_v29 }
 0x13f   : > { %8447 = vmatprep.mubr.msk.bf16.mxu0 %vm1044_vm11, %v10419_v35 }
 0x146   : > { %8448 = vmatmul.mubr.msk.bf16.gmra.mrb[24].mxu0 %vm1044_vm11, %v10436_v27 }
 0x147   : > { %8451 = vmatprep.mubr.msk.bf16.mxu0 %vm1044_vm11, %v10438_v1 }
 0x14e   : > { %8452 = vmatmul.mubr.msk.bf16.gmra.mrb[28].mxu0 %vm1044_vm11, %v10448_v61 }
 0x14f   : > { %8457 = vmatprep.mubr.msk.bf16.mxu0 %vm1044_vm11, %v10229_v9  ;;  %v1684_v9 = vld [vmem:[#allocation3 + $0xc0] sm:$0xf] }
 0x150   : > { %v2372_v42 = vshrl.u32 %v1684_v9, 16  ;;  %v2375_v14 = vshll.u32 %v1684_v9, 16 }
 0x152   : > { %v2374_v37 = vrot.slane %v2372_v42, 4  ;;  %v2377_v3 = vrot.slane %v2375_v14, 5 }
 0x154   : > { %v2378_v56 = vor.u32 %v2377_v3, %v2374_v37  ;;  %v2905_v37 = vrot.slane %v10135_v46, 5  ;;  %v2902_v3 = vsel %vm10539_vm1, %v2900_v20, %v2901_v62  ;;  %v2915_v46 = vrot.slane %v10172_v59, 5  ;;  %v2830_v59 = vld [vmem:[#allocation3 + $0x24] sm:$0xe] }
 0x156   : > { %8458 = vmatmul.mubr.msk.bf16.vlgmr.msra.gmra.mrb[0].mxu0 %vm1044_vm11, %v10237_v12  ;;  %v2379_v16 = vrot.slane %v2378_v56, 4 }
 0x157   : > { %8490 = vmatpush3.bf16.msra.mxu0 %v2632_v44  ;;  %8461 = vmatprep.mubr.msk.bf16.mxu0 %vm1044_vm11, %v10279_v15  ;;  %v2827_v44 = vld [vmem:[#allocation3] sm:$0xe] }
 0x158   : > { %9449 = vmatprep.subr.msk.bf16.mxu0 %vm1093_vm2, %v7614_v43  ;;  %v2384_v10 = vsel %vm10176_vm14, %v2379_v16, %v2383_v30  ;;  %v7598_v14 = vrot.slane %v2827_v44, 9  ;;  %v2828_v30 = vld [vmem:[#allocation3 + $0xc] sm:$0xe]  ;;  %v2907_v16 = vrot.slane %v2905_v37, 4  ;;  %v2940_v44 = vrot.slane %v10220_v53, 5 }
 0x159   : > { %v7563_v52 = vcombine.low %v2384_v10, %v2394_v7  ;;  %v7599_v2 = vrot.slane %v2828_v30, 9  ;;  %v2914_v10 = vrot.slane %v2912_v0, 4  ;;  %v2954_v30 = vrot.slane %v10247_v39, 5 }
 0x15a   : > { %v2899_v13 = vsel %vm10539_vm1, %v7598_v14, %v2898_v11  ;;  %v2909_v24 = vsel %vm10539_vm1, %v2907_v16, %v2908_v57  ;;  %v2832_v11 = vld [vmem:[#allocation3 + $0x3c] sm:$0xe]  ;;  %v2950_v16 = vrot.slane %v10281_v18, 5 }
 0x15b   : > { %v7615_v47 = vcombine.low %v2899_v13, %v2902_v3  ;;  %v2906_v7 = vsel %vm10539_vm1, %v7599_v2, %v2905_v37  ;;  %v7603_v14 = vrot.slane %v2832_v11, 9  ;;  %v2947_v13 = vrot.slane %v10244_v8, 5  ;;  %v2834_v3 = vld [vmem:[#allocation3 + $0x54] sm:$0xe] }
 0x15c   : > { %v2956_v8 = vrot.slane %v2954_v30, 4 }
 0x15d   : > { %v2949_v2 = vrot.slane %v2947_v13, 4 }
 0x15e   : > { %8462 = vmatmul.mubr.msk.bf16.gmra.mrb[4].mxu0 %vm1044_vm11, %v10287_v17 }
 0x15f   : > { %8465 = vmatprep.mubr.msk.bf16.mxu0 %vm1044_vm11, %v10306_v55 }
 0x166   : > { %8466 = vmatmul.mubr.msk.bf16.gmra.mrb[8].mxu0 %vm1044_vm11, %v10326_v33 }
 0x167   : > { %8469 = vmatprep.mubr.msk.bf16.mxu0 %vm1044_vm11, %v10353_v25 }
 0x16e   : > { %8470 = vmatmul.mubr.msk.bf16.gmra.mrb[12].mxu0 %vm1044_vm11, %v10355_v21 }
 0x16f   : > { %8473 = vmatprep.mubr.msk.bf16.mxu0 %vm1044_vm11, %v10372_v5 }
 0x176   : > { %8474 = vmatmul.mubr.msk.bf16.gmra.mrb[16].mxu0 %vm1044_vm11, %v10391_v32 }
 0x177   : > { %8477 = vmatprep.mubr.msk.bf16.mxu0 %vm1044_vm11, %v10417_v29 }
 0x17e   : > { %8478 = vmatmul.mubr.msk.bf16.gmra.mrb[20].mxu0 %vm1044_vm11, %v10419_v35 }
 0x17f   : > { %8481 = vmatprep.mubr.msk.bf16.mxu0 %vm1044_vm11, %v10436_v27 }
 0x186   : > { %8482 = vmatmul.mubr.msk.bf16.gmra.mrb[24].mxu0 %vm1044_vm11, %v10438_v1 }
 0x187   : > { %8485 = vmatprep.mubr.msk.bf16.mxu0 %vm1044_vm11, %v10448_v61 }
 0x18e   : > { %8486 = vmatmul.mubr.msk.bf16.gmra.mrb[28].mxu0 %vm1044_vm11, %v7563_v52 }
 0x18f   : > { %8491 = vmatprep.mubr.msk.bf16.mxu0 %vm1044_vm11, %v10237_v12  ;;  %v1687_v12 = vld [vmem:[#allocation3 + $0xcc] sm:$0xf] }
 0x196   : > { %8492 = vmatmul.mubr.msk.bf16.vlgmr.msra.gmra.mrb[0].mxu0 %vm1044_vm11, %v10279_v15  ;;  %v10522_v15 = vld [vmem:[#allocation3 + $0xd0] sm:$0xf] }
 0x197   : > { %8524 = vmatpush3.bf16.msra.mxu0 %v3107_v40  ;;  %8495 = vmatprep.mubr.msk.bf16.mxu0 %vm1044_vm11, %v10287_v17  ;;  %v2600_v17 = vshrl.u32 %v1687_v12, 16  ;;  %v2916_v40 = vsel %vm10539_vm1, %v2914_v10, %v2915_v46  ;;  %v2951_v10 = vsel %vm10539_vm1, %v2949_v2, %v2950_v16  ;;  %v12074_v46 = vld [vmem:[#allocation7_spill] sm:$0xff] }
 0x198   : > { %9450 = vmatprep.subr.msk.bf16.mxu0 %vm1093_vm2, %v10502_v6 }
 0x19e   : > { %8496 = vmatmul.mubr.msk.bf16.gmra.mrb[4].mxu0 %vm1044_vm11, %v10306_v55  ;;  %v2603_v55 = vshll.u32 %v1687_v12, 16  ;;  %v2926_v12 = vrot.slane %v10168_v58, 5 }
 0x19f   : > { %8499 = vmatprep.mubr.msk.bf16.mxu0 %vm1044_vm11, %v10326_v33  ;;  %v2609_v33 = vshll.u32 %v10522_v15, 16 }
 0x1a1   : > { %v2611_v26 = vrot.slane %v2609_v33, 5 }
 0x1a6   : > { %8500 = vmatmul.mubr.msk.bf16.gmra.mrb[8].mxu0 %vm1044_vm11, %v10353_v25  ;;  %v2613_v25 = vshrl.u32 %v10522_v15, 16 }
 0x1a7   : > { %8503 = vmatprep.mubr.msk.bf16.mxu0 %vm1044_vm11, %v10355_v21  ;;  %v2602_v21 = vrot.slane %v2600_v17, 4  ;;  %v2831_v17 = vld [vmem:[#allocation3 + $0x30] sm:$0xe] }
 0x1a8   : > { %v2615_v50 = vrot.slane %v2613_v25, 4  ;;  %v7601_v25 = vrot.slane %v2830_v59, 9 }
 0x1ae   : > { %8504 = vmatmul.mubr.msk.bf16.gmra.mrb[12].mxu0 %vm1044_vm11, %v10372_v5  ;;  %v2605_v5 = vrot.slane %v2603_v55, 5  ;;  %v10570_v55 = vcombine.low %v2906_v7, %v2909_v24  ;;  %v2961_v7 = vrot.slane %v12074_v46, 5  ;;  %v2836_v24 = vld [vmem:[#allocation3 + $0x6c] sm:$0xe] }
 0x1af   : > { %8507 = vmatprep.mubr.msk.bf16.mxu0 %vm1044_vm11, %v10391_v32  ;;  %v10530_v32 = vld [vmem:[#allocation3 + $0xd4] sm:$0x1] }
 0x1b0   : > { %v2619_v28 = vshll.u32 %v10530_v32, 16 }
 0x1b2   : > { %v2621_v42 = vrot.slane %v2619_v28, 5 }
 0x1b6   : > { %8508 = vmatmul.mubr.msk.bf16.gmra.mrb[16].mxu0 %vm1044_vm11, %v10417_v29  ;;  %v2606_v29 = vor.u32 %v2605_v5, %v2602_v21  ;;  %v2922_v5 = vrot.slane %v10197_v22, 5 }
 0x1b7   : > { %8511 = vmatprep.mubr.msk.bf16.mxu0 %vm1044_vm11, %v10419_v35  ;;  %v2616_v35 = vor.u32 %v2615_v50, %v2611_v26  ;;  %v2928_v50 = vrot.slane %v2926_v12, 4 }
 0x1b8   : > { %v2607_v43 = vrot.slane %v2606_v29, 4  ;;  %v2929_v29 = vrot.slane %v10206_v36, 5 }
 0x1b9   : > { %v2617_v9 = vrot.slane %v2616_v35, 4  ;;  %v10579_v35 = vld [vmem:[%s9683_s6 + $0x20] sm:$0xf] }
 0x1ba   : > { %v2612_v23 = vsel %vm10176_vm14, %v2607_v43, %v2611_v26  ;;  %v7602_v26 = vrot.slane %v2831_v17, 9  ;;  %v2930_v28 = vsel %vm10539_vm1, %v2928_v50, %v2929_v29  ;;  %v2833_v43 = vld [vmem:[#allocation3 + $0x48] sm:$0xe]  ;;  %v7607_v17 = vrot.slane %v2836_v24, 9  ;;  %v12077_v50 = vld [vmem:[#allocation12_spill] sm:$0xff]  ;;  %v12084_v24 = vld [vmem:[#allocation17_spill] sm:$0xff] }
 0x1bb   : > { %v7604_v62 = vrot.slane %v2833_v43, 9  ;;  %v2971_v29 = vrot.slane %v12077_v50, 5  ;;  %v12079_v43 = vld [vmem:[#allocation11_spill] sm:$0xff] }
 0x1bc   : > { %v2927_v36 = vsel %vm10539_vm1, %v7602_v26, %v2926_v12  ;;  %v2842_v50 = vld [vmem:[#allocation3 + $0xb4] sm:$0xe] }
 0x1be   : > { %8512 = vmatmul.mubr.msk.bf16.gmra.mrb[20].mxu0 %vm1044_vm11, %v10436_v27  ;;  %v12071_v27 = vmov 0 }
 0x1bf   : > { %8515 = vmatprep.mubr.msk.bf16.mxu0 %vm1044_vm11, %v10438_v1  ;;  %v12072_v27 = vsel %vm10539_vm1, 4294967295, %v12071_v27  ;;  %v2622_v1 = vsel %vm10176_vm14, %v2617_v9, %v2621_v42  ;;  %v10599_v42 = vcombine.low %v2927_v36, %v2930_v28 }
 0x1c0   : > { %12073 = vst [vmem:[#allocation18_spill] sm:$0xff] %v12072_v27  ;;  %v7581_v56 = vcombine.low %v2612_v23, %v2622_v1  ;;  %v2942_v23 = vrot.slane %v2940_v44, 4  ;;  %v2943_v1 = vrot.slane %v10262_v51, 5 }
 0x1c2   : > { %v2944_v51 = vsel %vm10539_vm1, %v2942_v23, %v2943_v1 }
 0x1c6   : > { %8516 = vmatmul.mubr.msk.bf16.gmra.mrb[24].mxu0 %vm1044_vm11, %v10448_v61  ;;  %v2829_v61 = vld [vmem:[#allocation3 + $0x18] sm:$0xe] }
 0x1c7   : > { %8519 = vmatprep.mubr.msk.bf16.mxu0 %vm1044_vm11, %v7563_v52  ;;  %v7600_v54 = vrot.slane %v2829_v61, 9  ;;  %v2919_v52 = vrot.slane %v10160_v49, 5  ;;  %v3321_v49 = vsel %vm1093_vm2, %v10502_v6, 0  ;;  %v2933_v6 = vrot.slane %v10193_v38, 5 }
 0x1c8   : > { %v2936_v38 = vrot.slane %v10225_v4, 5  ;;  %v2941_v4 = vsel %vm10539_vm1, %v7604_v62, %v2940_v44  ;;  %v2838_v44 = vld [vmem:[#allocation3 + $0x84] sm:$0xe] }
 0x1c9   : > { %v2913_v41 = vsel %vm10539_vm1, %v7600_v54, %v2912_v0  ;;  %v2921_v21 = vrot.slane %v2919_v52, 4  ;;  %v2920_v58 = vsel %vm10539_vm1, %v7601_v25, %v2919_v52  ;;  %v2935_v20 = vrot.slane %v2933_v6, 4  ;;  %v2835_v0 = vld [vmem:[#allocation3 + $0x60] sm:$0xe]  ;;  %v12075_v52 = vld [vmem:[#allocation8_spill] sm:$0xff] }
 0x1ca   : > { %v10572_v33 = vcombine.low %v2913_v41, %v2916_v40  ;;  %v2934_v53 = vsel %vm10539_vm1, %v7603_v14, %v2933_v6  ;;  %v7606_v57 = vrot.slane %v2835_v0, 9  ;;  %v2957_v54 = vrot.slane %v10294_v19, 5  ;;  %v2837_v40 = vld [vmem:[#allocation3 + $0x78] sm:$0xe]  ;;  %v12078_v6 = vld [vmem:[#allocation10_spill] sm:$0xff] }
 0x1cb   : > { %v2923_v22 = vsel %vm10539_vm1, %v2921_v21, %v2922_v5  ;;  %v2937_v37 = vsel %vm10539_vm1, %v2935_v20, %v2936_v38  ;;  %v2968_v41 = vrot.slane %v12075_v52, 5  ;;  %v2963_v25 = vrot.slane %v2961_v7, 4  ;;  %v12076_v21 = vld [vmem:[#allocation9_spill] sm:$0xff]  ;;  %v2839_v20 = vld [vmem:[#allocation3 + $0x90] sm:$0xe] }
 0x1cc   : > { %v10597_v9 = vcombine.low %v2920_v58, %v2923_v22  ;;  %v10617_v61 = vcombine.low %v2934_v53, %v2937_v37  ;;  %v2955_v18 = vsel %vm10539_vm1, %v7606_v57, %v2954_v30  ;;  %v2958_v19 = vsel %vm10539_vm1, %v2956_v8, %v2957_v54  ;;  %v12080_v53 = vld [vmem:[#allocation13_spill] sm:$0xff]  ;;  %v2840_v8 = vld [vmem:[#allocation3 + $0x9c] sm:$0xe] }
 0x1cd   : > { %v10639_v12 = vcombine.low %v2955_v18, %v2958_v19  ;;  %v2964_v5 = vrot.slane %v12076_v21, 5  ;;  %v2970_v26 = vrot.slane %v2968_v41, 4  ;;  %v2962_v58 = vsel %vm10539_vm1, %v7607_v17, %v2961_v7  ;;  %v12083_v54 = vld [vmem:[#allocation16_spill] sm:$0xff] }
 0x1ce   : > { %8520 = vmatmul.mubr.msk.bf16.gmra.mrb[28].mxu0 %vm1044_vm11, %v7581_v56  ;;  %v10619_v56 = vcombine.low %v2941_v4, %v2944_v51  ;;  %v2975_v36 = vrot.slane %v12078_v6, 5  ;;  %v2982_v14 = vrot.slane %v12079_v43, 5  ;;  %v7609_v23 = vrot.slane %v2838_v44, 9  ;;  %v12081_v51 = vld [vmem:[#allocation14_spill] sm:$0xff] }
 0x1cf   : > { %8525 = vmatprep.mubr.msk.bf16.mxu0 %vm1044_vm11, %v7615_v47  ;;  %v7605_v47 = vrot.slane %v2834_v3, 9  ;;  %v2965_v22 = vsel %vm10539_vm1, %v2963_v25, %v2964_v5  ;;  %v2972_v11 = vsel %vm10539_vm1, %v2970_v26, %v2971_v29  ;;  %v2978_v37 = vrot.slane %v12080_v53, 5 }
 0x1d0   : > { %v10657_v38 = vcombine.low %v2962_v58, %v2965_v22  ;;  %v2977_v1 = vrot.slane %v2975_v36, 4  ;;  %v2984_v4 = vrot.slane %v2982_v14, 4  ;;  %v2985_v3 = vrot.slane %v12081_v51, 5 }
 0x1d1   : > { %v2948_v39 = vsel %vm10539_vm1, %v7605_v47, %v2947_v13  ;;  %v7610_v13 = vrot.slane %v2839_v20, 9  ;;  %v2976_v30 = vsel %vm10539_vm1, %v7609_v23, %v2975_v36  ;;  %v12082_v47 = vld [vmem:[#allocation15_spill] sm:$0xff]  ;;  %v7611_v18 = vrot.slane %v2840_v8, 9 }
 0x1d2   : > { %v10637_v59 = vcombine.low %v2948_v39, %v2951_v10  ;;  %v2979_v0 = vsel %vm10539_vm1, %v2977_v1, %v2978_v37  ;;  %v2989_v2 = vrot.slane %v12082_v47, 5  ;;  %v2986_v57 = vsel %vm10539_vm1, %v2984_v4, %v2985_v3  ;;  %v2841_v10 = vld [vmem:[#allocation3 + $0xa8] sm:$0xe] }
 0x1d3   : > { %v2983_v16 = vsel %vm10539_vm1, %v7610_v13, %v2982_v14  ;;  %v2996_v39 = vrot.slane %v12083_v54, 5  ;;  %v7626_v46 = vcombine.low %v2976_v30, %v2979_v0  ;;  %v2992_v52 = vrot.slane %v12084_v24, 5 }
 0x1d4   : > { %v7627_v7 = vcombine.low %v2983_v16, %v2986_v57  ;;  %v2991_v19 = vrot.slane %v2989_v2, 4  ;;  %v2999_v17 = vrot.slane %v10405_v60, 5  ;;  %v2990_v25 = vsel %vm10539_vm1, %v7611_v18, %v2989_v2 }
 0x1d5   : > { %v3003_v5 = vrot.slane %v10395_v48, 5  ;;  %v7613_v58 = vrot.slane %v2842_v50, 9  ;;  %v3006_v6 = vrot.slane %v10421_v31, 5  ;;  %v3307_v31 = vrot.slane %v10474_v45, 5 }
 0x1d6   : > { %8526 = vmatmul.mubr.msk.bf16.vlgmr.msra.gmra.mrb[0].mxu0 %vm1044_vm11, %v10570_v55  ;;  %v2993_v21 = vsel %vm10539_vm1, %v2991_v19, %v2992_v52  ;;  %v3310_v43 = vrot.slane %v10482_v34, 5  ;;  %v3521_v45 = vrot.slane %v10522_v15, 5  ;;  %v2844_v34 = vld [vmem:[#allocation3 + $0xcc] sm:$0xe]  ;;  %v7719_v15 = vld [vmem:[%s9683_s6 + $0x30] sm:$0xf] }
 0x1d7   : > { %8558 = vmatpush3.bf16.msra.mxu0 %v3321_v49  ;;  %8529 = vmatprep.mubr.msk.bf16.mxu0 %vm1044_vm11, %v10572_v33  ;;  %v7608_v49 = vrot.slane %v2837_v40, 9  ;;  %v2998_v40 = vrot.slane %v2996_v39, 4  ;;  %v7628_v60 = vcombine.low %v2990_v25, %v2993_v21  ;;  %v3005_v22 = vrot.slane %v3003_v5, 4 }
 0x1d8   : > { %9451 = vmatprep.subr.msk.bf16.mxu0 %vm1093_vm2, %v10579_v35  ;;  %v3004_v48 = vsel %vm10539_vm1, %v7613_v58, %v3003_v5  ;;  %v3309_v44 = vrot.slane %v3307_v31, 4  ;;  %9452 = vmatprep.subr.msk.bf16.mxu1 %vm1093_vm2, %v7719_v15 }
 0x1d9   : > { %v2969_v28 = vsel %vm10539_vm1, %v7608_v49, %v2968_v41  ;;  %v7612_v41 = vrot.slane %v2841_v10, 9  ;;  %v3000_v26 = vsel %vm10539_vm1, %v2998_v40, %v2999_v17  ;;  %v3007_v36 = vsel %vm10539_vm1, %v3005_v22, %v3006_v6  ;;  %v4223_v17 = vld [vmem:[#allocation3 + $0x18] sm:$0xf] }
 0x1da   : > { %v10659_v62 = vcombine.low %v2969_v28, %v2972_v11  ;;  %v7630_v28 = vcombine.low %v3004_v48, %v3007_v36  ;;  %v3535_v11 = vsel %vm1093_vm2, %v10579_v35, 0  ;;  %v3311_v20 = vsel %vm10539_vm1, %v3309_v44, %v3310_v43 }
 0x1db   : > { %v2997_v49 = vsel %vm10539_vm1, %v7612_v41, %v2996_v39 }
 0x1dc   : > { %v7629_v29 = vcombine.low %v2997_v49, %v3000_v26 }
 0x1de   : > { %8530 = vmatmul.mubr.msk.bf16.gmra.mrb[4].mxu0 %vm1044_vm11, %v10597_v9 }
 0x1df   : > { %8533 = vmatprep.mubr.msk.bf16.mxu0 %vm1044_vm11, %v10599_v42 }
 0x1e6   : > { %8534 = vmatmul.mubr.msk.bf16.gmra.mrb[8].mxu0 %vm1044_vm11, %v10617_v61 }
 0x1e7   : > { %8537 = vmatprep.mubr.msk.bf16.mxu0 %vm1044_vm11, %v10619_v56 }
 0x1ee   : > { %8538 = vmatmul.mubr.msk.bf16.gmra.mrb[12].mxu0 %vm1044_vm11, %v10637_v59 }
 0x1ef   : > { %8541 = vmatprep.mubr.msk.bf16.mxu0 %vm1044_vm11, %v10639_v12 }
 0x1f6   : > { %8542 = vmatmul.mubr.msk.bf16.gmra.mrb[16].mxu0 %vm1044_vm11, %v10657_v38 }
 0x1f7   : > { %8545 = vmatprep.mubr.msk.bf16.mxu0 %vm1044_vm11, %v10659_v62 }
 0x1fe   : > { %8546 = vmatmul.mubr.msk.bf16.gmra.mrb[20].mxu0 %vm1044_vm11, %v7626_v46 }
 0x1ff   : > { %8549 = vmatprep.mubr.msk.bf16.mxu0 %vm1044_vm11, %v7627_v7 }
 0x206   : > { %8550 = vmatmul.mubr.msk.bf16.gmra.mrb[24].mxu0 %vm1044_vm11, %v7628_v60 }
 0x207   : > { %8553 = vmatprep.mubr.msk.bf16.mxu0 %vm1044_vm11, %v7629_v29 }
 0x20e   : > { %8554 = vmatmul.mubr.msk.bf16.gmra.mrb[28].mxu0 %vm1044_vm11, %v7630_v28 }
 0x20f   : > { %8559 = vmatprep.mubr.msk.bf16.mxu0 %vm1044_vm11, %v10570_v55  ;;  %v2843_v55 = vld [vmem:[#allocation3 + $0xc0] sm:$0xe] }
 0x210   : > { %v7647_v35 = vrot.slane %v2843_v55, 9 }
 0x212   : > { %v3308_v14 = vsel %vm10539_vm1, %v7647_v35, %v3307_v31 }
 0x213   : > { %v7649_v23 = vcombine.low %v3308_v14, %v3311_v20  ;;  %v4220_v14 = vld [vmem:[#allocation3 + $0x14] sm:$0x1] }
 0x216   : > { %8560 = vmatmul.mubr.msk.bf16.vlgmr.msra.gmra.mrb[0].mxu0 %vm1044_vm11, %v10572_v33 }
 0x217   : > { %8592 = vmatpush3.bf16.msra.mxu0 %v3535_v11  ;;  %8563 = vmatprep.mubr.msk.bf16.mxu0 %vm1044_vm11, %v10597_v9 }
 0x21e   : > { %8564 = vmatmul.mubr.msk.bf16.gmra.mrb[4].mxu0 %vm1044_vm11, %v10599_v42 }
 0x21f   : > { %8567 = vmatprep.mubr.msk.bf16.mxu0 %vm1044_vm11, %v10617_v61 }
 0x226   : > { %8568 = vmatmul.mubr.msk.bf16.gmra.mrb[8].mxu0 %vm1044_vm11, %v10619_v56 }
 0x227   : > { %8571 = vmatprep.mubr.msk.bf16.mxu0 %vm1044_vm11, %v10637_v59 }
 0x22e   : > { %8572 = vmatmul.mubr.msk.bf16.gmra.mrb[12].mxu0 %vm1044_vm11, %v10639_v12 }
 0x22f   : > { %8575 = vmatprep.mubr.msk.bf16.mxu0 %vm1044_vm11, %v10657_v38 }
 0x236   : > { %8576 = vmatmul.mubr.msk.bf16.gmra.mrb[16].mxu0 %vm1044_vm11, %v10659_v62 }
 0x237   : > { %8579 = vmatprep.mubr.msk.bf16.mxu0 %vm1044_vm11, %v7626_v46 }
 0x23e   : > { %8580 = vmatmul.mubr.msk.bf16.gmra.mrb[20].mxu0 %vm1044_vm11, %v7627_v7 }
 0x23f   : > { %8583 = vmatprep.mubr.msk.bf16.mxu0 %vm1044_vm11, %v7628_v60 }
 0x246   : > { %8584 = vmatmul.mubr.msk.bf16.gmra.mrb[24].mxu0 %vm1044_vm11, %v7629_v29 }
 0x247   : > { %8587 = vmatprep.mubr.msk.bf16.mxu0 %vm1044_vm11, %v7630_v28 }
 0x24e   : > { %8588 = vmatmul.mubr.msk.bf16.gmra.mrb[28].mxu0 %vm1044_vm11, %v7649_v23 }
 0x24f   : > { %8593 = vmatprep.mubr.msk.bf16.mxu0 %vm1044_vm11, %v10572_v33  ;;  %v7666_v33 = vrot.slane %v2844_v34, 9 }
 0x256   : > { %8594 = vmatmul.mubr.msk.bf16.vlgmr.msra.gmra.mrb[0].mxu0 %vm1044_vm11, %v10597_v9  ;;  %v3523_v9 = vrot.slane %v3521_v45, 4 }
 0x257   : > { %8597 = vmatprep.mubr.msk.bf16.mxu0 %vm1044_vm11, %v10599_v42  ;;  %v3524_v42 = vrot.slane %v10530_v32, 5  ;;  %v10767_v32 = vld [vmem:[%s9683_s6 + $0x24] sm:$0xf] }
 0x25e   : > { %8598 = vmatmul.mubr.msk.bf16.gmra.mrb[4].mxu0 %vm1044_vm11, %v10617_v61  ;;  %v3522_v61 = vsel %vm10539_vm1, %v7666_v33, %v3521_v45 }
 0x25f   : > { %8601 = vmatprep.mubr.msk.bf16.mxu0 %vm1044_vm11, %v10619_v56  ;;  %v3525_v56 = vsel %vm10539_vm1, %v3523_v9, %v3524_v42 }
 0x266   : > { %8602 = vmatmul.mubr.msk.bf16.gmra.mrb[8].mxu0 %vm1044_vm11, %v10637_v59  ;;  %v7668_v59 = vcombine.low %v3522_v61, %v3525_v56  ;;  %v7787_v61 = vld [vmem:[%s9683_s6 + $0x28] sm:$0xf] }
 0x267   : > { %8605 = vmatprep.mubr.msk.bf16.mxu0 %vm1044_vm11, %v10639_v12  ;;  %v4497_v12 = vsel %vm1093_vm2, %v7719_v15, 0 }
 0x268   : > { %8626 = vmatpush3.bf16.msra.mxu1 %v4497_v12 }
 0x269   : > { %9453 = vmatprep.subr.msk.bf16.mxu1 %vm1093_vm2, %v10767_v32 }
 0x26e   : > { %8606 = vmatmul.mubr.msk.bf16.gmra.mrb[12].mxu0 %vm1044_vm11, %v10657_v38  ;;  %v10772_v38 = vld [vmem:[%s9673_s27] ss:$0 sm:$0xff] }
 0x26f   : > { %8609 = vmatprep.mubr.msk.bf16.mxu0 %vm1044_vm11, %v10659_v62 }
 0x276   : > { %8610 = vmatmul.mubr.msk.bf16.gmra.mrb[16].mxu0 %vm1044_vm11, %v7626_v46 }
 0x277   : > { %8613 = vmatprep.mubr.msk.bf16.mxu0 %vm1044_vm11, %v7627_v7 }
 0x27e   : > { %8614 = vmatmul.mubr.msk.bf16.gmra.mrb[20].mxu0 %vm1044_vm11, %v7628_v60 }
 0x27f   : > { %8617 = vmatprep.mubr.msk.bf16.mxu0 %vm1044_vm11, %v7629_v29  ;;  %v4216_v29 = vld [vmem:[#allocation3 + $0xc] sm:$0xf] }
 0x286   : > { %8618 = vmatmul.mubr.msk.bf16.gmra.mrb[24].mxu0 %vm1044_vm11, %v7630_v28  ;;  %v4227_v28 = vld [vmem:[#allocation3 + $0x20] sm:$0x1] }
 0x287   : > { %8621 = vmatprep.mubr.msk.bf16.mxu0 %vm1044_vm11, %v7649_v23 }
 0x28e   : > { %8622 = vmatmul.mubr.msk.bf16.gmra.mrb[28].mxu0 %vm1044_vm11, %v7668_v59 }
 0x329   : > { %v8595_v62 = vpop.f32.mrb[0].mxu0 }
 0x32a   : > { %v3738_v1 = vadd.f32 %v8595_v62, %v10772_v38  ;;  %v3571_v53 = vpop.f32.mrb[1].mxu0 }
 0x32b   : > { %v3736_v37 = vadd.f32 %v10772_v38, %v3571_v53  ;;  %v8596_v13 = vpop.f32.mrb[2].mxu0 }
 0x32c   : > { %v3770_v4 = vmax.f32 %v3738_v1, 0.0  ;;  %v3739_v51 = vadd.f32 %v8596_v13, %v10772_v38  ;;  %v3574_v3 = vpop.f32.mrb[3].mxu0 }
 0x32d   : > { %v3768_v30 = vmax.f32 %v3736_v37, 0.0  ;;  %v3737_v0 = vadd.f32 %v10772_v38, %v3574_v3 }
 0x32e   : > { %v7983_v47 = vpack.c.bf16 %v3770_v4, %v3770_v4  ;;  %v3771_v2 = vmax.f32 %v3739_v51, 0.0 }
 0x32f   : > { %v7981_v16 = vpack.c.bf16 %v3768_v30, %v3768_v30  ;;  %v3769_v57 = vmax.f32 %v3737_v0, 0.0  ;;  %v4237_v30 = vld [vmem:[#allocation3 + $0x30] sm:$0xf] }
 0x330   : > { %v3914_v8 = vshrl.u32 %v7983_v47, 16  ;;  %v7984_v54 = vpack.c.bf16 %v3771_v2, %v3771_v2  ;;  %v3917_v39 = vshll.u32 %v7983_v47, 16 }
 0x331   : > { %v3897_v10 = vshrl.u32 %v7981_v16, 16  ;;  %v3900_v46 = vshll.u32 %v7981_v16, 16  ;;  %v7982_v7 = vpack.c.bf16 %v3769_v57, %v3769_v57  ;;  %v8599_v18 = vpop.f32.mrb[4].mxu0  ;;  %v4669_v57 = vsel %vm1093_vm2, %v10767_v32, 0 }
 0x332   : > { %v3916_v19 = vrot.slane %v3914_v8, 7  ;;  %v3922_v24 = vshrl.u32 %v7984_v54, 16  ;;  %v3925_v52 = vshll.u32 %v7984_v54, 16  ;;  %v3742_v41 = vadd.f32 %v8599_v18, %v10772_v38  ;;  %v3587_v40 = vpop.f32.mrb[5].mxu0 }
 0x333   : > { %v3899_v25 = vrot.slane %v3897_v10, 7  ;;  %v3905_v21 = vshrl.u32 %v7982_v7, 16  ;;  %v3908_v5 = vshll.u32 %v7982_v7, 16  ;;  %v3740_v49 = vadd.f32 %v10772_v38, %v3587_v40  ;;  %v8600_v26 = vpop.f32.mrb[6].mxu0 }
 0x334   : > { %v3919_v50 = vor.u32 %v3917_v39, %v3916_v19  ;;  %v3920_v60 = vrot.slane %v3916_v19, 4  ;;  %v3924_v58 = vrot.slane %v3922_v24, 7  ;;  %v3774_v22 = vmax.f32 %v3742_v41, 0.0  ;;  %v3590_v6 = vpop.f32.mrb[7].mxu0  ;;  %v4230_v39 = vld [vmem:[#allocation3 + $0x24] sm:$0xf] }
 0x335   : > { %v3902_v48 = vor.u32 %v3900_v46, %v3899_v25  ;;  %v3903_v36 = vrot.slane %v3899_v25, 4  ;;  %v3907_v11 = vrot.slane %v3905_v21, 7  ;;  %v3772_v31 = vmax.f32 %v3740_v49, 0.0 }
 0x336   : > { %v4224_v35 = vsel %vm9816_vm9, %v3919_v50, %v4223_v17  ;;  %v3927_v44 = vor.u32 %v3925_v52, %v3924_v58  ;;  %v3929_v43 = vrot.slane %v3924_v58, 4  ;;  %v7987_v20 = vpack.c.bf16 %v3774_v22, %v3774_v22  ;;  %v4241_v58 = vld [vmem:[#allocation3 + $0x38] sm:$0x1]  ;;  %v4234_v22 = vld [vmem:[#allocation3 + $0x2c] sm:$0x1] }
 0x337   : > { %4225 = vst [vmem:[#allocation3 + $0x18] sm:$0xf] %v4224_v35  ;;  %v4217_v23 = vsel %vm9816_vm9, %v3902_v48, %v4216_v29  ;;  %v3910_v45 = vor.u32 %v3908_v5, %v3907_v11  ;;  %v3912_v34 = vrot.slane %v3907_v11, 4  ;;  %v7985_v33 = vpack.c.bf16 %v3772_v31, %v3772_v31  ;;  %v10817_v35 = vld [vmem:[%s9683_s6 + $0x3c] sm:$0xf] }
 0x338   : > { %4218 = vst [vmem:[#allocation3 + $0xc] sm:$0xf] %v4217_v23  ;;  %v3928_v42 = vsel %vm9808_vm8, %v3920_v60, %v3927_v44  ;;  %v4228_v56 = vsel %vm9824_vm10, %v3929_v43, %v4227_v28  ;;  %v3948_v59 = vshrl.u32 %v7987_v20, 16  ;;  %v3951_v62 = vshll.u32 %v7987_v20, 16 }
 0x339   : > { %4226 = vst.msk [vmem:[#allocation3 + $0x1c] sm:$0xf] %vm807_vm5, %v3928_v42  ;;  %4229 = vst [vmem:[#allocation3 + $0x20] sm:$0x1] %v4228_v56  ;;  %v3911_v15 = vsel %vm9808_vm8, %v3903_v36, %v3910_v45  ;;  %v4221_v12 = vsel %vm9824_vm10, %v3912_v34, %v4220_v14  ;;  %v3931_v1 = vshrl.u32 %v7985_v33, 16  ;;  %v8603_v53 = vpop.f32.mrb[8].mxu0  ;;  %v3743_v13 = vadd.f32 %v8600_v26, %v10772_v38 }
 0x33a   : > { %4219 = vst.msk [vmem:[#allocation3 + $0x10] sm:$0xf] %vm807_vm5, %v3911_v15  ;;  %4222 = vst [vmem:[#allocation3 + $0x14] sm:$0x1] %v4221_v12  ;;  %v10794_v37 = vrot.slane %v3948_v59, 7  ;;  %v3741_v4 = vadd.f32 %v10772_v38, %v3590_v6  ;;  %v3746_v51 = vadd.f32 %v8603_v53, %v10772_v38  ;;  %v3603_v3 = vpop.f32.mrb[9].mxu0 }
 0x33b   : > { %v10799_v0 = vrot.slane %v3931_v1, 7  ;;  %v3934_v47 = vshll.u32 %v7985_v33, 16  ;;  %v3744_v2 = vadd.f32 %v10772_v38, %v3603_v3  ;;  %v8604_v16 = vpop.f32.mrb[10].mxu0  ;;  %v3775_v10 = vmax.f32 %v3743_v13, 0.0  ;;  %v4251_v14 = vld [vmem:[#allocation3 + $0x48] sm:$0xf] }
 0x33c   : > { %v3953_v8 = vor.u32 %v3951_v62, %v10794_v37  ;;  %v3954_v54 = vrot.slane %v10794_v37, 4  ;;  %v3773_v46 = vmax.f32 %v3741_v4, 0.0  ;;  %v3606_v7 = vpop.f32.mrb[11].mxu0  ;;  %v3778_v24 = vmax.f32 %v3746_v51, 0.0  ;;  %v4244_v37 = vld [vmem:[#allocation3 + $0x3c] sm:$0xf] }
 0x33d   : > { %v3936_v18 = vor.u32 %v3934_v47, %v10799_v0  ;;  %v3937_v19 = vrot.slane %v10799_v0, 4  ;;  %v3776_v52 = vmax.f32 %v3744_v2, 0.0  ;;  %v7988_v40 = vpack.c.bf16 %v3775_v10, %v3775_v10 }
 0x33e   : > { %v4238_v41 = vsel %vm9816_vm9, %v3953_v8, %v4237_v30  ;;  %v7986_v17 = vpack.c.bf16 %v3773_v46, %v3773_v46  ;;  %v3747_v32 = vadd.f32 %v8604_v16, %v10772_v38  ;;  %v7991_v21 = vpack.c.bf16 %v3778_v24, %v3778_v24 }
 0x33f   : > { %4239 = vst [vmem:[#allocation3 + $0x30] sm:$0xf] %v4238_v41  ;;  %v4231_v25 = vsel %vm9816_vm9, %v3936_v18, %v4230_v39  ;;  %v7989_v5 = vpack.c.bf16 %v3776_v52, %v3776_v52  ;;  %v3745_v49 = vadd.f32 %v10772_v38, %v3606_v7  ;;  %v3956_v26 = vshrl.u32 %v7988_v40, 16 }
 0x340   : > { %4232 = vst [vmem:[#allocation3 + $0x24] sm:$0xf] %v4231_v25  ;;  %v3959_v50 = vshll.u32 %v7988_v40, 16  ;;  %v3939_v60 = vshrl.u32 %v7986_v17, 16  ;;  %v3942_v29 = vshll.u32 %v7986_v17, 16  ;;  %v3982_v6 = vshrl.u32 %v7991_v21, 16 }
 0x341   : > { %v3985_v48 = vshll.u32 %v7991_v21, 16  ;;  %v3965_v36 = vshrl.u32 %v7989_v5, 16  ;;  %v3968_v28 = vshll.u32 %v7989_v5, 16  ;;  %v8607_v11 = vpop.f32.mrb[12].mxu0  ;;  %v10814_v31 = vld [vmem:[#allocation3 + $0xc] sm:$0xff]   ;;  %v3958_v44 = vrot.slane %v3956_v26, 7 }
 0x342   : > { %v3941_v43 = vrot.slane %v3939_v60, 7  ;;  %v3779_v20 = vmax.f32 %v3747_v32, 0.0  ;;  %v3777_v23 = vmax.f32 %v3745_v49, 0.0  ;;  %v3619_v45 = vpop.f32.mrb[13].mxu0  ;;  %v10819_v34 = vld [vmem:[#allocation3 + $0x18] sm:$0xff]   ;;  %v10821_v33 = vrot.slane %v3982_v6, 7  ;;  %8627 = vmatprep.mubr.msk.bf16.mxu1 %vm1044_vm11, %v10814_v31 }
 0x343   : > { %v10823_v42 = vrot.slane %v3965_v36, 7  ;;  %v3750_v56 = vadd.f32 %v8607_v11, %v10772_v38  ;;  %v3748_v59 = vadd.f32 %v10772_v38, %v3619_v45  ;;  %v8608_v15 = vpop.f32.mrb[14].mxu0  ;;  %v3961_v12 = vor.u32 %v3959_v50, %v3958_v44  ;;  %8628 = vmatmul.mubr.msk.bf16.vlgmr.msra.gmra.mrb[0].mxu1 %vm1044_vm11, %v10819_v34  ;;  %v4255_v17 = vld [vmem:[#allocation3 + $0x50] sm:$0x1]  ;;  %v4248_v60 = vld [vmem:[#allocation3 + $0x44] sm:$0x1] }
 0x344   : > { %v3963_v62 = vrot.slane %v3958_v44, 4  ;;  %v3944_v1 = vor.u32 %v3942_v29, %v3941_v43  ;;  %v3946_v53 = vrot.slane %v3941_v43, 4  ;;  %v3622_v13 = vpop.f32.mrb[15].mxu0  ;;  %v3987_v4 = vor.u32 %v3985_v48, %v10821_v33  ;;  %8660 = vmatpush3.bf16.msra.mxu1 %v4669_v57  ;;  %v4258_v45 = vld [vmem:[#allocation3 + $0x54] sm:$0xf] }
 0x345   : > { %v3988_v51 = vrot.slane %v10821_v33, 4  ;;  %v3970_v3 = vor.u32 %v3968_v28, %v10823_v42  ;;  %v3971_v30 = vrot.slane %v10823_v42, 4  ;;  %v3962_v0 = vsel %vm9808_vm8, %v3954_v54, %v3961_v12  ;;  %9454 = vmatprep.subr.msk.bf16.mxu1 %vm1093_vm2, %v10817_v35 }
 0x346   : > { %v4242_v47 = vsel %vm9824_vm10, %v3963_v62, %v4241_v58  ;;  %v3945_v2 = vsel %vm9808_vm8, %v3937_v19, %v3944_v1  ;;  %v4235_v16 = vsel %vm9824_vm10, %v3946_v53, %v4234_v22  ;;  %4240 = vst.msk [vmem:[#allocation3 + $0x34] sm:$0xf] %vm807_vm5, %v3962_v0  ;;  %v4252_v57 = vsel %vm9816_vm9, %v3987_v4, %v4251_v14 }
 0x347   : > { %4243 = vst [vmem:[#allocation3 + $0x38] sm:$0x1] %v4242_v47  ;;  %4233 = vst.msk [vmem:[#allocation3 + $0x28] sm:$0xf] %vm807_vm5, %v3945_v2  ;;  %v4245_v8 = vsel %vm9816_vm9, %v3970_v3, %v4244_v37  ;;  %v7992_v54 = vpack.c.bf16 %v3779_v20, %v3779_v20  ;;  %v7990_v39 = vpack.c.bf16 %v3777_v23, %v3777_v23  ;;  %v3782_v10 = vmax.f32 %v3750_v56, 0.0 }
 0x348   : > { %4236 = vst [vmem:[#allocation3 + $0x2c] sm:$0x1] %v4235_v16  ;;  %4253 = vst [vmem:[#allocation3 + $0x48] sm:$0xf] %v4252_v57  ;;  %v3780_v46 = vmax.f32 %v3748_v59, 0.0  ;;  %v3751_v7 = vadd.f32 %v8608_v15, %v10772_v38  ;;  %v3749_v18 = vadd.f32 %v10772_v38, %v3622_v13  ;;  %v4843_v9 = vsel %vm1093_vm2, %v10817_v35, 0 }
 0x349   : > { %4246 = vst [vmem:[#allocation3 + $0x3c] sm:$0xf] %v4245_v8  ;;  %v3990_v19 = vshrl.u32 %v7992_v54, 16  ;;  %v3993_v24 = vshll.u32 %v7992_v54, 16  ;;  %v3973_v52 = vshrl.u32 %v7990_v39, 16  ;;  %v3976_v41 = vshll.u32 %v7990_v39, 16 }
 0x34a   : > { %v8611_v40 = vpop.f32.mrb[16].mxu0  ;;  %v7995_v32 = vpack.c.bf16 %v3782_v10, %v3782_v10  ;;  %v7993_v25 = vpack.c.bf16 %v3780_v46, %v3780_v46  ;;  %v3783_v21 = vmax.f32 %v3751_v7, 0.0  ;;  %v3781_v5 = vmax.f32 %v3749_v18, 0.0  ;;  %v4265_v23 = vld [vmem:[#allocation3 + $0x60] sm:$0xf] }
 0x34b   : > { %v3635_v49 = vpop.f32.mrb[17].mxu0  ;;  %v3992_v26 = vrot.slane %v3990_v19, 7  ;;  %v3975_v50 = vrot.slane %v3973_v52, 7  ;;  %v3754_v29 = vadd.f32 %v8611_v40, %v10772_v38  ;;  %v4269_v52 = vld [vmem:[#allocation3 + $0x68] sm:$0x1] }
 0x34c   : > { %v3752_v58 = vadd.f32 %v10772_v38, %v3635_v49  ;;  %v8612_v22 = vpop.f32.mrb[18].mxu0  ;;  %v4016_v6 = vshrl.u32 %v7995_v32, 16  ;;  %v4019_v48 = vshll.u32 %v7995_v32, 16  ;;  %v3999_v36 = vshrl.u32 %v7993_v25, 16  ;;  %v6230_v35 = vld [vmem:[#allocation3 + $0x30] sm:$0xe] }
 0x34d   : > { %v4002_v28 = vshll.u32 %v7993_v25, 16  ;;  %v3638_v11 = vpop.f32.mrb[19].mxu0  ;;  %v3995_v44 = vor.u32 %v3993_v24, %v3992_v26  ;;  %v3997_v43 = vrot.slane %v3992_v26, 4  ;;  %v3978_v14 = vor.u32 %v3976_v41, %v3975_v50  ;;  %v10857_v12 = vld [vmem:[#allocation3 + $0x30] sm:$0xff]   ;;  %v4262_v41 = vld [vmem:[#allocation3 + $0x5c] sm:$0x1] }
 0x34e   : > { %v3980_v20 = vrot.slane %v3975_v50, 4  ;;  %v4018_v33 = vrot.slane %v4016_v6, 7  ;;  %v4001_v42 = vrot.slane %v3999_v36, 7  ;;  %v7996_v56 = vpack.c.bf16 %v3783_v21, %v3783_v21  ;;  %v10855_v15 = vld [vmem:[#allocation3 + $0x24] sm:$0xff]  }
 0x34f   : > { %v7994_v59 = vpack.c.bf16 %v3781_v5, %v3781_v5  ;;  %v3996_v62 = vsel %vm9808_vm8, %v3988_v51, %v3995_v44  ;;  %v4256_v1 = vsel %vm9824_vm10, %v3997_v43, %v4255_v17  ;;  %v3979_v53 = vsel %vm9808_vm8, %v3971_v30, %v3978_v14  ;;  %8631 = vmatprep.mubr.msk.bf16.mxu1 %vm1044_vm11, %v10855_v15 }
 0x350   : > { %v4249_v37 = vsel %vm9824_vm10, %v3980_v20, %v4248_v60  ;;  %4254 = vst.msk [vmem:[#allocation3 + $0x4c] sm:$0xf] %vm807_vm5, %v3996_v62  ;;  %4257 = vst [vmem:[#allocation3 + $0x50] sm:$0x1] %v4256_v1  ;;  %v4021_v13 = vor.u32 %v4019_v48, %v4018_v33  ;;  %v4022_v4 = vrot.slane %v4018_v33, 4  ;;  %v4004_v3 = vor.u32 %v4002_v28, %v4001_v42 }
 0x351   : > { %4247 = vst.msk [vmem:[#allocation3 + $0x40] sm:$0xf] %vm807_vm5, %v3979_v53  ;;  %4250 = vst [vmem:[#allocation3 + $0x44] sm:$0x1] %v4249_v37  ;;  %v4005_v0 = vrot.slane %v4001_v42, 4  ;;  %v4024_v51 = vshrl.u32 %v7996_v56, 16  ;;  %8632 = vmatmul.mubr.msk.bf16.gmra.mrb[4].mxu1 %vm1044_vm11, %v10857_v12  ;;  %v3755_v18 = vadd.f32 %v8612_v22, %v10772_v38  ;;  %v3753_v19 = vadd.f32 %v10772_v38, %v3638_v11 }
 0x352   : > { %v4027_v47 = vshll.u32 %v7996_v56, 16  ;;  %v4007_v2 = vshrl.u32 %v7994_v59, 16  ;;  %v4010_v30 = vshll.u32 %v7994_v59, 16  ;;  %v8615_v16 = vpop.f32.mrb[20].mxu0  ;;  %v4266_v57 = vsel %vm9816_vm9, %v4021_v13, %v4265_v23  ;;  %v4279_v11 = vld [vmem:[#allocation3 + $0x78] sm:$0xf] }
 0x353   : > { %v4259_v8 = vsel %vm9816_vm9, %v4004_v3, %v4258_v45  ;;  %v3786_v54 = vmax.f32 %v3754_v29, 0.0  ;;  %v3784_v39 = vmax.f32 %v3752_v58, 0.0  ;;  %v3651_v10 = vpop.f32.mrb[21].mxu0  ;;  %4267 = vst [vmem:[#allocation3 + $0x60] sm:$0xf] %v4266_v57  ;;  %v4026_v46 = vrot.slane %v4024_v51, 7 }
 0x354   : > { %4260 = vst [vmem:[#allocation3 + $0x54] sm:$0xf] %v4259_v8  ;;  %v4009_v7 = vrot.slane %v4007_v2, 7  ;;  %v8616_v24 = vpop.f32.mrb[22].mxu0  ;;  %v3758_v32 = vadd.f32 %v8615_v16, %v10772_v38  ;;  %v3756_v25 = vadd.f32 %v10772_v38, %v3651_v10  ;;  %v3787_v20 = vmax.f32 %v3755_v18, 0.0 }
 0x355   : > { %v7999_v40 = vpack.c.bf16 %v3786_v54, %v3786_v54  ;;  %v7997_v17 = vpack.c.bf16 %v3784_v39, %v3784_v39  ;;  %v3654_v21 = vpop.f32.mrb[23].mxu0  ;;  %v4029_v5 = vor.u32 %v4027_v47, %v4026_v46  ;;  %v4031_v49 = vrot.slane %v4026_v46, 4  ;;  %v4272_v33 = vld [vmem:[#allocation3 + $0x6c] sm:$0xf] }
 0x356   : > { %v4012_v26 = vor.u32 %v4010_v30, %v4009_v7  ;;  %v4014_v50 = vrot.slane %v4009_v7, 4  ;;  %v3785_v23 = vmax.f32 %v3753_v19, 0.0  ;;  %v3790_v42 = vmax.f32 %v3758_v32, 0.0  ;;  %v4283_v19 = vld [vmem:[#allocation3 + $0x80] sm:$0x1] }
 0x357   : > { %v4050_v60 = vshrl.u32 %v7999_v40, 16  ;;  %v4053_v29 = vshll.u32 %v7999_v40, 16  ;;  %v4033_v58 = vshrl.u32 %v7997_v17, 16  ;;  %v4036_v22 = vshll.u32 %v7997_v17, 16  ;;  %v10897_v45 = vld [vmem:[#allocation3 + $0x48] sm:$0xff]  }
 0x358   : > { %v4030_v6 = vsel %vm9808_vm8, %v4022_v4, %v4029_v5  ;;  %v4270_v48 = vsel %vm9824_vm10, %v4031_v49, %v4269_v52  ;;  %v4013_v36 = vsel %vm9808_vm8, %v4005_v0, %v4012_v26  ;;  %v4263_v28 = vsel %vm9824_vm10, %v4014_v50, %v4262_v41  ;;  %v10889_v44 = vld [vmem:[#allocation3 + $0x3c] sm:$0xff]  }
 0x359   : > { %4268 = vst.msk [vmem:[#allocation3 + $0x64] sm:$0xf] %vm807_vm5, %v4030_v6  ;;  %4271 = vst [vmem:[#allocation3 + $0x68] sm:$0x1] %v4270_v48  ;;  %v10893_v43 = vrot.slane %v4050_v60, 7  ;;  %v10895_v14 = vrot.slane %v4033_v58, 7  ;;  %v3759_v59 = vadd.f32 %v8616_v24, %v10772_v38  ;;  %v3757_v62 = vadd.f32 %v10772_v38, %v3654_v21  ;;  %8635 = vmatprep.mubr.msk.bf16.mxu1 %vm1044_vm11, %v10889_v44 }
 0x35a   : > { %4261 = vst.msk [vmem:[#allocation3 + $0x58] sm:$0xf] %vm807_vm5, %v4013_v36  ;;  %4264 = vst [vmem:[#allocation3 + $0x5c] sm:$0x1] %v4263_v28  ;;  %v3788_v56 = vmax.f32 %v3756_v25, 0.0  ;;  %v8619_v1 = vpop.f32.mrb[24].mxu0  ;;  %8636 = vmatmul.mubr.msk.bf16.gmra.mrb[8].mxu1 %vm1044_vm11, %v10897_v45  ;;  %v8000_v0 = vpack.c.bf16 %v3787_v20, %v3787_v20  ;;  %v7998_v51 = vpack.c.bf16 %v3785_v23, %v3785_v23 }
 0x35b   : > { %v4055_v53 = vor.u32 %v4053_v29, %v10893_v43  ;;  %v4056_v37 = vrot.slane %v10893_v43, 4  ;;  %v4038_v13 = vor.u32 %v4036_v22, %v10895_v14  ;;  %v4039_v4 = vrot.slane %v10895_v14, 4  ;;  %v3667_v3 = vpop.f32.mrb[25].mxu0  ;;  %v4276_v24 = vld [vmem:[#allocation3 + $0x74] sm:$0x1] }
 0x35c   : > { %v8003_v47 = vpack.c.bf16 %v3790_v42, %v3790_v42  ;;  %v8001_v2 = vpack.c.bf16 %v3788_v56, %v3788_v56  ;;  %v10909_v30 = vpop.f32.mrb[26].mxu0  ;;  %v3791_v8 = vmax.f32 %v3759_v59, 0.0  ;;  %v3789_v54 = vmax.f32 %v3757_v62, 0.0  ;;  %v4293_v21 = vld [vmem:[#allocation3 + $0x90] sm:$0xf] }
 0x35d   : > { %v4280_v16 = vsel %vm9816_vm9, %v4055_v53, %v4279_v11  ;;  %v4273_v57 = vsel %vm9816_vm9, %v4038_v13, %v4272_v33  ;;  %v3670_v39 = vpop.f32.mrb[27].mxu0  ;;  %v4058_v10 = vshrl.u32 %v8000_v0, 16  ;;  %v4061_v46 = vshll.u32 %v8000_v0, 16  ;;  %v4286_v11 = vld [vmem:[#allocation3 + $0x84] sm:$0xf] }
 0x35e   : > { %4281 = vst [vmem:[#allocation3 + $0x78] sm:$0xf] %v4280_v16  ;;  %4274 = vst [vmem:[#allocation3 + $0x6c] sm:$0xf] %v4273_v57  ;;  %v4041_v7 = vshrl.u32 %v7998_v51, 16  ;;  %v4044_v18 = vshll.u32 %v7998_v51, 16  ;;  %v8004_v5 = vpack.c.bf16 %v3791_v8, %v3791_v8  ;;  %v8002_v49 = vpack.c.bf16 %v3789_v54, %v3789_v54 }
 0x35f   : > { %v4084_v52 = vshrl.u32 %v8003_v47, 16  ;;  %v4087_v41 = vshll.u32 %v8003_v47, 16  ;;  %v4067_v40 = vshrl.u32 %v8001_v2, 16  ;;  %v4070_v17 = vshll.u32 %v8001_v2, 16 }
 0x360   : > { %v4060_v32 = vrot.slane %v4058_v10, 7  ;;  %v4043_v25 = vrot.slane %v4041_v7, 7  ;;  %v3762_v29 = vadd.f32 %v8619_v1, %v10772_v38  ;;  %v3760_v58 = vadd.f32 %v10772_v38, %v3667_v3  ;;  %v10921_v22 = vld [vmem:[#allocation3 + $0x60] sm:$0xff]  }
 0x361   : > { %v10915_v26 = vld [vmem:[#allocation3 + $0x54] sm:$0xff]   ;;  %v4086_v50 = vrot.slane %v4084_v52, 7  ;;  %v10917_v60 = vrot.slane %v4067_v40, 7  ;;  %v8623_v43 = vpop.f32.mrb[28].mxu0  ;;  %v4092_v3 = vshrl.u32 %v8004_v5, 16  ;;  %v4095_v0 = vshll.u32 %v8004_v5, 16 }
 0x362   : > { %v4063_v6 = vor.u32 %v4061_v46, %v4060_v32  ;;  %v4065_v48 = vrot.slane %v4060_v32, 4  ;;  %v4046_v36 = vor.u32 %v4044_v18, %v4043_v25  ;;  %v4048_v28 = vrot.slane %v4043_v25, 4  ;;  %8639 = vmatprep.mubr.msk.bf16.mxu1 %vm1044_vm11, %v10915_v26  ;;  %v3683_v42 = vpop.f32.mrb[29].mxu0  ;;  %v4297_v46 = vld [vmem:[#allocation3 + $0x98] sm:$0x1] }
 0x363   : > { %v4089_v14 = vor.u32 %v4087_v41, %v4086_v50  ;;  %v4090_v20 = vrot.slane %v4086_v50, 4  ;;  %v4072_v23 = vor.u32 %v4070_v17, %v10917_v60  ;;  %v4073_v33 = vrot.slane %v10917_v60, 4  ;;  %8640 = vmatmul.mubr.msk.bf16.gmra.mrb[12].mxu1 %vm1044_vm11, %v10921_v22  ;;  %v10937_v53 = vpop.f32.mrb[30].mxu0  ;;  %v4290_v40 = vld [vmem:[#allocation3 + $0x8c] sm:$0x1] }
 0x364   : > { %v4064_v56 = vsel %vm9808_vm8, %v4056_v37, %v4063_v6  ;;  %v4284_v59 = vsel %vm9824_vm10, %v4065_v48, %v4283_v19  ;;  %v4047_v62 = vsel %vm9808_vm8, %v4039_v4, %v4046_v36  ;;  %v4277_v1 = vsel %vm9824_vm10, %v4048_v28, %v4276_v24  ;;  %v10945_v4 = vpop.f32.mrb[31].mxu0  ;;  %v4307_v50 = vld [vmem:[#allocation3 + $0xa8] sm:$0xf]  ;;  %v4300_v36 = vld [vmem:[#allocation3 + $0x9c] sm:$0xf] }
 0x365   : > { %4282 = vst.msk [vmem:[#allocation3 + $0x7c] sm:$0xf] %vm807_vm5, %v4064_v56  ;;  %4285 = vst [vmem:[#allocation3 + $0x80] sm:$0x1] %v4284_v59  ;;  %v4294_v37 = vsel %vm9816_vm9, %v4089_v14, %v4293_v21  ;;  %v4287_v13 = vsel %vm9816_vm9, %v4072_v23, %v4286_v11  ;;  %v4075_v51 = vshrl.u32 %v8002_v49, 16  ;;  %v4078_v47 = vshll.u32 %v8002_v49, 16 }
 0x366   : > { %4275 = vst.msk [vmem:[#allocation3 + $0x70] sm:$0xf] %vm807_vm5, %v4047_v62  ;;  %4278 = vst [vmem:[#allocation3 + $0x74] sm:$0x1] %v4277_v1  ;;  %v3794_v2 = vmax.f32 %v3762_v29, 0.0  ;;  %v3792_v16 = vmax.f32 %v3760_v58, 0.0  ;;  %v3763_v8 = vadd.f32 %v10909_v30, %v10772_v38  ;;  %v3761_v54 = vadd.f32 %v10772_v38, %v3670_v39 }
 0x367   : > { %4295 = vst [vmem:[#allocation3 + $0x90] sm:$0xf] %v4294_v37  ;;  %4288 = vst [vmem:[#allocation3 + $0x84] sm:$0xf] %v4287_v13  ;;  %v4094_v57 = vrot.slane %v4092_v3, 7  ;;  %v3766_v10 = vadd.f32 %v8623_v43, %v10772_v38  ;;  %v4077_v7 = vrot.slane %v4075_v51, 7  ;;  %v3764_v24 = vadd.f32 %v10772_v38, %v3683_v42 }
 0x368   : > { %v8007_v18 = vpack.c.bf16 %v3794_v2, %v3794_v2  ;;  %v8005_v19 = vpack.c.bf16 %v3792_v16, %v3792_v16  ;;  %v3795_v17 = vmax.f32 %v3763_v8, 0.0  ;;  %v3793_v32 = vmax.f32 %v3761_v54, 0.0 }
 0x369   : > { %v4097_v52 = vor.u32 %v4095_v0, %v4094_v57  ;;  %v4099_v41 = vrot.slane %v4094_v57, 4  ;;  %v4080_v25 = vor.u32 %v4078_v47, %v4077_v7  ;;  %v4082_v21 = vrot.slane %v4077_v7, 4  ;;  %v4311_v57 = vld [vmem:[#allocation3 + $0xb0] sm:$0x1] }
 0x36a   : > { %v4118_v5 = vshrl.u32 %v8007_v18, 16  ;;  %v4121_v49 = vshll.u32 %v8007_v18, 16  ;;  %v4101_v60 = vshrl.u32 %v8005_v19, 16  ;;  %v4104_v29 = vshll.u32 %v8005_v19, 16  ;;  %v4304_v18 = vld [vmem:[#allocation3 + $0xa4] sm:$0x1] }
 0x36b   : > { %v4098_v30 = vsel %vm9808_vm8, %v4090_v20, %v4097_v52  ;;  %v4298_v39 = vsel %vm9824_vm10, %v4099_v41, %v4297_v46  ;;  %v4081_v58 = vsel %vm9808_vm8, %v4073_v33, %v4080_v25  ;;  %v4291_v6 = vsel %vm9824_vm10, %v4082_v21, %v4290_v40 }
 0x36c   : > { %4296 = vst.msk [vmem:[#allocation3 + $0x94] sm:$0xf] %vm807_vm5, %v4098_v30  ;;  %4299 = vst [vmem:[#allocation3 + $0x98] sm:$0x1] %v4298_v39  ;;  %v4120_v48 = vrot.slane %v4118_v5, 7  ;;  %v8008_v28 = vpack.c.bf16 %v3795_v17, %v3795_v17  ;;  %v4103_v43 = vrot.slane %v4101_v60, 7  ;;  %v8006_v14 = vpack.c.bf16 %v3793_v32, %v3793_v32 }
 0x36d   : > { %v10961_v11 = vld [vmem:[#allocation3 + $0x6c] sm:$0xff]   ;;  %4289 = vst.msk [vmem:[#allocation3 + $0x88] sm:$0xf] %vm807_vm5, %v4081_v58  ;;  %4292 = vst [vmem:[#allocation3 + $0x8c] sm:$0x1] %v4291_v6  ;;  %v3798_v20 = vmax.f32 %v3766_v10, 0.0  ;;  %v3767_v54 = vadd.f32 %v10937_v53, %v10772_v38  ;;  %v3765_v10 = vadd.f32 %v10772_v38, %v10945_v4 }
 0x36e   : > { %v3796_v23 = vmax.f32 %v3764_v24, 0.0  ;;  %v10964_v42 = vld [vmem:[#allocation3 + $0x78] sm:$0xff]   ;;  %v4123_v56 = vor.u32 %v4121_v49, %v4120_v48  ;;  %v4124_v59 = vrot.slane %v4120_v48, 4  ;;  %v4126_v33 = vshrl.u32 %v8008_v28, 16  ;;  %8643 = vmatprep.mubr.msk.bf16.mxu1 %vm1044_vm11, %v10961_v11  ;;  %v4321_v49 = vld [vmem:[#allocation3 + $0xc0] sm:$0xf] }
 0x36f   : > { %v4129_v62 = vshll.u32 %v8008_v28, 16  ;;  %v4106_v1 = vor.u32 %v4104_v29, %v4103_v43  ;;  %v4107_v37 = vrot.slane %v4103_v43, 4  ;;  %v4109_v13 = vshrl.u32 %v8006_v14, 16  ;;  %8644 = vmatmul.mubr.msk.bf16.gmra.mrb[16].mxu1 %vm1044_vm11, %v10964_v42  ;;  %v4314_v29 = vld [vmem:[#allocation3 + $0xb4] sm:$0xf] }
 0x370   : > { %v4112_v3 = vshll.u32 %v8006_v14, 16  ;;  %v4308_v0 = vsel %vm9816_vm9, %v4123_v56, %v4307_v50  ;;  %v4128_v51 = vrot.slane %v4126_v33, 7  ;;  %v8011_v47 = vpack.c.bf16 %v3798_v20, %v3798_v20  ;;  %v4325_v56 = vld [vmem:[#allocation3 + $0xc8] sm:$0x1] }
 0x371   : > { %v8009_v2 = vpack.c.bf16 %v3796_v23, %v3796_v23  ;;  %4309 = vst [vmem:[#allocation3 + $0xa8] sm:$0xf] %v4308_v0  ;;  %v4301_v16 = vsel %vm9816_vm9, %v4106_v1, %v4300_v36  ;;  %v4111_v8 = vrot.slane %v4109_v13, 7  ;;  %v3799_v21 = vmax.f32 %v3767_v54, 0.0  ;;  %v4318_v13 = vld [vmem:[#allocation3 + $0xbc] sm:$0x1] }
 0x372   : > { %4302 = vst [vmem:[#allocation3 + $0x9c] sm:$0xf] %v4301_v16  ;;  %v4131_v46 = vor.u32 %v4129_v62, %v4128_v51  ;;  %v4133_v7 = vrot.slane %v4128_v51, 4  ;;  %v4152_v19 = vshrl.u32 %v8011_v47, 16  ;;  %v4155_v24 = vshll.u32 %v8011_v47, 16 }
 0x373   : > { %v4114_v52 = vor.u32 %v4112_v3, %v4111_v8  ;;  %v4116_v41 = vrot.slane %v4111_v8, 4  ;;  %v4135_v40 = vshrl.u32 %v8009_v2, 16  ;;  %v4138_v17 = vshll.u32 %v8009_v2, 16  ;;  %v10989_v50 = vld [vmem:[#allocation3 + $0x90] sm:$0xff]  }
 0x374   : > { %v4132_v32 = vsel %vm9808_vm8, %v4124_v59, %v4131_v46  ;;  %v4312_v25 = vsel %vm9824_vm10, %v4133_v7, %v4311_v57  ;;  %v4154_v53 = vrot.slane %v4152_v19, 7  ;;  %v10982_v5 = vld [vmem:[#allocation3 + $0x84] sm:$0xff]   ;;  %v3797_v39 = vmax.f32 %v3765_v10, 0.0  ;;  %v11061_v7 = vld [vmem:[#allocation3 + $0x40] sm:$0xf] }
 0x375   : > { %4310 = vst.msk [vmem:[#allocation3 + $0xac] sm:$0xf] %vm807_vm5, %v4132_v32  ;;  %4313 = vst [vmem:[#allocation3 + $0xb0] sm:$0x1] %v4312_v25  ;;  %v4115_v38 = vsel %vm9808_vm8, %v4107_v37, %v4114_v52  ;;  %v4305_v4 = vsel %vm9824_vm10, %v4116_v41, %v4304_v18  ;;  %v4137_v30 = vrot.slane %v4135_v40, 7  ;;  %v8012_v58 = vpack.c.bf16 %v3799_v21, %v3799_v21  ;;  %v9537_v10 = vld [vmem:[#allocation3] sm:$0xff]  }
 0x376   : > { %4303 = vst.msk [vmem:[#allocation3 + $0xa0] sm:$0xf] %vm807_vm5, %v4115_v38  ;;  %4306 = vst [vmem:[#allocation3 + $0xa4] sm:$0x1] %v4305_v4  ;;  %v4157_v60 = vor.u32 %v4155_v24, %v4154_v53  ;;  %8647 = vmatprep.mubr.msk.bf16.mxu1 %vm1044_vm11, %v10982_v5  ;;  %v8010_v48 = vpack.c.bf16 %v3797_v39, %v3797_v39  ;;  %v4158_v62 = vrot.slane %v4154_v53, 4  ;;  %v7860_v40 = vrot.slane %v6230_v35, 9 }
 0x377   : > { %v4140_v6 = vor.u32 %v4138_v17, %v4137_v30  ;;  %8648 = vmatmul.mubr.msk.bf16.gmra.mrb[20].mxu1 %vm1044_vm11, %v10989_v50  ;;  %v4160_v28 = vshrl.u32 %v8012_v58, 16  ;;  %v4163_v23 = vshll.u32 %v8012_v58, 16  ;;  %v4141_v3 = vrot.slane %v4137_v30, 4  ;;  %v6231_v18 = vld [vmem:[#allocation3 + $0x3c] sm:$0xe] }
 0x378   : > { %v4322_v36 = vsel %vm9816_vm9, %v4157_v60, %v4321_v49  ;;  %v4143_v14 = vshrl.u32 %v8010_v48, 16  ;;  %v4146_v33 = vshll.u32 %v8010_v48, 16  ;;  %v11063_v19 = vld [vmem:[#allocation3 + $0x38] sm:$0x1]  ;;  %v6232_v24 = vld [vmem:[#allocation3 + $0x48] sm:$0xe] }
 0x379   : > { %4323 = vst [vmem:[#allocation3 + $0xc0] sm:$0xf] %v4322_v36  ;;  %v4315_v43 = vsel %vm9816_vm9, %v4140_v6, %v4314_v29  ;;  %v4162_v20 = vrot.slane %v4160_v28, 7  ;;  %v11065_v52 = vld [vmem:[#allocation3 + $0x44] sm:$0x1]  ;;  %v7861_v53 = vrot.slane %v6231_v18, 9 }
 0x37a   : > { %4316 = vst [vmem:[#allocation3 + $0xb4] sm:$0xf] %v4315_v43  ;;  %v4145_v59 = vrot.slane %v4143_v14, 7  ;;  %v11067_v41 = vld [vmem:[#allocation3 + $0x4c] sm:$0xf]  ;;  %v6329_v21 = vrot.slane %v11061_v7, 5 }
 0x37b   : > { %v4165_v1 = vor.u32 %v4163_v23, %v4162_v20  ;;  %v4167_v37 = vrot.slane %v4162_v20, 4  ;;  %v11072_v32 = vld [vmem:[#allocation3 + $0x50] sm:$0x1]  ;;  %v11074_v25 = vld [vmem:[#allocation3 + $0x58] sm:$0xf]  ;;  %v6325_v30 = vrot.slane %v11063_v19, 5 }
 0x37c   : > { %v4148_v0 = vor.u32 %v4146_v33, %v4145_v59  ;;  %v4150_v51 = vrot.slane %v4145_v59, 4  ;;  %v11006_v16 = vld [vmem:[#allocation3 + $0xa8] sm:$0xff]   ;;  %v11079_v38 = vld [vmem:[#allocation3 + $0x5c] sm:$0x1]  ;;  %v6233_v39 = vld [vmem:[#allocation3 + $0x54] sm:$0xe]  ;;  %v6330_v29 = vsel %vm10539_vm1, %v7861_v53, %v6329_v21 }
 0x37d   : > { %v11000_v47 = vld [vmem:[#allocation3 + $0x9c] sm:$0xff]   ;;  %v4166_v55 = vsel %vm9808_vm8, %v4158_v62, %v4165_v1  ;;  %v4326_v2 = vsel %vm9824_vm10, %v4167_v37, %v4325_v56  ;;  %v11084_v60 = vld [vmem:[#allocation3 + $0x64] sm:$0xf]  ;;  %v6331_v58 = vrot.slane %v6329_v21, 4  ;;  %v6332_v6 = vrot.slane %v11065_v52, 5 }
 0x37e   : > { %4324 = vst.msk [vmem:[#allocation3 + $0xc4] sm:$0xf] %vm807_vm5, %v4166_v55  ;;  %4327 = vst [vmem:[#allocation3 + $0xc8] sm:$0x1] %v4326_v2  ;;  %v4149_v57 = vsel %vm9808_vm8, %v4141_v3, %v4148_v0  ;;  %v4319_v8 = vsel %vm9824_vm10, %v4150_v51, %v4318_v13  ;;  %8651 = vmatprep.mubr.msk.bf16.mxu1 %vm1044_vm11, %v11000_v47  ;;  %v6336_v48 = vrot.slane %v11067_v41, 5  ;;  %v7862_v28 = vrot.slane %v6232_v24, 9 }
 0x37f   : > { %4317 = vst.msk [vmem:[#allocation3 + $0xb8] sm:$0xf] %vm807_vm5, %v4149_v57  ;;  %4320 = vst [vmem:[#allocation3 + $0xbc] sm:$0x1] %v4319_v8  ;;  %8652 = vmatmul.mubr.msk.bf16.gmra.mrb[24].mxu1 %vm1044_vm11, %v11006_v16  ;;  %v6339_v43 = vrot.slane %v11072_v32, 5  ;;  %v6343_v14 = vrot.slane %v11074_v25, 5  ;;  %v6333_v59 = vsel %vm10539_vm1, %v6331_v58, %v6332_v6 }
 0x380   : > { %v6234_v20 = vld [vmem:[#allocation3 + $0x60] sm:$0xe]  ;;  %v11096_v23 = vld [vmem:[#allocation3 + $0x70] sm:$0xf]  ;;  %v6338_v33 = vrot.slane %v6336_v48, 4  ;;  %v7863_v62 = vrot.slane %v6233_v39, 9  ;;  %v11103_v13 = vcombine.low %v6330_v29, %v6333_v59  ;;  %v6337_v57 = vsel %vm10539_vm1, %v7862_v28, %v6336_v48 }
 0x381   : > { %v6235_v1 = vld [vmem:[#allocation3 + $0x6c] sm:$0xe]  ;;  %v5575_v37 = vsel %vm1093_vm2, %v7787_v61, 0  ;;  %v6345_v3 = vrot.slane %v6343_v14, 4  ;;  %v6346_v0 = vrot.slane %v11079_v38, 5 }
 0x382   : > { %12089 = vst [vmem:[#allocation8_spill] sm:$0xff] %v11103_v13  ;;  %v6236_v51 = vld [vmem:[#allocation3 + $0x78] sm:$0xe]  ;;  %v11106_v55 = vld [vmem:[#allocation3 + $0x74] sm:$0x1]  ;;  %v6340_v8 = vsel %vm10539_vm1, %v6338_v33, %v6339_v43 }
 0x383   : > { %v11108_v2 = vld [vmem:[#allocation3 + $0x7c] sm:$0xf]  ;;  %v11120_v35 = vld [vmem:[#allocation3 + $0x80] sm:$0x1]  ;;  %v11122_v18 = vcombine.low %v6337_v57, %v6340_v8  ;;  %v6347_v24 = vsel %vm10539_vm1, %v6345_v3, %v6346_v0  ;;  %v11129_v53 = vld [vmem:[#allocation3 + $0x88] sm:$0xf] }
 0x384   : > { %v11136_v39 = vld [vmem:[#allocation3 + $0x8c] sm:$0x1]  ;;  %v6237_v6 = vld [vmem:[#allocation3 + $0x84] sm:$0xe]  ;;  %v11143_v48 = vld [vmem:[#allocation3 + $0x94] sm:$0xf] }
 0x385   : > { %v11020_v46 = vld [vmem:[#allocation3 + $0xc0] sm:$0xff]   ;;  %12090 = vst [vmem:[#allocation9_spill] sm:$0xff] %v11122_v18  ;;  %v7866_v28 = vrot.slane %v6236_v51, 9  ;;  %v6364_v43 = vrot.slane %v11108_v2, 5  ;;  %v7867_v51 = vrot.slane %v6237_v6, 9  ;;  %v6374_v57 = vrot.slane %v11136_v39, 5 }
 0x386   : > { %v11018_v54 = vld [vmem:[#allocation3 + $0xb4] sm:$0xff]   ;;  %v11152_v59 = vld [vmem:[#allocation3 + $0xa0] sm:$0xf]  ;;  %v6239_v8 = vld [vmem:[#allocation3 + $0x9c] sm:$0xe] }
 0x387   : > { %8655 = vmatprep.mubr.msk.bf16.mxu1 %vm1044_vm11, %v11018_v54  ;;  %v6366_v0 = vrot.slane %v6364_v43, 4 }
 0x388   : > { %8656 = vmatmul.mubr.msk.bf16.gmra.mrb[28].mxu1 %vm1044_vm11, %v11020_v46 }
 0x389   : > { %8661 = vmatprep.mubr.msk.bf16.mxu1 %vm1044_vm11, %v9537_v10  ;;  %v6344_v10 = vsel %vm10539_vm1, %v7863_v62, %v6343_v14  ;;  %v6238_v14 = vld [vmem:[#allocation3 + $0x90] sm:$0xe] }
 0x38a   : > { %v11131_v21 = vcombine.low %v6344_v10, %v6347_v24  ;;  %v11163_v10 = vld [vmem:[#allocation3 + $0xa4] sm:$0x1] }
 0x38c   : > { %12091 = vst [vmem:[#allocation12_spill] sm:$0xff] %v11131_v21 }
 0x390   : > { %8662 = vmatmul.mubr.msk.bf16.vlgmr.msra.gmra.mrb[0].mxu1 %vm1044_vm11, %v10814_v31  ;;  %v11059_v31 = vld [vmem:[#allocation3 + $0x34] sm:$0xf] }
 0x391   : > { %8694 = vmatpush3.bf16.msra.mxu1 %v4843_v9  ;;  %8665 = vmatprep.mubr.msk.bf16.mxu1 %vm1044_vm11, %v10819_v34  ;;  %v6322_v17 = vrot.slane %v11059_v31, 5  ;;  %v6350_v9 = vrot.slane %v11084_v60, 5 }
 0x392   : > { %9455 = vmatprep.subr.msk.bf16.mxu1 %vm1093_vm2, %v7787_v61  ;;  %v11118_v61 = vld [vmem:[%s9683_s6 + $0x34] sm:$0xf] }
 0x393   : > { %v6323_v4 = vsel %vm10539_vm1, %v7860_v40, %v6322_v17  ;;  %v6324_v49 = vrot.slane %v6322_v17, 4  ;;  %v7864_v40 = vrot.slane %v6234_v20, 9  ;;  %v6357_v17 = vrot.slane %v11096_v23, 5  ;;  %v11150_v20 = vld [vmem:[#allocation3 + $0x98] sm:$0x1] }
 0x395   : > { %v6326_v36 = vsel %vm10539_vm1, %v6324_v49, %v6325_v30  ;;  %v7865_v30 = vrot.slane %v6235_v1, 9  ;;  %v6351_v29 = vsel %vm10539_vm1, %v7864_v40, %v6350_v9  ;;  %v6359_v58 = vrot.slane %v6357_v17, 4 }
 0x396   : > { %v11098_v56 = vcombine.low %v6323_v4, %v6326_v36  ;;  %v6352_v4 = vrot.slane %v6350_v9, 4  ;;  %v6367_v1 = vrot.slane %v11120_v35, 5  ;;  %v6365_v9 = vsel %vm10539_vm1, %v7866_v28, %v6364_v43  ;;  %v6240_v43 = vld [vmem:[#allocation3 + $0xa8] sm:$0xe] }
 0x397   : > { %v7868_v40 = vrot.slane %v6238_v14, 9  ;;  %v7869_v28 = vrot.slane %v6239_v8, 9  ;;  %v11184_v14 = vld [vmem:[#allocation3 + $0xb0] sm:$0x1] }
 0x398   : > { %8666 = vmatmul.mubr.msk.bf16.gmra.mrb[4].mxu1 %vm1044_vm11, %v10855_v15  ;;  %12088 = vst [vmem:[#allocation7_spill] sm:$0xff] %v11098_v56 }
 0x399   : > { %8669 = vmatprep.mubr.msk.bf16.mxu1 %vm1044_vm11, %v10857_v12 }
 0x3a0   : > { %8670 = vmatmul.mubr.msk.bf16.gmra.mrb[8].mxu1 %vm1044_vm11, %v10889_v44 }
 0x3a1   : > { %8673 = vmatprep.mubr.msk.bf16.mxu1 %vm1044_vm11, %v10897_v45 }
 0x3a8   : > { %8674 = vmatmul.mubr.msk.bf16.gmra.mrb[12].mxu1 %vm1044_vm11, %v10915_v26 }
 0x3a9   : > { %8677 = vmatprep.mubr.msk.bf16.mxu1 %vm1044_vm11, %v10921_v22 }
 0x3b0   : > { %8678 = vmatmul.mubr.msk.bf16.gmra.mrb[16].mxu1 %vm1044_vm11, %v10961_v11 }
 0x3b1   : > { %8681 = vmatprep.mubr.msk.bf16.mxu1 %vm1044_vm11, %v10964_v42 }
 0x3b8   : > { %8682 = vmatmul.mubr.msk.bf16.gmra.mrb[20].mxu1 %vm1044_vm11, %v10982_v5 }
 0x3b9   : > { %8685 = vmatprep.mubr.msk.bf16.mxu1 %vm1044_vm11, %v10989_v50 }
 0x3c0   : > { %8686 = vmatmul.mubr.msk.bf16.gmra.mrb[24].mxu1 %vm1044_vm11, %v11000_v47 }
 0x3c1   : > { %8689 = vmatprep.mubr.msk.bf16.mxu1 %vm1044_vm11, %v11006_v16 }
 0x3c8   : > { %8690 = vmatmul.mubr.msk.bf16.gmra.mrb[28].mxu1 %vm1044_vm11, %v11018_v54 }
 0x3c9   : > { %8695 = vmatprep.mubr.msk.bf16.mxu1 %vm1044_vm11, %v10819_v34  ;;  %v11090_v34 = vld [vmem:[#allocation3 + $0x68] sm:$0x1] }
 0x3ca   : > { %v6353_v49 = vrot.slane %v11090_v34, 5 }
 0x3cc   : > { %v6354_v36 = vsel %vm10539_vm1, %v6352_v4, %v6353_v49  ;;  %v11168_v4 = vld [vmem:[#allocation3 + $0xac] sm:$0xf]  ;;  %v6368_v49 = vsel %vm10539_vm1, %v6366_v0, %v6367_v1  ;;  %v6241_v0 = vld [vmem:[#allocation3 + $0xb4] sm:$0xe] }
 0x3cd   : > { %v11154_v33 = vcombine.low %v6351_v29, %v6354_v36  ;;  %v6381_v29 = vrot.slane %v11150_v20, 5  ;;  %v11178_v6 = vcombine.low %v6365_v9, %v6368_v49 }
 0x3cf   : > { %12092 = vst [vmem:[#allocation10_spill] sm:$0xff] %v11154_v33  ;;  %12094 = vst [vmem:[#allocation13_spill] sm:$0xff] %v11178_v6  ;;  %v11207_v6 = vld [vmem:[#allocation3 + $0xc8] sm:$0x1] }
 0x3d0   : > { %8696 = vmatmul.mubr.msk.bf16.vlgmr.msra.gmra.mrb[0].mxu1 %vm1044_vm11, %v10855_v15  ;;  %v6360_v15 = vrot.slane %v11106_v55, 5 }
 0x3d1   : > { %8728 = vmatpush3.bf16.msra.mxu1 %v5575_v37  ;;  %8699 = vmatprep.mubr.msk.bf16.mxu1 %vm1044_vm11, %v10857_v12  ;;  %v6358_v12 = vsel %vm10539_vm1, %v7865_v30, %v6357_v17  ;;  %v6371_v37 = vrot.slane %v11129_v53, 5  ;;  %v6378_v17 = vrot.slane %v11143_v48, 5 }
 0x3d2   : > { %9456 = vmatprep.subr.msk.bf16.mxu1 %vm1093_vm2, %v11118_v61  ;;  %v6361_v62 = vsel %vm10539_vm1, %v6359_v58, %v6360_v15  ;;  %v6385_v58 = vrot.slane %v11152_v59, 5  ;;  %v11176_v15 = vld [vmem:[#allocation3 + $0xb8] sm:$0xf] }
 0x3d3   : > { %v11160_v3 = vcombine.low %v6358_v12, %v6361_v62  ;;  %v6373_v24 = vrot.slane %v6371_v37, 4  ;;  %v6372_v30 = vsel %vm10539_vm1, %v7867_v51, %v6371_v37  ;;  %v6380_v12 = vrot.slane %v6378_v17, 4  ;;  %v11191_v51 = vld [vmem:[#allocation3 + $0xbc] sm:$0x1] }
 0x3d4   : > { %v6387_v1 = vrot.slane %v6385_v58, 4  ;;  %v6388_v37 = vrot.slane %v11163_v10, 5  ;;  %v6379_v8 = vsel %vm10539_vm1, %v7868_v40, %v6378_v17  ;;  %v6386_v9 = vsel %vm10539_vm1, %v7869_v28, %v6385_v58 }
 0x3d5   : > { %12093 = vst [vmem:[#allocation11_spill] sm:$0xff] %v11160_v3  ;;  %v6375_v36 = vsel %vm10539_vm1, %v6373_v24, %v6374_v57  ;;  %v11193_v57 = vld [vmem:[#allocation3 + $0xc4] sm:$0xf]  ;;  %v6392_v24 = vrot.slane %v11168_v4, 5  ;;  %v6402_v28 = vrot.slane %v11191_v51, 5 }
 0x3d6   : > { %v11186_v62 = vcombine.low %v6372_v30, %v6375_v36  ;;  %v7870_v30 = vrot.slane %v6240_v43, 9  ;;  %v6399_v36 = vrot.slane %v11176_v15, 5 }
 0x3d7   : > { %v6394_v17 = vrot.slane %v6392_v24, 4 }
 0x3d8   : > { %8700 = vmatmul.mubr.msk.bf16.gmra.mrb[4].mxu1 %vm1044_vm11, %v10889_v44  ;;  %12095 = vst [vmem:[#allocation14_spill] sm:$0xff] %v11186_v62  ;;  %v6382_v44 = vsel %vm10539_vm1, %v6380_v12, %v6381_v29  ;;  %v6242_v62 = vld [vmem:[#allocation3 + $0xc0] sm:$0xe]  ;;  %v6395_v29 = vrot.slane %v11184_v14, 5  ;;  %v7871_v12 = vrot.slane %v6241_v0, 9  ;;  %v6401_v58 = vrot.slane %v6399_v36, 4 }
 0x3d9   : > { %8703 = vmatprep.mubr.msk.bf16.mxu1 %vm1044_vm11, %v10897_v45  ;;  %v11202_v49 = vcombine.low %v6379_v8, %v6382_v44  ;;  %v6389_v45 = vsel %vm10539_vm1, %v6387_v1, %v6388_v37  ;;  %v6703_v8 = vrot.slane %v11193_v57, 5  ;;  %v6393_v1 = vsel %vm10539_vm1, %v7870_v30, %v6392_v24 }
 0x3da   : > { %v11209_v40 = vcombine.low %v6386_v9, %v6389_v45  ;;  %v6396_v43 = vsel %vm10539_vm1, %v6394_v17, %v6395_v29  ;;  %v6400_v37 = vsel %vm10539_vm1, %v7871_v12, %v6399_v36  ;;  %v7905_v44 = vrot.slane %v6242_v62, 9  ;;  %v5038_v36 = vld [vmem:[#allocation3] sm:$0xf]  ;;  %v11241_v17 = vld [vmem:[#allocation3 + $0x4] sm:$0xf] }
 0x3db   : > { %12096 = vst [vmem:[#allocation15_spill] sm:$0xff] %v11202_v49  ;;  %v11220_v9 = vcombine.low %v6393_v1, %v6396_v43  ;;  %v6403_v0 = vsel %vm10539_vm1, %v6401_v58, %v6402_v28  ;;  %v6705_v45 = vrot.slane %v6703_v8, 4  ;;  %v5106_v29 = vshrl.u32 %v11241_v17, 16  ;;  %v5041_v12 = vld [vmem:[#allocation3 + $0xc] sm:$0xf] }
 0x3dc   : > { %12097 = vst [vmem:[#allocation16_spill] sm:$0xff] %v11209_v40  ;;  %v6706_v40 = vrot.slane %v11207_v6, 5  ;;  %v11225_v49 = vcombine.low %v6400_v37, %v6403_v0  ;;  %v6704_v24 = vsel %vm10539_vm1, %v7905_v44, %v6703_v8  ;;  %v5044_v58 = vld [vmem:[#allocation3 + $0x18] sm:$0xf]  ;;  %v5120_v28 = vshll.u32 %v5041_v12, 16 }
 0x3dd   : > { %12098 = vst [vmem:[#allocation17_spill] sm:$0xff] %v11220_v9  ;;  %v11251_v8 = vld [vmem:[#allocation3 + $0x1c] sm:$0xf]  ;;  %v5108_v37 = vrot.slane %v5106_v29, 4  ;;  %v11257_v44 = vld [vmem:[#allocation3 + $0x8] sm:$0x1] }
 0x3de   : > { %12099 = vst [vmem:[#allocation5_spill] sm:$0xff] %v11225_v49  ;;  %v6707_v30 = vsel %vm10539_vm1, %v6705_v45, %v6706_v40  ;;  %v5096_v40 = vshll.u32 %v5038_v36, 16  ;;  %12102 = vst [vmem:[#allocation19_spill] sm:$0xff] %v11251_v8  ;;  %v5122_v9 = vrot.slane %v5120_v28, 5 }
 0x3df   : > { %v11235_v62 = vcombine.low %v6704_v24, %v6707_v30  ;;  %12104 = vst [vmem:[#allocation21_spill] sm:$0xff] %v11257_v44  ;;  %v5141_v24 = vshrl.u32 %v5044_v58, 16  ;;  %v5144_v30 = vshll.u32 %v5044_v58, 16  ;;  %v5112_v58 = vshll.u32 %v11257_v44, 16 }
 0x3e0   : > { %8704 = vmatmul.mubr.msk.bf16.gmra.mrb[8].mxu1 %vm1044_vm11, %v10915_v26  ;;  %v5093_v26 = vshrl.u32 %v5038_v36, 16  ;;  %v5098_v43 = vrot.slane %v5096_v40, 5  ;;  %v5150_v36 = vshll.u32 %v11251_v8, 16 }
 0x3e1   : > { %8707 = vmatprep.mubr.msk.bf16.mxu1 %vm1044_vm11, %v10921_v22  ;;  %12100 = vst [vmem:[#allocation4_spill] sm:$0xff] %v11235_v62  ;;  %v5102_v22 = vshll.u32 %v11241_v17, 16  ;;  %v5143_v33 = vrot.slane %v5141_v24, 4  ;;  %v5146_v21 = vrot.slane %v5144_v30, 5 }
 0x3e2   : > { %v5095_v1 = vrot.slane %v5093_v26, 4  ;;  %v5154_v26 = vshrl.u32 %v11251_v8, 16  ;;  %v11273_v18 = vrot.slane %v5150_v36, 5 }
 0x3e3   : > { %v5147_v24 = vor.u32 %v5146_v21, %v5143_v33  ;;  %v5198_v33 = vshll.u32 %v11059_v31, 16 }
 0x3e4   : > { %v5099_v62 = vor.u32 %v5098_v43, %v5095_v1  ;;  %v5114_v43 = vrot.slane %v5112_v58, 5 }
 0x3e5   : > { %v5148_v58 = vrot.slane %v5147_v24, 4  ;;  %v11300_v27 = vrot.slane %v5198_v33, 5 }
 0x3e8   : > { %8708 = vmatmul.mubr.msk.bf16.gmra.mrb[12].mxu1 %vm1044_vm11, %v10961_v11  ;;  %v11249_v11 = vld [vmem:[#allocation3 + $0x10] sm:$0xf] }
 0x3e9   : > { %8711 = vmatprep.mubr.msk.bf16.mxu1 %vm1044_vm11, %v10964_v42  ;;  %12101 = vst [vmem:[#allocation6_spill] sm:$0xff] %v11249_v11  ;;  %v5117_v42 = vshrl.u32 %v5041_v12, 16  ;;  %v5126_v0 = vshll.u32 %v11249_v11, 16  ;;  %v5130_v45 = vshrl.u32 %v11249_v11, 16 }
 0x3eb   : > { %v5119_v40 = vrot.slane %v5117_v42, 4  ;;  %v5132_v3 = vrot.slane %v5130_v45, 4  ;;  %v11282_v45 = vld [vmem:[#allocation3 + $0x20] sm:$0x1] }
 0x3ec   : > { %12106 = vst [vmem:[#allocation23_spill] sm:$0xff] %v11282_v45 }
 0x3ed   : > { %v5123_v11 = vor.u32 %v5122_v9, %v5119_v40 }
 0x3ef   : > { %v5124_v40 = vrot.slane %v5123_v11, 4 }
 0x3f0   : > { %8712 = vmatmul.mubr.msk.bf16.gmra.mrb[16].mxu1 %vm1044_vm11, %v10982_v5  ;;  %v11253_v5 = vrot.slane %v5102_v22, 5  ;;  %v5047_v22 = vld [vmem:[#allocation3 + $0x24] sm:$0xf] }
 0x3f1   : > { %8715 = vmatprep.mubr.msk.bf16.mxu1 %vm1044_vm11, %v10989_v50  ;;  %v11255_v50 = vld [vmem:[#allocation3 + $0x28] sm:$0xf]  ;;  %v5165_v42 = vshrl.u32 %v5047_v22, 16  ;;  %v5168_v13 = vshll.u32 %v5047_v22, 16 }
 0x3f2   : > { %12103 = vst [vmem:[#allocation20_spill] sm:$0xff] %v11255_v50  ;;  %v5174_v29 = vshll.u32 %v11255_v50, 16  ;;  %v5178_v12 = vshrl.u32 %v11255_v50, 16  ;;  %v5109_v49 = vor.u32 %v5108_v37, %v11253_v5  ;;  %v5100_v50 = vrot.slane %v5099_v62, 4  ;;  %v5050_v37 = vld [vmem:[#allocation3 + $0x30] sm:$0xf] }
 0x3f3   : > { %v5167_v36 = vrot.slane %v5165_v42, 4  ;;  %v5192_v62 = vshll.u32 %v5050_v37, 16 }
 0x3f4   : > { %v11275_v56 = vrot.slane %v5174_v29, 5  ;;  %v5180_v8 = vrot.slane %v5178_v12, 4  ;;  %v5110_v1 = vrot.slane %v5109_v49, 4  ;;  %v11287_v49 = vld [vmem:[#allocation3 + $0x2c] sm:$0x1]  ;;  %v5160_v29 = vshll.u32 %v11282_v45, 16 }
 0x3f5   : > { %v9538_v12 = vld [vmem:[#allocation3 + $0xcc] sm:$0xff]  }
 0x3f6   : > { %v5181_v9 = vor.u32 %v5180_v8, %v11275_v56  ;;  %v5115_v21 = vsel %vm10176_vm14, %v5110_v1, %v5114_v43  ;;  %v5053_v8 = vld [vmem:[#allocation3 + $0x3c] sm:$0xf]  ;;  %v5194_v43 = vrot.slane %v5192_v62, 5  ;;  %v5162_v44 = vrot.slane %v5160_v29, 5 }
 0x3f7   : > { %v5213_v11 = vshrl.u32 %v5053_v8, 16  ;;  %v5246_v29 = vshll.u32 %v11067_v41, 16 }
 0x3f8   : > { %8716 = vmatmul.mubr.msk.bf16.gmra.mrb[20].mxu1 %vm1044_vm11, %v11000_v47  ;;  %v11271_v47 = vrot.slane %v5126_v0, 5  ;;  %v11280_v0 = vld [vmem:[#allocation3 + $0x14] sm:$0x1] }
 0x3f9   : > { %8719 = vmatprep.mubr.msk.bf16.mxu1 %vm1044_vm11, %v11006_v16  ;;  %v5156_v16 = vrot.slane %v5154_v26, 4  ;;  %12105 = vst [vmem:[#allocation22_spill] sm:$0xff] %v11280_v0  ;;  %v5170_v26 = vrot.slane %v5168_v13, 5  ;;  %v5202_v13 = vshrl.u32 %v11059_v31, 16 }
 0x3fa   : > { %v5133_v28 = vor.u32 %v5132_v3, %v11271_v47  ;;  %v5189_v3 = vshrl.u32 %v5050_v37, 16  ;;  %v5182_v37 = vrot.slane %v5181_v9, 4  ;;  %v5129_v45 = vsel %vm10176_vm14, %v5124_v40, %v11271_v47  ;;  %v5056_v9 = vld [vmem:[#allocation3 + $0x48] sm:$0xf] }
 0x3fb   : > { %v5157_v30 = vor.u32 %v5156_v16, %v11273_v18  ;;  %v5171_v42 = vor.u32 %v5170_v26, %v5167_v36  ;;  %v5204_v31 = vrot.slane %v5202_v13, 4  ;;  %v5222_v36 = vshll.u32 %v11061_v7, 16 }
 0x3fc   : > { %v5134_v22 = vrot.slane %v5133_v28, 4  ;;  %v5191_v1 = vrot.slane %v5189_v3, 4  ;;  %v5216_v28 = vshll.u32 %v5053_v8, 16  ;;  %v5226_v26 = vshrl.u32 %v11061_v7, 16 }
 0x3fd   : > { %v5158_v16 = vrot.slane %v5157_v30, 4  ;;  %v5172_v24 = vrot.slane %v5171_v42, 4  ;;  %v5153_v47 = vsel %vm10176_vm14, %v5148_v58, %v11273_v18  ;;  %v5205_v33 = vor.u32 %v5204_v31, %v11300_v27 }
 0x3fe   : > { %v5215_v7 = vrot.slane %v5213_v11, 4  ;;  %v5218_v13 = vrot.slane %v5216_v28, 5  ;;  %v5237_v40 = vshrl.u32 %v5056_v9, 16  ;;  %v5228_v8 = vrot.slane %v5226_v26, 4  ;;  %v11339_v11 = vld [vmem:[%s9683_s6 + $0x40] sm:$0xf] }
 0x3ff   : > { %v5163_v62 = vsel %vm10176_vm14, %v5158_v16, %v5162_v44  ;;  %v5177_v18 = vsel %vm10176_vm14, %v5172_v24, %v11275_v56  ;;  %v5208_v44 = vshll.u32 %v11063_v19, 16  ;;  %v5232_v56 = vshll.u32 %v11065_v52, 16  ;;  %v5062_v19 = vld [vmem:[#allocation3 + $0x60] sm:$0xf] }
 0x400   : > { %8720 = vmatmul.mubr.msk.bf16.gmra.mrb[24].mxu1 %vm1044_vm11, %v11018_v54  ;;  %v5105_v54 = vsel %vm10176_vm14, %v5100_v50, %v11253_v5  ;;  %v5184_v5 = vshll.u32 %v11287_v49, 16  ;;  %v11329_v58 = vcombine.low %v5153_v47, %v5163_v62  ;;  %v11336_v31 = vrot.slane %v5246_v29, 5  ;;  %v12111_v63 = vld [vmem:[#allocation22_spill] sm:$0xff] }
 0x401   : > { %8723 = vmatprep.mubr.msk.bf16.mxu1 %vm1044_vm11, %v11020_v46  ;;  %v5136_v46 = vshll.u32 %v11280_v0, 16  ;;  %v7788_v50 = vcombine.low %v5105_v54, %v5115_v21  ;;  %v5195_v54 = vor.u32 %v5194_v43, %v5191_v1  ;;  %v5239_v1 = vrot.slane %v5237_v40, 4 }
 0x402   : > { %v5186_v30 = vrot.slane %v5184_v5, 5  ;;  %v5059_v5 = vld [vmem:[#allocation3 + $0x54] sm:$0xf]  ;;  %v5210_v28 = vrot.slane %v5208_v44, 5  ;;  %v5270_v52 = vshll.u32 %v11074_v25, 16  ;;  %v5285_v26 = vshrl.u32 %v5062_v19, 16 }
 0x403   : > { %v5138_v0 = vrot.slane %v5136_v46, 5  ;;  %v5240_v46 = vshll.u32 %v5056_v9, 16  ;;  %v5196_v42 = vrot.slane %v5195_v54, 4  ;;  %v5288_v9 = vshll.u32 %v5062_v19, 16 }
 0x404   : > { %v5187_v21 = vsel %vm10176_vm14, %v5182_v37, %v5186_v30  ;;  %v5219_v37 = vor.u32 %v5218_v13, %v5215_v7  ;;  %v5261_v30 = vshrl.u32 %v5059_v5, 16  ;;  %v5234_v47 = vrot.slane %v5232_v56, 5 }
 0x405   : > { %v5139_v3 = vsel %vm10176_vm14, %v5134_v22, %v5138_v0  ;;  %v5250_v0 = vshrl.u32 %v11067_v41, 16  ;;  %v11325_v22 = vrot.slane %v5222_v36, 5  ;;  %v11331_v16 = vcombine.low %v5177_v18, %v5187_v21 }
 0x406   : > { %v5803_v41 = vsel %vm1093_vm2, %v11118_v61, 0  ;;  %v5242_v43 = vrot.slane %v5240_v46, 5  ;;  %v5264_v61 = vshll.u32 %v5059_v5, 16  ;;  %v5274_v36 = vshrl.u32 %v11074_v25, 16 }
 0x407   : > { %v5229_v24 = vor.u32 %v5228_v8, %v11325_v22  ;;  %v5294_v62 = vshll.u32 %v11084_v60, 16  ;;  %v5298_v54 = vshrl.u32 %v11084_v60, 16  ;;  %v5256_v40 = vshll.u32 %v11072_v32, 16 }
 0x408   : > { %8724 = vmatmul.mubr.msk.bf16.gmra.mrb[28].mxu1 %vm1044_vm11, %v9538_v12  ;;  %v11327_v12 = vcombine.low %v5129_v45, %v5139_v3  ;;  %v5252_v45 = vrot.slane %v5250_v0, 4  ;;  %v5201_v3 = vsel %vm10176_vm14, %v5196_v42, %v11300_v27  ;;  %v5243_v7 = vor.u32 %v5242_v43, %v5239_v1  ;;  %v5065_v42 = vld [vmem:[#allocation3 + $0x6c] sm:$0xf] }
 0x409   : > { %8729 = vmatprep.mubr.msk.bf16.mxu1 %vm1044_vm11, %v7788_v50  ;;  %v5206_v50 = vrot.slane %v5205_v33, 4  ;;  %v5220_v33 = vrot.slane %v5219_v37, 4  ;;  %v5230_v13 = vrot.slane %v5229_v24, 4  ;;  %v5263_v46 = vrot.slane %v5261_v30, 4 }
 0x40a   : > { %v5253_v25 = vor.u32 %v5252_v45, %v11336_v31  ;;  %v5266_v27 = vrot.slane %v5264_v61, 5  ;;  %v11359_v29 = vrot.slane %v5270_v52, 5  ;;  %v5276_v0 = vrot.slane %v5274_v36, 4  ;;  %v5068_v36 = vld [vmem:[#allocation3 + $0x78] sm:$0xf] }
 0x40b   : > { %v5211_v21 = vsel %vm10176_vm14, %v5206_v50, %v5210_v28  ;;  %v5287_v18 = vrot.slane %v5285_v26, 4  ;;  %v5290_v60 = vrot.slane %v5288_v9, 5  ;;  %v11361_v44 = vrot.slane %v5294_v62, 5 }
 0x40c   : > { %v5300_v8 = vrot.slane %v5298_v54, 4  ;;  %v5318_v5 = vshll.u32 %v11096_v23, 16  ;;  %v11365_v50 = vcombine.low %v5201_v3, %v5211_v21  ;;  %v5244_v37 = vrot.slane %v5243_v7, 4 }
 0x40d   : > { %v5254_v56 = vrot.slane %v5253_v25, 4  ;;  %v5225_v32 = vsel %vm10176_vm14, %v5220_v33, %v11325_v22  ;;  %v5235_v19 = vsel %vm10176_vm14, %v5230_v13, %v5234_v47  ;;  %v5267_v1 = vor.u32 %v5266_v27, %v5263_v46 }
 0x40e   : > { %v5258_v43 = vrot.slane %v5256_v40, 5  ;;  %v5309_v45 = vshrl.u32 %v5065_v42, 16  ;;  %v5312_v28 = vshll.u32 %v5065_v42, 16  ;;  %v5291_v24 = vor.u32 %v5290_v60, %v5287_v18 }
 0x40f   : > { %v5301_v30 = vor.u32 %v5300_v8, %v11361_v44  ;;  %v11378_v61 = vrot.slane %v5318_v5, 5  ;;  %v11380_v22 = vcombine.low %v5225_v32, %v5235_v19  ;;  %v5249_v26 = vsel %vm10176_vm14, %v5244_v37, %v11336_v31  ;;  %v5071_v8 = vld [vmem:[#allocation3 + $0x84] sm:$0xf] }
 0x410   : > { %8730 = vmatmul.mubr.msk.bf16.vlgmr.msra.gmra.mrb[0].mxu1 %vm1044_vm11, %v11327_v12  ;;  %v5259_v9 = vsel %vm10176_vm14, %v5254_v56, %v5258_v43  ;;  %v5280_v3 = vshll.u32 %v11079_v38, 16  ;;  %v5268_v47 = vrot.slane %v5267_v1, 4  ;;  %v5304_v62 = vshll.u32 %v11090_v34, 16 }
 0x411   : > { %8762 = vmatpush3.bf16.msra.mxu1 %v5803_v41  ;;  %8733 = vmatprep.mubr.msk.bf16.mxu1 %vm1044_vm11, %v11329_v58  ;;  %v5322_v41 = vshrl.u32 %v11096_v23, 16  ;;  %v5277_v23 = vor.u32 %v5276_v0, %v11359_v29  ;;  %v5342_v54 = vshll.u32 %v11108_v2, 16  ;;  %v5346_v21 = vshrl.u32 %v11108_v2, 16 }
 0x412   : > { %9457 = vmatprep.subr.msk.bf16.mxu1 %vm1093_vm2, %v11339_v11  ;;  %v5311_v33 = vrot.slane %v5309_v45, 4  ;;  %v5314_v7 = vrot.slane %v5312_v28, 5  ;;  %v5333_v25 = vshrl.u32 %v5068_v36, 16  ;;  %v5336_v13 = vshll.u32 %v5068_v36, 16  ;;  %v5074_v45 = vld [vmem:[#allocation3 + $0x90] sm:$0xf] }
 0x413   : > { %v5324_v52 = vrot.slane %v5322_v41, 4  ;;  %v5278_v40 = vrot.slane %v5277_v23, 4  ;;  %v5292_v46 = vrot.slane %v5291_v24, 4  ;;  %v5302_v27 = vrot.slane %v5301_v30, 4 }
 0x414   : > { %v11392_v0 = vcombine.low %v5249_v26, %v5259_v9  ;;  %v5282_v18 = vrot.slane %v5280_v3, 5  ;;  %v5306_v38 = vrot.slane %v5304_v62, 5  ;;  %v5328_v34 = vshll.u32 %v11106_v55, 16 }
 0x415   : > { %v5325_v31 = vor.u32 %v5324_v52, %v11378_v61  ;;  %v11397_v60 = vrot.slane %v5342_v54, 5  ;;  %v5348_v2 = vrot.slane %v5346_v21, 4  ;;  %v5273_v42 = vsel %vm10176_vm14, %v5268_v47, %v11359_v29 }
 0x416   : > { %v5315_v5 = vor.u32 %v5314_v7, %v5311_v33  ;;  %v5335_v41 = vrot.slane %v5333_v25, 4  ;;  %v5338_v37 = vrot.slane %v5336_v13, 5  ;;  %v5283_v56 = vsel %vm10176_vm14, %v5278_v40, %v5282_v18 }
 0x417   : > { %v5297_v55 = vsel %vm10176_vm14, %v5292_v46, %v11361_v44  ;;  %v5307_v32 = vsel %vm10176_vm14, %v5302_v27, %v5306_v38  ;;  %v5326_v19 = vrot.slane %v5325_v31, 4  ;;  %v5357_v1 = vshrl.u32 %v5071_v8, 16  ;;  %v5077_v38 = vld [vmem:[#allocation3 + $0x9c] sm:$0xf] }
 0x418   : > { %8734 = vmatmul.mubr.msk.bf16.gmra.mrb[4].mxu1 %vm1044_vm11, %v11331_v16  ;;  %v5360_v43 = vshll.u32 %v5071_v8, 16  ;;  %v5366_v23 = vshll.u32 %v11129_v53, 16  ;;  %v5370_v29 = vshrl.u32 %v11129_v53, 16  ;;  %v5330_v28 = vrot.slane %v5328_v34, 5 }
 0x419   : > { %8737 = vmatprep.mubr.msk.bf16.mxu1 %vm1044_vm11, %v11365_v50  ;;  %v5349_v24 = vor.u32 %v5348_v2, %v11397_v60  ;;  %v5390_v30 = vshll.u32 %v11143_v48, 16  ;;  %v5394_v52 = vshrl.u32 %v11143_v48, 16  ;;  %v11416_v36 = vcombine.low %v5273_v42, %v5283_v56 }
 0x41a   : > { %v11418_v44 = vcombine.low %v5297_v55, %v5307_v32  ;;  %v5316_v26 = vrot.slane %v5315_v5, 4  ;;  %v5339_v9 = vor.u32 %v5338_v37, %v5335_v41  ;;  %v5331_v3 = vsel %vm10176_vm14, %v5326_v19, %v5330_v28  ;;  %v5080_v5 = vld [vmem:[#allocation3 + $0xa8] sm:$0xf] }
 0x41b   : > { %v5352_v47 = vshll.u32 %v11120_v35, 16  ;;  %v5381_v53 = vshrl.u32 %v5074_v45, 16  ;;  %v5384_v62 = vshll.u32 %v5074_v45, 16  ;;  %v5359_v54 = vrot.slane %v5357_v1, 4 }
 0x41c   : > { %v5362_v21 = vrot.slane %v5360_v43, 5  ;;  %v5368_v33 = vrot.slane %v5366_v23, 5  ;;  %v5372_v7 = vrot.slane %v5370_v29, 4  ;;  %v5350_v48 = vrot.slane %v5349_v24, 4 }
 0x41d   : > { %v5392_v25 = vrot.slane %v5390_v30, 5  ;;  %v5396_v13 = vrot.slane %v5394_v52, 4  ;;  %v5321_v40 = vsel %vm10176_vm14, %v5316_v26, %v11378_v61  ;;  %v5340_v35 = vrot.slane %v5339_v9, 4 }
 0x41e   : > { %v11430_v46 = vcombine.low %v5321_v40, %v5331_v3  ;;  %v5354_v27 = vrot.slane %v5352_v47, 5  ;;  %v5383_v31 = vrot.slane %v5381_v53, 4  ;;  %v5386_v18 = vrot.slane %v5384_v62, 5 }
 0x41f   : > { %v5363_v34 = vor.u32 %v5362_v21, %v5359_v54  ;;  %v5373_v2 = vor.u32 %v5372_v7, %v5368_v33  ;;  %v5414_v8 = vshll.u32 %v11152_v59, 16  ;;  %v5418_v42 = vshrl.u32 %v11152_v59, 16  ;;  %v5083_v54 = vld [vmem:[#allocation3 + $0xb4] sm:$0xf] }
 0x420   : > { %8738 = vmatmul.mubr.msk.bf16.gmra.mrb[8].mxu1 %vm1044_vm11, %v11380_v22  ;;  %v5355_v41 = vsel %vm10176_vm14, %v5350_v48, %v5354_v27  ;;  %v5397_v37 = vor.u32 %v5396_v13, %v5392_v25  ;;  %v5438_v61 = vshll.u32 %v11168_v4, 16  ;;  %v5442_v56 = vshrl.u32 %v11168_v4, 16 }
 0x421   : > { %8741 = vmatprep.mubr.msk.bf16.mxu1 %vm1044_vm11, %v11392_v0  ;;  %v5345_v55 = vsel %vm10176_vm14, %v5340_v35, %v11397_v60  ;;  %v5376_v32 = vshll.u32 %v11136_v39, 16  ;;  %v5405_v19 = vshrl.u32 %v5077_v38, 16  ;;  %v5408_v1 = vshll.u32 %v5077_v38, 16 }
 0x422   : > { %v5387_v43 = vor.u32 %v5386_v18, %v5383_v31  ;;  %v5400_v59 = vshll.u32 %v11150_v20, 16  ;;  %v5429_v23 = vshrl.u32 %v5080_v5, 16  ;;  %v5432_v29 = vshll.u32 %v5080_v5, 16 }
 0x423   : > { %v11443_v45 = vcombine.low %v5345_v55, %v5355_v41  ;;  %v5374_v28 = vrot.slane %v5373_v2, 4  ;;  %v5416_v24 = vrot.slane %v5414_v8, 5  ;;  %v5420_v30 = vrot.slane %v5418_v42, 4 }
 0x424   : > { %v5364_v4 = vrot.slane %v5363_v34, 4  ;;  %v5398_v52 = vrot.slane %v5397_v37, 4  ;;  %v5440_v60 = vrot.slane %v5438_v61, 5  ;;  %v5444_v26 = vrot.slane %v5442_v56, 4 }
 0x425   : > { %v5378_v39 = vrot.slane %v5376_v32, 5  ;;  %v5407_v9 = vrot.slane %v5405_v19, 4  ;;  %v5410_v20 = vrot.slane %v5408_v1, 5  ;;  %v5388_v3 = vrot.slane %v5387_v43, 4 }
 0x426   : > { %v5402_v47 = vrot.slane %v5400_v59, 5  ;;  %v5431_v53 = vrot.slane %v5429_v23, 4  ;;  %v5434_v62 = vrot.slane %v5432_v29, 5  ;;  %v5421_v7 = vor.u32 %v5420_v30, %v5416_v24 }
 0x427   : > { %v5379_v21 = vsel %vm10176_vm14, %v5374_v28, %v5378_v39  ;;  %v5462_v48 = vshll.u32 %v11176_v15, 16  ;;  %v5466_v13 = vshrl.u32 %v11176_v15, 16  ;;  %v5369_v40 = vsel %vm10176_vm14, %v5364_v4, %v5368_v33 }
 0x428   : > { %8742 = vmatmul.mubr.msk.bf16.gmra.mrb[12].mxu1 %vm1044_vm11, %v11416_v36  ;;  %v5403_v35 = vsel %vm10176_vm14, %v5398_v52, %v5402_v47  ;;  %v5445_v27 = vor.u32 %v5444_v26, %v5440_v60  ;;  %v5411_v31 = vor.u32 %v5410_v20, %v5407_v9  ;;  %v5424_v18 = vshll.u32 %v11163_v10, 16  ;;  %v7872_v20 = vld [vmem:[%s9683_s6 + $0x2c] sm:$0xf] }
 0x429   : > { %8745 = vmatprep.mubr.msk.bf16.mxu1 %vm1044_vm11, %v11418_v44  ;;  %v5453_v38 = vshrl.u32 %v5083_v54, 16  ;;  %v5456_v34 = vshll.u32 %v5083_v54, 16  ;;  %v11458_v2 = vcombine.low %v5369_v40, %v5379_v21  ;;  %v5393_v8 = vsel %vm10176_vm14, %v5388_v3, %v5392_v25 }
 0x42a   : > { %v5435_v42 = vor.u32 %v5434_v62, %v5431_v53  ;;  %v5448_v15 = vshll.u32 %v11184_v14, 16  ;;  %v11463_v5 = vcombine.low %v5393_v8, %v5403_v35  ;;  %v5422_v33 = vrot.slane %v5421_v7, 4 }
 0x42b   : > { %v5464_v41 = vrot.slane %v5462_v48, 5  ;;  %v5468_v37 = vrot.slane %v5466_v13, 4  ;;  %v5446_v61 = vrot.slane %v5445_v27, 4  ;;  %v5412_v10 = vrot.slane %v5411_v31, 4 }
 0x42c   : > { %v5426_v56 = vrot.slane %v5424_v18, 5  ;;  %v5455_v55 = vrot.slane %v5453_v38, 4  ;;  %v5458_v32 = vrot.slane %v5456_v34, 5  ;;  %v5436_v25 = vrot.slane %v5435_v42, 4  ;;  %v7906_v34 = vld [vmem:[%s9683_s6 + $0x38] sm:$0xf] }
 0x42d   : > { %v5450_v19 = vrot.slane %v5448_v15, 5  ;;  %v5469_v1 = vor.u32 %v5468_v37, %v5464_v41  ;;  %v5417_v59 = vsel %vm10176_vm14, %v5412_v10, %v5416_v24  ;;  %v5472_v29 = vshll.u32 %v11191_v51, 16 }
 0x42e   : > { %v5427_v14 = vsel %vm10176_vm14, %v5422_v33, %v5426_v56  ;;  %v5459_v23 = vor.u32 %v5458_v32, %v5455_v55  ;;  %v5441_v30 = vsel %vm10176_vm14, %v5436_v25, %v5440_v60  ;;  %v6031_v60 = vsel %vm1093_vm2, %v11339_v11, 0  ;;  %v12107_v32 = vld [vmem:[#allocation21_spill] sm:$0xff] }
 0x42f   : > { %v5451_v43 = vsel %vm10176_vm14, %v5446_v61, %v5450_v19  ;;  %v11476_v28 = vcombine.low %v5417_v59, %v5427_v14  ;;  %v5470_v52 = vrot.slane %v5469_v1, 4  ;;  %v5474_v24 = vrot.slane %v5472_v29, 5  ;;  %v12109_v59 = vld [vmem:[#allocation6_spill] sm:$0xff] }
 0x430   : > { %8746 = vmatmul.mubr.msk.bf16.gmra.mrb[16].mxu1 %vm1044_vm11, %v11430_v46  ;;  %v11480_v4 = vcombine.low %v5441_v30, %v5451_v43  ;;  %v5460_v26 = vrot.slane %v5459_v23, 4  ;;  %v5780_v11 = vshll.u32 %v11193_v57, 16  ;;  %v5784_v3 = vshrl.u32 %v11193_v57, 16 }
 0x431   : > { %8749 = vmatprep.mubr.msk.bf16.mxu1 %vm1044_vm11, %v11443_v45  ;;  %v5475_v39 = vsel %vm10176_vm14, %v5470_v52, %v5474_v24  ;;  %v5790_v40 = vshll.u32 %v11207_v6, 16  ;;  %v6503_v6 = vsel %vm1093_vm2, %v7872_v20, 0  ;;  %v6294_v33 = vrot.slane %v11241_v17, 5  ;;  %v9540_v17 = vld [vmem:[#allocation2] sm:$0xff] }
 0x432   : > { %v5465_v51 = vsel %vm10176_vm14, %v5460_v26, %v5464_v41  ;;  %v5782_v62 = vrot.slane %v5780_v11, 5  ;;  %v5786_v54 = vrot.slane %v5784_v3, 4  ;;  %v6226_v41 = vld [vmem:[#allocation3] sm:$0xe]  ;;  %v6297_v25 = vrot.slane %v12107_v32, 5  ;;  %v12113_v11 = vld [vmem:[#allocation20_spill] sm:$0xff] }
 0x433   : > { %v11490_v9 = vcombine.low %v5465_v51, %v5475_v39  ;;  %v5792_v27 = vrot.slane %v5790_v40, 5  ;;  %v7856_v56 = vrot.slane %v6226_v41, 9  ;;  %v6296_v55 = vrot.slane %v6294_v33, 4  ;;  %v6227_v26 = vld [vmem:[#allocation3 + $0xc] sm:$0xe] }
 0x434   : > { %v5787_v48 = vor.u32 %v5786_v54, %v5782_v62  ;;  %v6301_v23 = vrot.slane %v12109_v59, 5  ;;  %v6304_v39 = vrot.slane %v12111_v63, 5  ;;  %v6228_v51 = vld [vmem:[#allocation3 + $0x18] sm:$0xe]  ;;  %v6315_v3 = vrot.slane %v12113_v11, 5 }
 0x435   : > { %v6295_v1 = vsel %vm10539_vm1, %v7856_v56, %v6294_v33  ;;  %v6298_v43 = vsel %vm10539_vm1, %v6296_v55, %v6297_v25  ;;  %v7925_v40 = vld [vmem:[%s9683_s6 + $0x44] sm:$0xf]  ;;  %v6243_v33 = vld [vmem:[#allocation3 + $0xcc] sm:$0xe] }
 0x436   : > { %v5788_v35 = vrot.slane %v5787_v48, 4  ;;  %v6303_v52 = vrot.slane %v6301_v23, 4  ;;  %v7924_v41 = vrot.slane %v6243_v33, 9 }
 0x438   : > { %8750 = vmatmul.mubr.msk.bf16.gmra.mrb[20].mxu1 %vm1044_vm11, %v11458_v2  ;;  %v5793_v31 = vsel %vm10176_vm14, %v5788_v35, %v5792_v27  ;;  %v6229_v35 = vld [vmem:[#allocation3 + $0x24] sm:$0xe] }
 0x439   : > { %8753 = vmatprep.mubr.msk.bf16.mxu1 %vm1044_vm11, %v11463_v5  ;;  %v7859_v27 = vrot.slane %v6229_v35, 9 }
 0x440   : > { %8754 = vmatmul.mubr.msk.bf16.gmra.mrb[24].mxu1 %vm1044_vm11, %v11476_v28 }
 0x441   : > { %8757 = vmatprep.mubr.msk.bf16.mxu1 %vm1044_vm11, %v11480_v4 }
 0x448   : > { %8758 = vmatmul.mubr.msk.bf16.gmra.mrb[28].mxu1 %vm1044_vm11, %v11490_v9 }
 0x449   : > { %8763 = vmatprep.mubr.msk.bf16.mxu1 %vm1044_vm11, %v11327_v12  ;;  %v5086_v12 = vld [vmem:[#allocation3 + $0xc0] sm:$0xf] }
 0x44a   : > { %v5771_v47 = vshrl.u32 %v5086_v12, 16  ;;  %v5774_v53 = vshll.u32 %v5086_v12, 16  ;;  %v6305_v12 = vsel %vm10539_vm1, %v6303_v52, %v6304_v39  ;;  %v9542_v52 = vld [vmem:[#allocation2 + $0x8] sm:$0xff] }
 0x44c   : > { %v5773_v21 = vrot.slane %v5771_v47, 4  ;;  %v5776_v7 = vrot.slane %v5774_v53, 5  ;;  %v7858_v47 = vrot.slane %v6228_v51, 9 }
 0x44e   : > { %v5777_v13 = vor.u32 %v5776_v7, %v5773_v21  ;;  %v6717_v21 = vsel %vm1093_vm2, %v7906_v34, 0 }
 0x450   : > { %8764 = vmatmul.mubr.msk.bf16.vlgmr.msra.gmra.mrb[0].mxu1 %vm1044_vm11, %v11329_v58  ;;  %v5778_v57 = vrot.slane %v5777_v13, 4  ;;  %v6317_v13 = vrot.slane %v6315_v3, 4 }
 0x451   : > { %8796 = vmatpush3.bf16.msra.mxu1 %v6031_v60  ;;  %8767 = vmatprep.mubr.msk.bf16.mxu1 %vm1044_vm11, %v11331_v16 }
 0x452   : > { %9458 = vmatprep.subr.msk.bf16.mxu1 %vm1093_vm2, %v7872_v20  ;;  %v5783_v18 = vsel %vm10176_vm14, %v5778_v57, %v5782_v62  ;;  %v7857_v20 = vrot.slane %v6227_v26, 9  ;;  %v6318_v57 = vrot.slane %v11287_v49, 5  ;;  %v12117_v49 = vld [vmem:[#allocation12_spill] sm:$0xff] }
 0x453   : > { %v7821_v38 = vcombine.low %v5783_v18, %v5793_v31  ;;  %v6316_v18 = vsel %vm10539_vm1, %v7859_v27, %v6315_v3  ;;  %v9544_v3 = vld [vmem:[#allocation2 + $0x20] sm:$0xff]  ;;  %v9547_v27 = vld [vmem:[#allocation2 + $0x50] sm:$0xff] }
 0x454   : > { %v6302_v62 = vsel %vm10539_vm1, %v7857_v20, %v6301_v23  ;;  %v6319_v31 = vsel %vm10539_vm1, %v6317_v13, %v6318_v57 }
 0x455   : > { %v7874_v54 = vcombine.low %v6302_v62, %v6305_v12  ;;  %v9545_v62 = vld [vmem:[#allocation2 + $0x38] sm:$0xff] }
 0x458   : > { %8768 = vmatmul.mubr.msk.bf16.gmra.mrb[4].mxu1 %vm1044_vm11, %v11365_v50 }
 0x459   : > { %8771 = vmatprep.mubr.msk.bf16.mxu1 %vm1044_vm11, %v11380_v22 }
 0x460   : > { %8772 = vmatmul.mubr.msk.bf16.gmra.mrb[8].mxu1 %vm1044_vm11, %v11392_v0 }
 0x461   : > { %8775 = vmatprep.mubr.msk.bf16.mxu1 %vm1044_vm11, %v11416_v36 }
 0x468   : > { %8776 = vmatmul.mubr.msk.bf16.gmra.mrb[12].mxu1 %vm1044_vm11, %v11418_v44 }
 0x469   : > { %8779 = vmatprep.mubr.msk.bf16.mxu1 %vm1044_vm11, %v11430_v46 }
 0x470   : > { %8780 = vmatmul.mubr.msk.bf16.gmra.mrb[16].mxu1 %vm1044_vm11, %v11443_v45 }
 0x471   : > { %8783 = vmatprep.mubr.msk.bf16.mxu1 %vm1044_vm11, %v11458_v2 }
 0x478   : > { %8784 = vmatmul.mubr.msk.bf16.gmra.mrb[20].mxu1 %vm1044_vm11, %v11463_v5 }
 0x479   : > { %8787 = vmatprep.mubr.msk.bf16.mxu1 %vm1044_vm11, %v11476_v28 }
 0x480   : > { %8788 = vmatmul.mubr.msk.bf16.gmra.mrb[24].mxu1 %vm1044_vm11, %v11480_v4 }
 0x481   : > { %8791 = vmatprep.mubr.msk.bf16.mxu1 %vm1044_vm11, %v11490_v9 }
 0x488   : > { %8792 = vmatmul.mubr.msk.bf16.gmra.mrb[28].mxu1 %vm1044_vm11, %v7821_v38 }
 0x489   : > { %8797 = vmatprep.mubr.msk.bf16.mxu1 %vm1044_vm11, %v11329_v58  ;;  %v5089_v58 = vld [vmem:[#allocation3 + $0xcc] sm:$0xf] }
 0x490   : > { %8798 = vmatmul.mubr.msk.bf16.vlgmr.msra.gmra.mrb[0].mxu1 %vm1044_vm11, %v11331_v16  ;;  %v11557_v16 = vld [vmem:[#allocation3 + $0xd0] sm:$0xf] }
 0x491   : > { %8830 = vmatpush3.bf16.msra.mxu1 %v6503_v6  ;;  %8801 = vmatprep.mubr.msk.bf16.mxu1 %vm1044_vm11, %v11365_v50  ;;  %v5999_v50 = vshrl.u32 %v5089_v58, 16  ;;  %v12114_v6 = vld [vmem:[#allocation7_spill] sm:$0xff] }
 0x492   : > { %9459 = vmatprep.subr.msk.bf16.mxu1 %vm1093_vm2, %v7906_v34  ;;  %v12115_v34 = vld [vmem:[#allocation8_spill] sm:$0xff] }
 0x498   : > { %8802 = vmatmul.mubr.msk.bf16.gmra.mrb[4].mxu1 %vm1044_vm11, %v11380_v22  ;;  %v6002_v22 = vshll.u32 %v5089_v58, 16  ;;  %v12116_v58 = vld [vmem:[#allocation9_spill] sm:$0xff] }
 0x499   : > { %8805 = vmatprep.mubr.msk.bf16.mxu1 %vm1044_vm11, %v11392_v0  ;;  %v6008_v0 = vshll.u32 %v11557_v16, 16 }
 0x49b   : > { %v6010_v8 = vrot.slane %v6008_v0, 5  ;;  %v12120_v0 = vld [vmem:[#allocation13_spill] sm:$0xff] }
 0x4a0   : > { %8806 = vmatmul.mubr.msk.bf16.gmra.mrb[8].mxu1 %vm1044_vm11, %v11416_v36  ;;  %v6012_v36 = vshrl.u32 %v11557_v16, 16 }
 0x4a1   : > { %8809 = vmatprep.mubr.msk.bf16.mxu1 %vm1044_vm11, %v11418_v44  ;;  %v6001_v44 = vrot.slane %v5999_v50, 4  ;;  %v12118_v50 = vld [vmem:[#allocation10_spill] sm:$0xff] }
 0x4a2   : > { %v6014_v42 = vrot.slane %v6012_v36, 4  ;;  %v12121_v36 = vld [vmem:[#allocation14_spill] sm:$0xff] }
 0x4a4   : > { %v6015_v15 = vor.u32 %v6014_v42, %v6010_v8  ;;  %v12125_v42 = vld [vmem:[#allocation5_spill] sm:$0xff] }
 0x4a6   : > { %v6016_v61 = vrot.slane %v6015_v15, 4  ;;  %v12126_v15 = vld [vmem:[#allocation4_spill] sm:$0xff] }
 0x4a8   : > { %8810 = vmatmul.mubr.msk.bf16.gmra.mrb[12].mxu1 %vm1044_vm11, %v11430_v46  ;;  %v6004_v46 = vrot.slane %v6002_v22, 5  ;;  %v12119_v22 = vld [vmem:[#allocation11_spill] sm:$0xff] }
 0x4a9   : > { %8813 = vmatprep.mubr.msk.bf16.mxu1 %vm1044_vm11, %v11443_v45  ;;  %v11565_v45 = vld [vmem:[#allocation3 + $0xd4] sm:$0x1] }
 0x4b0   : > { %8814 = vmatmul.mubr.msk.bf16.gmra.mrb[16].mxu1 %vm1044_vm11, %v11458_v2  ;;  %v6005_v2 = vor.u32 %v6004_v46, %v6001_v44  ;;  %v12122_v44 = vld [vmem:[#allocation15_spill] sm:$0xff]  ;;  %v12123_v46 = vld [vmem:[#allocation16_spill] sm:$0xff] }
 0x4b1   : > { %8817 = vmatprep.mubr.msk.bf16.mxu1 %vm1044_vm11, %v11463_v5  ;;  %v6018_v5 = vshll.u32 %v11565_v45, 16 }
 0x4b2   : > { %v6006_v37 = vrot.slane %v6005_v2, 4  ;;  %v6931_v2 = vsel %vm1093_vm2, %v7925_v40, 0 }
 0x4b3   : > { %v6020_v10 = vrot.slane %v6018_v5, 5  ;;  %v6917_v5 = vrot.slane %v11557_v16, 5  ;;  %v11701_v16 = vld [vmem:[%s9673_s27 + $0x1] ss:$0 sm:$0xff] }
 0x4b4   : > { %v6011_v19 = vsel %vm10176_vm14, %v6006_v37, %v6010_v8  ;;  %v12124_v8 = vld [vmem:[#allocation17_spill] sm:$0xff] }
 0x4b5   : > { %v6021_v14 = vsel %vm10176_vm14, %v6016_v61, %v6020_v10  ;;  %v6919_v37 = vrot.slane %v6917_v5, 4  ;;  %v6920_v61 = vrot.slane %v11565_v45, 5  ;;  %v6918_v10 = vsel %vm10539_vm1, %v7924_v41, %v6917_v5  ;;  %v9552_v41 = vld [vmem:[#allocation2 + $0x60] sm:$0xff] }
 0x4b6   : > { %v7839_v29 = vcombine.low %v6011_v19, %v6021_v14 }
 0x4b7   : > { %v6921_v56 = vsel %vm10539_vm1, %v6919_v37, %v6920_v61 }
 0x4b8   : > { %8818 = vmatmul.mubr.msk.bf16.gmra.mrb[20].mxu1 %vm1044_vm11, %v11476_v28  ;;  %v12110_v28 = vld [vmem:[#allocation19_spill] sm:$0xff]  ;;  %v7926_v55 = vcombine.low %v6918_v10, %v6921_v56  ;;  %v9553_v10 = vld [vmem:[#allocation2 + $0x78] sm:$0xff] }
 0x4b9   : > { %8821 = vmatprep.mubr.msk.bf16.mxu1 %vm1044_vm11, %v11480_v4  ;;  %v6308_v30 = vrot.slane %v12110_v28, 5  ;;  %v7873_v4 = vcombine.low %v6295_v1, %v6298_v43  ;;  %v9539_v1 = vld [vmem:[#allocation2 + $0x10] sm:$0xff] }
 0x4bb   : > { %v6310_v24 = vrot.slane %v6308_v30, 4  ;;  %v6309_v7 = vsel %vm10539_vm1, %v7858_v47, %v6308_v30  ;;  %v9541_v30 = vld [vmem:[#allocation2 + $0x18] sm:$0xff] }
 0x4c0   : > { %8822 = vmatmul.mubr.msk.bf16.gmra.mrb[24].mxu1 %vm1044_vm11, %v11490_v9  ;;  %v12112_v9 = vld [vmem:[#allocation23_spill] sm:$0xff] }
 0x4c1   : > { %8825 = vmatprep.mubr.msk.bf16.mxu1 %vm1044_vm11, %v7821_v38  ;;  %v6311_v60 = vrot.slane %v12112_v9, 5  ;;  %v7876_v38 = vcombine.low %v6316_v18, %v6319_v31 }
 0x4c3   : > { %v6312_v53 = vsel %vm10539_vm1, %v6310_v24, %v6311_v60  ;;  %v9543_v60 = vld [vmem:[#allocation2 + $0x30] sm:$0xff] }
 0x4c4   : > { %v7875_v48 = vcombine.low %v6309_v7, %v6312_v53 }
 0x4c8   : > { %8826 = vmatmul.mubr.msk.bf16.gmra.mrb[28].mxu1 %vm1044_vm11, %v7839_v29 }
 0x4c9   : > { %8831 = vmatprep.mubr.msk.bf16.mxu1 %vm1044_vm11, %v7873_v4 }
 0x4d0   : > { %8832 = vmatmul.mubr.msk.bf16.vlgmr.msra.gmra.mrb[0].mxu1 %vm1044_vm11, %v7874_v54 }
 0x4d1   : > { %8864 = vmatpush3.bf16.msra.mxu1 %v6717_v21  ;;  %8835 = vmatprep.mubr.msk.bf16.mxu1 %vm1044_vm11, %v7875_v48  ;;  %v9546_v21 = vld [vmem:[#allocation2 + $0x28] sm:$0xff] }
 0x4d2   : > { %9460 = vmatprep.subr.msk.bf16.mxu1 %vm1093_vm2, %v7925_v40 }
 0x4d8   : > { %8836 = vmatmul.mubr.msk.bf16.gmra.mrb[4].mxu1 %vm1044_vm11, %v7876_v38 }
 0x4d9   : > { %8839 = vmatprep.mubr.msk.bf16.mxu1 %vm1044_vm11, %v12114_v6 }
 0x4e0   : > { %8840 = vmatmul.mubr.msk.bf16.gmra.mrb[8].mxu1 %vm1044_vm11, %v12115_v34 }
 0x4e1   : > { %8843 = vmatprep.mubr.msk.bf16.mxu1 %vm1044_vm11, %v12116_v58 }
 0x4e8   : > { %8844 = vmatmul.mubr.msk.bf16.gmra.mrb[12].mxu1 %vm1044_vm11, %v12117_v49 }
 0x4e9   : > { %8847 = vmatprep.mubr.msk.bf16.mxu1 %vm1044_vm11, %v12118_v50 }
 0x4f0   : > { %8848 = vmatmul.mubr.msk.bf16.gmra.mrb[16].mxu1 %vm1044_vm11, %v12119_v22 }
 0x4f1   : > { %8851 = vmatprep.mubr.msk.bf16.mxu1 %vm1044_vm11, %v12120_v0 }
 0x4f8   : > { %8852 = vmatmul.mubr.msk.bf16.gmra.mrb[20].mxu1 %vm1044_vm11, %v12121_v36 }
 0x4f9   : > { %8855 = vmatprep.mubr.msk.bf16.mxu1 %vm1044_vm11, %v12122_v44 }
 0x500   : > { %8856 = vmatmul.mubr.msk.bf16.gmra.mrb[24].mxu1 %vm1044_vm11, %v12123_v46 }
 0x501   : > { %8859 = vmatprep.mubr.msk.bf16.mxu1 %vm1044_vm11, %v12124_v8 }
 0x508   : > { %8860 = vmatmul.mubr.msk.bf16.gmra.mrb[28].mxu1 %vm1044_vm11, %v12125_v42 }
 0x509   : > { %8865 = vmatprep.mubr.msk.bf16.mxu1 %vm1044_vm11, %v7874_v54 }
 0x510   : > { %8866 = vmatmul.mubr.msk.bf16.vlgmr.msra.gmra.mrb[0].mxu1 %vm1044_vm11, %v7875_v48 }
 0x511   : > { %8898 = vmatpush3.bf16.msra.mxu1 %v6931_v2  ;;  %8869 = vmatprep.mubr.msk.bf16.mxu1 %vm1044_vm11, %v7876_v38  ;;  %v9551_v2 = vld [vmem:[#allocation2 + $0x70] sm:$0xff] }
 0x518   : > { %8870 = vmatmul.mubr.msk.bf16.gmra.mrb[4].mxu1 %vm1044_vm11, %v12114_v6 }
 0x519   : > { %8873 = vmatprep.mubr.msk.bf16.mxu1 %vm1044_vm11, %v12115_v34 }
 0x520   : > { %8874 = vmatmul.mubr.msk.bf16.gmra.mrb[8].mxu1 %vm1044_vm11, %v12116_v58 }
 0x521   : > { %8877 = vmatprep.mubr.msk.bf16.mxu1 %vm1044_vm11, %v12117_v49 }
 0x528   : > { %8878 = vmatmul.mubr.msk.bf16.gmra.mrb[12].mxu1 %vm1044_vm11, %v12118_v50 }
 0x529   : > { %8881 = vmatprep.mubr.msk.bf16.mxu1 %vm1044_vm11, %v12119_v22 }
 0x530   : > { %8882 = vmatmul.mubr.msk.bf16.gmra.mrb[16].mxu1 %vm1044_vm11, %v12120_v0 }
 0x531   : > { %8885 = vmatprep.mubr.msk.bf16.mxu1 %vm1044_vm11, %v12121_v36 }
 0x538   : > { %8886 = vmatmul.mubr.msk.bf16.gmra.mrb[20].mxu1 %vm1044_vm11, %v12122_v44 }
 0x539   : > { %8889 = vmatprep.mubr.msk.bf16.mxu1 %vm1044_vm11, %v12123_v46 }
 0x540   : > { %8890 = vmatmul.mubr.msk.bf16.gmra.mrb[24].mxu1 %vm1044_vm11, %v12124_v8 }
 0x541   : > { %8893 = vmatprep.mubr.msk.bf16.mxu1 %vm1044_vm11, %v12125_v42 }
 0x548   : > { %8894 = vmatmul.mubr.msk.bf16.gmra.mrb[28].mxu1 %vm1044_vm11, %v12126_v15 }
 0x549   : > { %8899 = vmatprep.mubr.msk.bf16.mxu1 %vm1044_vm11, %v7875_v48 }
 0x550   : > { %8900 = vmatmul.mubr.msk.bf16.vlgmr.msra.gmra.mrb[0].mxu1 %vm1044_vm11, %v7876_v38 }
 0x551   : > { %8903 = vmatprep.mubr.msk.bf16.mxu1 %vm1044_vm11, %v12114_v6  ;;  %v9548_v6 = vld [vmem:[#allocation2 + $0x40] sm:$0xff] }
 0x558   : > { %8904 = vmatmul.mubr.msk.bf16.gmra.mrb[4].mxu1 %vm1044_vm11, %v12115_v34 }
 0x559   : > { %8907 = vmatprep.mubr.msk.bf16.mxu1 %vm1044_vm11, %v12116_v58 }
 0x560   : > { %8908 = vmatmul.mubr.msk.bf16.gmra.mrb[8].mxu1 %vm1044_vm11, %v12117_v49  ;;  %v9549_v49 = vld [vmem:[#allocation2 + $0x58] sm:$0xff] }
 0x561   : > { %8911 = vmatprep.mubr.msk.bf16.mxu1 %vm1044_vm11, %v12118_v50 }
 0x568   : > { %8912 = vmatmul.mubr.msk.bf16.gmra.mrb[12].mxu1 %vm1044_vm11, %v12119_v22  ;;  %v9550_v22 = vld [vmem:[#allocation2 + $0x48] sm:$0xff] }
 0x569   : > { %8915 = vmatprep.mubr.msk.bf16.mxu1 %vm1044_vm11, %v12120_v0 }
 0x570   : > { %8916 = vmatmul.mubr.msk.bf16.gmra.mrb[16].mxu1 %vm1044_vm11, %v12121_v36 }
 0x571   : > { %8919 = vmatprep.mubr.msk.bf16.mxu1 %vm1044_vm11, %v12122_v44 }
 0x578   : > { %8920 = vmatmul.mubr.msk.bf16.gmra.mrb[20].mxu1 %vm1044_vm11, %v12123_v46 }
 0x579   : > { %8923 = vmatprep.mubr.msk.bf16.mxu1 %vm1044_vm11, %v12124_v8 }
 0x580   : > { %8924 = vmatmul.mubr.msk.bf16.gmra.mrb[24].mxu1 %vm1044_vm11, %v12125_v42 }
 0x581   : > { %8927 = vmatprep.mubr.msk.bf16.mxu1 %vm1044_vm11, %v12126_v15 }
 0x588   : > { %8928 = vmatmul.mubr.msk.bf16.gmra.mrb[28].mxu1 %vm1044_vm11, %v7926_v55  ;;  %v9554_v55 = vld [vmem:[#allocation2 + $0x68] sm:$0xff] }
 0x623   : > { %v8901_v32 = vpop.f32.mrb[0].mxu1 }
 0x624   : > { %v7134_v45 = vadd.f32 %v8901_v32, %v11701_v16  ;;  %v6967_v25 = vpop.f32.mrb[1].mxu1 }
 0x625   : > { %v7132_v19 = vadd.f32 %v11701_v16, %v6967_v25  ;;  %v8902_v14 = vpop.f32.mrb[2].mxu1 }
 0x626   : > { %v11705_v43 = vadd.f32 %v9539_v1, %v7134_v45  ;;  %v7135_v59 = vadd.f32 %v8902_v14, %v11701_v16  ;;  %v6970_v23 = vpop.f32.mrb[3].mxu1 }
 0x627   : > { %v11708_v29 = vadd.f32 %v9540_v17, %v7132_v19  ;;  %v7133_v28 = vadd.f32 %v11701_v16, %v6970_v23 }
 0x628   : > { %7198 = vst.msk [vmem:[#allocation2 + $0x10] sm:$0xff] %vm1044_vm11, %v11705_v43  ;;  %v11713_v4 = vadd.f32 %v9541_v30, %v7135_v59  ;;  %v9555_v59 = vld [vmem:[#allocation2 + $0x90] sm:$0xff]  ;;  %v9556_v30 = vld [vmem:[#allocation2 + $0x80] sm:$0xff] }
 0x629   : > { %7196 = vst.msk [vmem:[#allocation2] sm:$0xff] %vm1044_vm11, %v11708_v29  ;;  %v11717_v26 = vadd.f32 %v9542_v52, %v7133_v28 }
 0x62a   : > { %7199 = vst.msk [vmem:[#allocation2 + $0x18] sm:$0xff] %vm1044_vm11, %v11713_v4 }
 0x62b   : > { %7197 = vst.msk [vmem:[#allocation2 + $0x8] sm:$0xff] %vm1044_vm11, %v11717_v26  ;;  %v8905_v24 = vpop.f32.mrb[4].mxu1 }
 0x62c   : > { %v7138_v63 = vadd.f32 %v8905_v24, %v11701_v16  ;;  %v6983_v39 = vpop.f32.mrb[5].mxu1 }
 0x62d   : > { %v7136_v51 = vadd.f32 %v11701_v16, %v6983_v39  ;;  %v8906_v9 = vpop.f32.mrb[6].mxu1 }
 0x62e   : > { %v11725_v20 = vadd.f32 %v9543_v60, %v7138_v63  ;;  %v7139_v12 = vadd.f32 %v8906_v9, %v11701_v16  ;;  %v6986_v11 = vpop.f32.mrb[7].mxu1  ;;  %v9557_v63 = vld [vmem:[#allocation2 + $0x98] sm:$0xff] }
 0x62f   : > { %v11728_v47 = vadd.f32 %v9544_v3, %v7136_v51  ;;  %v7137_v53 = vadd.f32 %v11701_v16, %v6986_v11  ;;  %v9558_v51 = vld [vmem:[#allocation2 + $0x88] sm:$0xff] }
 0x630   : > { %7202 = vst.msk [vmem:[#allocation2 + $0x30] sm:$0xff] %vm1044_vm11, %v11725_v20  ;;  %v11733_v54 = vadd.f32 %v9545_v62, %v7139_v12  ;;  %v9559_v62 = vld [vmem:[#allocation2 + $0xb0] sm:$0xff] }
 0x631   : > { %7200 = vst.msk [vmem:[#allocation2 + $0x20] sm:$0xff] %vm1044_vm11, %v11728_v47  ;;  %v11737_v7 = vadd.f32 %v9546_v21, %v7137_v53 }
 0x632   : > { %7203 = vst.msk [vmem:[#allocation2 + $0x38] sm:$0xff] %vm1044_vm11, %v11733_v54 }
 0x633   : > { %7201 = vst.msk [vmem:[#allocation2 + $0x28] sm:$0xff] %vm1044_vm11, %v11737_v7  ;;  %v8909_v48 = vpop.f32.mrb[8].mxu1 }
 0x634   : > { %v7142_v13 = vadd.f32 %v8909_v48, %v11701_v16  ;;  %v6999_v40 = vpop.f32.mrb[9].mxu1 }
 0x635   : > { %v7140_v35 = vadd.f32 %v11701_v16, %v6999_v40  ;;  %v8910_v57 = vpop.f32.mrb[10].mxu1  ;;  %v9560_v40 = vld [vmem:[#allocation2 + $0xa0] sm:$0xff] }
 0x636   : > { %v11745_v31 = vadd.f32 %v9547_v27, %v7142_v13  ;;  %v7143_v18 = vadd.f32 %v8910_v57, %v11701_v16  ;;  %v7002_v38 = vpop.f32.mrb[11].mxu1  ;;  %v9561_v27 = vld [vmem:[#allocation2 + $0xb8] sm:$0xff] }
 0x637   : > { %v11748_v34 = vadd.f32 %v9548_v6, %v7140_v35  ;;  %v7141_v58 = vadd.f32 %v11701_v16, %v7002_v38  ;;  %v9562_v38 = vld [vmem:[#allocation2 + $0xa8] sm:$0xff] }
 0x638   : > { %7206 = vst.msk [vmem:[#allocation2 + $0x50] sm:$0xff] %vm1044_vm11, %v11745_v31  ;;  %v11753_v50 = vadd.f32 %v9549_v49, %v7143_v18 }
 0x639   : > { %7204 = vst.msk [vmem:[#allocation2 + $0x40] sm:$0xff] %vm1044_vm11, %v11748_v34  ;;  %v11757_v0 = vadd.f32 %v9550_v22, %v7141_v58 }
 0x63a   : > { %7207 = vst.msk [vmem:[#allocation2 + $0x58] sm:$0xff] %vm1044_vm11, %v11753_v50 }
 0x63b   : > { %7205 = vst.msk [vmem:[#allocation2 + $0x48] sm:$0xff] %vm1044_vm11, %v11757_v0  ;;  %v8913_v36 = vpop.f32.mrb[12].mxu1 }
 0x63c   : > { %v7146_v44 = vadd.f32 %v8913_v36, %v11701_v16  ;;  %v7015_v46 = vpop.f32.mrb[13].mxu1 }
 0x63d   : > { %v7144_v8 = vadd.f32 %v11701_v16, %v7015_v46  ;;  %v8914_v42 = vpop.f32.mrb[14].mxu1  ;;  %v9563_v46 = vld [vmem:[#allocation2 + $0xd0] sm:$0xff] }
 0x63e   : > { %v11765_v15 = vadd.f32 %v9551_v2, %v7146_v44  ;;  %v7147_v5 = vadd.f32 %v8914_v42, %v11701_v16  ;;  %v7018_v33 = vpop.f32.mrb[15].mxu1 }
 0x63f   : > { %v11768_v37 = vadd.f32 %v9552_v41, %v7144_v8  ;;  %v7145_v61 = vadd.f32 %v11701_v16, %v7018_v33 }
 0x640   : > { %7210 = vst.msk [vmem:[#allocation2 + $0x70] sm:$0xff] %vm1044_vm11, %v11765_v15  ;;  %v11773_v56 = vadd.f32 %v9553_v10, %v7147_v5  ;;  %v9564_v5 = vld [vmem:[#allocation2 + $0xc0] sm:$0xff] }
 0x641   : > { %7208 = vst.msk [vmem:[#allocation2 + $0x60] sm:$0xff] %vm1044_vm11, %v11768_v37  ;;  %v11777_v32 = vadd.f32 %v9554_v55, %v7145_v61  ;;  %v9565_v61 = vld [vmem:[#allocation2 + $0xd8] sm:$0xff]  ;;  %v9566_v55 = vld [vmem:[#allocation2 + $0xc8] sm:$0xff] }
 0x642   : > { %7211 = vst.msk [vmem:[#allocation2 + $0x78] sm:$0xff] %vm1044_vm11, %v11773_v56 }
 0x643   : > { %7209 = vst.msk [vmem:[#allocation2 + $0x68] sm:$0xff] %vm1044_vm11, %v11777_v32  ;;  %v8917_v45 = vpop.f32.mrb[16].mxu1 }
 0x644   : > { %v7150_v25 = vadd.f32 %v8917_v45, %v11701_v16  ;;  %v7031_v19 = vpop.f32.mrb[17].mxu1 }
 0x645   : > { %v7148_v14 = vadd.f32 %v11701_v16, %v7031_v19  ;;  %v8918_v1 = vpop.f32.mrb[18].mxu1 }
 0x646   : > { %v11785_v23 = vadd.f32 %v9555_v59, %v7150_v25  ;;  %v7151_v17 = vadd.f32 %v8918_v1, %v11701_v16  ;;  %v7034_v28 = vpop.f32.mrb[19].mxu1 }
 0x647   : > { %v11788_v52 = vadd.f32 %v9556_v30, %v7148_v14  ;;  %v7149_v24 = vadd.f32 %v11701_v16, %v7034_v28 }
 0x648   : > { %7214 = vst.msk [vmem:[#allocation2 + $0x90] sm:$0xff] %vm1044_vm11, %v11785_v23  ;;  %v11793_v39 = vadd.f32 %v9557_v63, %v7151_v17  ;;  %v9567_v17 = vld [vmem:[#allocation2 + $0xf0] sm:$0xff]  ;;  %v9568_v63 = vld [vmem:[#allocation2 + $0xe0] sm:$0xff] }
 0x649   : > { %7212 = vst.msk [vmem:[#allocation2 + $0x80] sm:$0xff] %vm1044_vm11, %v11788_v52  ;;  %v11797_v9 = vadd.f32 %v9558_v51, %v7149_v24 }
 0x64a   : > { %7215 = vst.msk [vmem:[#allocation2 + $0x98] sm:$0xff] %vm1044_vm11, %v11793_v39 }
 0x64b   : > { %7213 = vst.msk [vmem:[#allocation2 + $0x88] sm:$0xff] %vm1044_vm11, %v11797_v9  ;;  %v8921_v60 = vpop.f32.mrb[20].mxu1 }
 0x64c   : > { %v7154_v12 = vadd.f32 %v8921_v60, %v11701_v16  ;;  %v7047_v11 = vpop.f32.mrb[21].mxu1 }
 0x64d   : > { %v7152_v3 = vadd.f32 %v11701_v16, %v7047_v11  ;;  %v8922_v53 = vpop.f32.mrb[22].mxu1 }
 0x64e   : > { %v11805_v21 = vadd.f32 %v9559_v62, %v7154_v12  ;;  %v7155_v48 = vadd.f32 %v8922_v53, %v11701_v16  ;;  %v7050_v13 = vpop.f32.mrb[23].mxu1  ;;  %v9569_v12 = vld [vmem:[#allocation2 + $0xf8] sm:$0xff]  ;;  %v7233_v62 = vld [vmem:[%s9668_s23 + $0x8] sm:$0xff] (!%p7944_p8) }
 0x64f   : > { %v11808_v35 = vadd.f32 %v9560_v40, %v7152_v3  ;;  %v7153_v57 = vadd.f32 %v11701_v16, %v7050_v13  ;;  %v9570_v3 = vld [vmem:[#allocation2 + $0xe8] sm:$0xff]  ;;  %v7265_v40 = vadd.f32 (!%p7944_p8), %v7233_v62, %v11717_v26  ;;  %v7240_v26 = vld [vmem:[%s9668_s23 + $0x40] sm:$0xff] (!%p7944_p8)  ;;  %v7262_v62 = vld [vmem:[%s9668_s23 + $0xf0] sm:$0xff] (!%p7944_p8) }
 0x650   : > { %7218 = vst.msk [vmem:[#allocation2 + $0xb0] sm:$0xff] %vm1044_vm11, %v11805_v21  ;;  %v11813_v18 = vadd.f32 %v9561_v27, %v7155_v48  ;;  %v7234_v48 = vld [vmem:[%s9668_s23 + $0x10] sm:$0xff] (!%p7944_p8)  ;;  %v7235_v27 = vld [vmem:[%s9668_s23 + $0x18] sm:$0xff] (!%p7944_p8) }
 0x651   : > { %7216 = vst.msk [vmem:[#allocation2 + $0xa0] sm:$0xff] %vm1044_vm11, %v11808_v35  ;;  %v11817_v6 = vadd.f32 %v9562_v38, %v7153_v57  ;;  %v7266_v57 = vadd.f32 (!%p7944_p8), %v7234_v48, %v11705_v43  ;;  %v7236_v38 = vld [vmem:[%s9668_s23 + $0x20] sm:$0xff] (!%p7944_p8)  ;;  %7297 = vst.msk [vmem:[%s9678_s30 + $0x8] sm:$0xff] (!%p7944_p8), %vm1044_vm11, %v7265_v40  ;;  %v7263_v48 = vld [vmem:[%s9668_s23 + $0xf8] sm:$0xff] (!%p7944_p8) }
 0x652   : > { %7219 = vst.msk [vmem:[#allocation2 + $0xb8] sm:$0xff] %vm1044_vm11, %v11813_v18 }
 0x653   : > { %7217 = vst.msk [vmem:[#allocation2 + $0xa8] sm:$0xff] %vm1044_vm11, %v11817_v6  ;;  %v8925_v58 = vpop.f32.mrb[24].mxu1  ;;  %7298 = vst.msk [vmem:[%s9678_s30 + $0x10] sm:$0xff] (!%p7944_p8), %vm1044_vm11, %v7266_v57 }
 0x654   : > { %v7158_v49 = vadd.f32 %v8925_v58, %v11701_v16  ;;  %v7063_v22 = vpop.f32.mrb[25].mxu1  ;;  %v7237_v58 = vld [vmem:[%s9668_s23 + $0x28] sm:$0xff] (!%p7944_p8) }
 0x655   : > { %v7156_v36 = vadd.f32 %v11701_v16, %v7063_v22  ;;  %v8926_v44 = vpop.f32.mrb[26].mxu1  ;;  %v7268_v22 = vadd.f32 (!%p7944_p8), %v7236_v38, %v11728_v47  ;;  %v7272_v47 = vadd.f32 (!%p7944_p8), %v7240_v26, %v11748_v34 }
 0x656   : > { %v11825_v8 = vadd.f32 %v9563_v46, %v7158_v49  ;;  %v7159_v42 = vadd.f32 %v8926_v44, %v11701_v16  ;;  %v7066_v2 = vpop.f32.mrb[27].mxu1  ;;  %v7267_v49 = vadd.f32 (!%p7944_p8), %v7235_v27, %v11713_v4  ;;  %v7239_v44 = vld [vmem:[%s9668_s23 + $0x38] sm:$0xff] (!%p7944_p8)  ;;  %v7242_v46 = vld [vmem:[%s9668_s23 + $0x50] sm:$0xff] (!%p7944_p8) }
 0x657   : > { %v11828_v33 = vadd.f32 %v9564_v5, %v7156_v36  ;;  %v7157_v41 = vadd.f32 %v11701_v16, %v7066_v2  ;;  %v7269_v36 = vadd.f32 (!%p7944_p8), %v7237_v58, %v11737_v7  ;;  %v7271_v4 = vadd.f32 (!%p7944_p8), %v7239_v44, %v11733_v54  ;;  %v7241_v7 = vld [vmem:[%s9668_s23 + $0x48] sm:$0xff] (!%p7944_p8)  ;;  %7300 = vst.msk [vmem:[%s9678_s30 + $0x20] sm:$0xff] (!%p7944_p8), %vm1044_vm11, %v7268_v22  ;;  %v7244_v2 = vld [vmem:[%s9668_s23 + $0x60] sm:$0xff] (!%p7944_p8) }
 0x658   : > { %7222 = vst.msk [vmem:[#allocation2 + $0xd0] sm:$0xff] %vm1044_vm11, %v11825_v8  ;;  %v11833_v10 = vadd.f32 %v9565_v61, %v7159_v42  ;;  %v7243_v42 = vld [vmem:[%s9668_s23 + $0x58] sm:$0xff] (!%p7944_p8)  ;;  %7299 = vst.msk [vmem:[%s9678_s30 + $0x18] sm:$0xff] (!%p7944_p8), %vm1044_vm11, %v7267_v49  ;;  %v7274_v54 = vadd.f32 (!%p7944_p8), %v7242_v46, %v11745_v31  ;;  %v7245_v5 = vld [vmem:[%s9668_s23 + $0x68] sm:$0xff] (!%p7944_p8) }
 0x659   : > { %7220 = vst.msk [vmem:[#allocation2 + $0xc0] sm:$0xff] %vm1044_vm11, %v11828_v33  ;;  %v11837_v45 = vadd.f32 %v9566_v55, %v7157_v41  ;;  %7301 = vst.msk [vmem:[%s9678_s30 + $0x28] sm:$0xff] (!%p7944_p8), %vm1044_vm11, %v7269_v36  ;;  %v7275_v34 = vadd.f32 (!%p7944_p8), %v7243_v42, %v11753_v50  ;;  %v7246_v41 = vld [vmem:[%s9668_s23 + $0x70] sm:$0xff] (!%p7944_p8)  ;;  %v7277_v31 = vadd.f32 (!%p7944_p8), %v7245_v5, %v11777_v32  ;;  %v7247_v61 = vld [vmem:[%s9668_s23 + $0x78] sm:$0xff] (!%p7944_p8) }
 0x65a   : > { %7223 = vst.msk [vmem:[#allocation2 + $0xd8] sm:$0xff] %vm1044_vm11, %v11833_v10  ;;  %7303 = vst.msk [vmem:[%s9678_s30 + $0x38] sm:$0xff] (!%p7944_p8), %vm1044_vm11, %v7271_v4  ;;  %v7278_v50 = vadd.f32 (!%p7944_p8), %v7246_v41, %v11765_v15  ;;  %v7248_v55 = vld [vmem:[%s9668_s23 + $0x80] sm:$0xff] (!%p7944_p8) }
 0x65b   : > { %7221 = vst.msk [vmem:[#allocation2 + $0xc8] sm:$0xff] %vm1044_vm11, %v11837_v45  ;;  %v8929_v25 = vpop.f32.mrb[28].mxu1  ;;  %7304 = vst.msk [vmem:[%s9678_s30 + $0x40] sm:$0xff] (!%p7944_p8), %vm1044_vm11, %v7272_v47  ;;  %v7280_v32 = vadd.f32 (!%p7944_p8), %v7248_v55, %v11788_v52 }
 0x65c   : > { %v7162_v19 = vadd.f32 %v8929_v25, %v11701_v16  ;;  %v7079_v14 = vpop.f32.mrb[29].mxu1  ;;  %v7249_v25 = vld [vmem:[%s9668_s23 + $0x88] sm:$0xff] (!%p7944_p8)  ;;  %7306 = vst.msk [vmem:[%s9678_s30 + $0x50] sm:$0xff] (!%p7944_p8), %vm1044_vm11, %v7274_v54  ;;  %7307 = vst.msk [vmem:[%s9678_s30 + $0x58] sm:$0xff] (!%p7944_p8), %vm1044_vm11, %v7275_v34 }
 0x65d   : > { %v7160_v1 = vadd.f32 %v11701_v16, %v7079_v14  ;;  %v8930_v59 = vpop.f32.mrb[30].mxu1  ;;  %7231 = sbr.rel (%p7944_p8) target bundleno = 1645 (0x66d), region = 40  ;;  %v7281_v15 = vadd.f32 (!%p7944_p8), %v7249_v25, %v11797_v9  ;;  %v7251_v14 = vld [vmem:[%s9668_s23 + $0x98] sm:$0xff] (!%p7944_p8)  ;;  %7309 = vst.msk [vmem:[%s9678_s30 + $0x68] sm:$0xff] (!%p7944_p8), %vm1044_vm11, %v7277_v31  ;;  %7310 = vst.msk [vmem:[%s9678_s30 + $0x70] sm:$0xff] (!%p7944_p8), %vm1044_vm11, %v7278_v50 }
 0x65e   : > { %v11845_v28 = vadd.f32 %v9567_v17, %v7162_v19  ;;  %v7163_v30 = vadd.f32 %v8930_v59, %v11701_v16  ;;  %v7082_v24 = vpop.f32.mrb[31].mxu1  ;;  %v7250_v19 = vld [vmem:[%s9668_s23 + $0x90] sm:$0xff] (!%p7944_p8)  ;;  %v7283_v52 = vadd.f32 (!%p7944_p8), %v7251_v14, %v11793_v39  ;;  %v7253_v59 = vld [vmem:[%s9668_s23 + $0xa8] sm:$0xff] (!%p7944_p8)  ;;  %7312 = vst.msk [vmem:[%s9678_s30 + $0x80] sm:$0xff] (!%p7944_p8), %vm1044_vm11, %v7280_v32 }
 0x65f   : > { %v11848_v51 = vadd.f32 %v9568_v63, %v7160_v1  ;;  %v7161_v60 = vadd.f32 %v11701_v16, %v7082_v24  ;;  %v7232_v16 = vld [vmem:[%s9668_s23] sm:$0xff] (!%p7944_p8)  ;;  %v7254_v17 = vld [vmem:[%s9668_s23 + $0xb0] sm:$0xff] (!%p7944_p8)  ;;  %7313 = vst.msk [vmem:[%s9678_s30 + $0x88] sm:$0xff] (!%p7944_p8), %vm1044_vm11, %v7281_v15  ;;  %v7257_v63 = vld [vmem:[%s9668_s23 + $0xc8] sm:$0xff] (!%p7944_p8) }
 0x660   : > { %7226 = vst.msk [vmem:[#allocation2 + $0xf0] sm:$0xff] %vm1044_vm11, %v11845_v28  ;;  %v11853_v11 = vadd.f32 %v9569_v12, %v7163_v30  ;;  %v7264_v13 = vadd.f32 (!%p7944_p8), %v7232_v16, %v11708_v29  ;;  %v7238_v29 = vld [vmem:[%s9668_s23 + $0x30] sm:$0xff] (!%p7944_p8)  ;;  %v7252_v1 = vld [vmem:[%s9668_s23 + $0xa0] sm:$0xff] (!%p7944_p8)  ;;  %v7255_v30 = vld [vmem:[%s9668_s23 + $0xb8] sm:$0xff] (!%p7944_p8)  ;;  %v7286_v39 = vadd.f32 (!%p7944_p8), %v7254_v17, %v11805_v21  ;;  %v7289_v21 = vadd.f32 (!%p7944_p8), %v7257_v63, %v11837_v45 }
 0x661   : > { %7224 = vst.msk [vmem:[#allocation2 + $0xe0] sm:$0xff] %vm1044_vm11, %v11848_v51  ;;  %v11857_v53 = vadd.f32 %v9570_v3, %v7161_v60  ;;  %v7270_v43 = vadd.f32 (!%p7944_p8), %v7238_v29, %v11725_v20  ;;  %v7273_v20 = vadd.f32 (!%p7944_p8), %v7241_v7, %v11757_v0  ;;  %v7276_v0 = vadd.f32 (!%p7944_p8), %v7244_v2, %v11768_v37  ;;  %v7256_v24 = vld [vmem:[%s9668_s23 + $0xc0] sm:$0xff] (!%p7944_p8)  ;;  %v7258_v60 = vld [vmem:[%s9668_s23 + $0xd0] sm:$0xff] (!%p7944_p8)  ;;  %v7259_v12 = vld [vmem:[%s9668_s23 + $0xd8] sm:$0xff] (!%p7944_p8) }
 0x662   : > { %7227 = vst.msk [vmem:[#allocation2 + $0xf8] sm:$0xff] %vm1044_vm11, %v11853_v11  ;;  %7296 = vst.msk [vmem:[%s9678_s30] sm:$0xff] (!%p7944_p8), %vm1044_vm11, %v7264_v13  ;;  %v7279_v37 = vadd.f32 (!%p7944_p8), %v7247_v61, %v11773_v56  ;;  %v7282_v56 = vadd.f32 (!%p7944_p8), %v7250_v19, %v11785_v23  ;;  %v7284_v9 = vadd.f32 (!%p7944_p8), %v7252_v1, %v11808_v35  ;;  %v7260_v3 = vld [vmem:[%s9668_s23 + $0xe0] sm:$0xff] (!%p7944_p8)  ;;  %v7261_v16 = vld [vmem:[%s9668_s23 + $0xe8] sm:$0xff] (!%p7944_p8) }
 0x663   : > { %7225 = vst.msk [vmem:[#allocation2 + $0xe8] sm:$0xff] %vm1044_vm11, %v11857_v53  ;;  %7302 = vst.msk [vmem:[%s9678_s30 + $0x30] sm:$0xff] (!%p7944_p8), %vm1044_vm11, %v7270_v43  ;;  %v7285_v23 = vadd.f32 (!%p7944_p8), %v7253_v59, %v11817_v6  ;;  %v7287_v35 = vadd.f32 (!%p7944_p8), %v7255_v30, %v11813_v18  ;;  %v7288_v6 = vadd.f32 (!%p7944_p8), %v7256_v24, %v11828_v33 }
 0x664   : > { %7305 = vst.msk [vmem:[%s9678_s30 + $0x48] sm:$0xff] %vm1044_vm11, %v7273_v20  ;;  %7308 = vst.msk [vmem:[%s9678_s30 + $0x60] sm:$0xff] %vm1044_vm11, %v7276_v0  ;;  %v7290_v18 = vadd.f32 %v7258_v60, %v11825_v8  ;;  %v7291_v33 = vadd.f32 %v7259_v12, %v11833_v10  ;;  %v7292_v45 = vadd.f32 %v7260_v3, %v11848_v51 }
 0x665   : > { %7311 = vst.msk [vmem:[%s9678_s30 + $0x78] sm:$0xff] %vm1044_vm11, %v7279_v37  ;;  %7314 = vst.msk [vmem:[%s9678_s30 + $0x90] sm:$0xff] %vm1044_vm11, %v7282_v56  ;;  %v7293_v8 = vadd.f32 %v7261_v16, %v11857_v53  ;;  %v7294_v13 = vadd.f32 %v7262_v62, %v11845_v28  ;;  %v7295_v40 = vadd.f32 %v7263_v48, %v11853_v11 }
 0x666   : > { %7315 = vst.msk [vmem:[%s9678_s30 + $0x98] sm:$0xff] %vm1044_vm11, %v7283_v52  ;;  %7316 = vst.msk [vmem:[%s9678_s30 + $0xa0] sm:$0xff] %vm1044_vm11, %v7284_v9 }
 0x667   : > { %7317 = vst.msk [vmem:[%s9678_s30 + $0xa8] sm:$0xff] %vm1044_vm11, %v7285_v23  ;;  %7318 = vst.msk [vmem:[%s9678_s30 + $0xb0] sm:$0xff] %vm1044_vm11, %v7286_v39 }
 0x668   : > { %7319 = vst.msk [vmem:[%s9678_s30 + $0xb8] sm:$0xff] %vm1044_vm11, %v7287_v35  ;;  %7320 = vst.msk [vmem:[%s9678_s30 + $0xc0] sm:$0xff] %vm1044_vm11, %v7288_v6 }
 0x669   : > { %7321 = vst.msk [vmem:[%s9678_s30 + $0xc8] sm:$0xff] %vm1044_vm11, %v7289_v21  ;;  %7322 = vst.msk [vmem:[%s9678_s30 + $0xd0] sm:$0xff] %vm1044_vm11, %v7290_v18 }
 0x66a   : > { %7323 = vst.msk [vmem:[%s9678_s30 + $0xd8] sm:$0xff] %vm1044_vm11, %v7291_v33  ;;  %7324 = vst.msk [vmem:[%s9678_s30 + $0xe0] sm:$0xff] %vm1044_vm11, %v7292_v45 }
 0x66b   : > { %7325 = vst.msk [vmem:[%s9678_s30 + $0xe8] sm:$0xff] %vm1044_vm11, %v7293_v8  ;;  %7326 = vst.msk [vmem:[%s9678_s30 + $0xf0] sm:$0xff] %vm1044_vm11, %v7294_v13 }
 0x66c   : > { %7327 = vst.msk [vmem:[%s9678_s30 + $0xf8] sm:$0xff] %vm1044_vm11, %v7295_v40 }
 0x66d PF: > { %s13_s16 = sadd.s32 1, %s9609_s16   ;;  %s12127_s12 = smov %s9601_s14 }
 0x66e   : > { %p10_p9 = scmp.ge.s32.totalorder %s13_s16, 6   ;;  %s12128_s13 = smov %s9605_s15 }
 0x66f   : > { %s12129_s14 = smov %s12132_s17  ;;  %s12130_s15 = smov %s12136_s18 }
 0x670   :  { %12 = sbr.rel (!%p10_p9) target bundleno = 3 (0x3), region = 95 }

</bundles_post_ra>
